<compile_context>
chip_gen: v6e
topology: v6e:2x2x1
jax: 0.10.0
libtpu: 0.0.40
codegen_flags: <defaults>
</compile_context>

<pallas_src>
import numpy as np
import jax
import jax.numpy as jnp
from jax.experimental import pallas as pl
from jax.experimental.pallas import tpu as pltpu


def _round_up(x: int, m: int) -> int:
    return ((x + m - 1) // m) * m


# ------------------------------------------------------------------ precompute

def _powers_kernel(p_ref, out_ref):
    """Single invocation: out[k] = P^k for k = 0..n-1 (per head), written once."""
    H, D, _ = p_ref.shape
    n = out_ref.shape[0]
    p = p_ref[...]

    row = jax.lax.broadcasted_iota(jnp.int32, (H, D, D), 1)
    col = jax.lax.broadcasted_iota(jnp.int32, (H, D, D), 2)
    acc = (row == col).astype(jnp.float32)          # identity per head
    out_ref[0] = acc

    # n is tiny and static; a straight unrolled chain of small f32 matmuls.
    # TODO(synk): for large `size`, switch to log-doubling (P^(2^t) times the
    # first 2^t existing powers) to cut the serial chain to O(log n) matmuls.
    for k in range(1, n):
        acc = jnp.einsum(
            "hij,hjk->hik", acc, p,
            preferred_element_type=jnp.float32,
            precision=jax.lax.Precision.HIGHEST)
        out_ref[k] = acc


def precompute_maps(primitives: jax.Array, size: int) -> jax.Array:
    """Pallas equivalent of UnitarySequential.precompute(size): (size+1, H, D, D)."""
    H, D, _ = primitives.shape
    n = size + 1
    return pl.pallas_call(
        _powers_kernel,
        out_shape=jax.ShapeDtypeStruct((n, H, D, D), jnp.float32),
        grid_spec=pltpu.PrefetchScalarGridSpec(
            num_scalar_prefetch=0,
            grid=(1,),
            in_specs=[pl.BlockSpec((H, D, D), lambda i: (0, 0, 0))],
            out_specs=pl.BlockSpec((n, H, D, D), lambda i: (0, 0, 0, 0)),
        ),
        compiler_params=pltpu.CompilerParams(dimension_semantics=("arbitrary",)),
    )(primitives.astype(jnp.float32))


# --------------------------------------------------------------------- forward

def _make_gather_kernel(rows_per_tile: int):
    def kernel(ids_ref, maps_ref, out_ref):
        # ids_ref : SMEM (total_padded,) int32   (scalar prefetch)
        # maps_ref: VMEM (n, H*D*D) f32          (whole table, resident)
        # out_ref : VMEM (rows_per_tile, H*D*D)  lane-dense output tile
        base = pl.program_id(0) * rows_per_tile

        def body(r, carry):
            idx = ids_ref[base + r]
            out_ref[r, :] = maps_ref[idx, :]
            return carry

        jax.lax.fori_loop(0, rows_per_tile, body, 0,
                          unroll=True if rows_per_tile <= 64 else False)
    return kernel


def forward(maps: jax.Array, position_ids: jax.Array,
            *, rows_per_tile: int = 512) -> jax.Array:
    """Pallas equivalent of UnitarySequential.forward: maps[position_ids]."""
    n, H, D, _ = maps.shape
    HDD = H * D * D
    B, S = position_ids.shape
    total = B * S

    # Lane-dense flat table (n, H*D*D); tiny (e.g. 13 x 1024 f32 ~ 53 KB).
    maps_flat = maps.reshape(n, HDD)
    # Clamp ids -> no out-of-bounds gathers from bad position ids.
    flat_ids = jnp.clip(position_ids.reshape(-1).astype(jnp.int32), 0, n - 1)

    # Row tile: multiple of 8 sublanes, <= rows_per_tile, dividing padded total.
    R = min(rows_per_tile, _round_up(total, 8))
    padded = _round_up(total, R)
    if padded != total:
        flat_ids = jnp.pad(flat_ids, (0, padded - total))
    grid = padded // R

    out = pl.pallas_call(
        _make_gather_kernel(R),
        out_shape=jax.ShapeDtypeStruct((padded, HDD), maps.dtype),
        grid_spec=pltpu.PrefetchScalarGridSpec(
            num_scalar_prefetch=1,
            grid=(grid,),
            in_specs=[pl.BlockSpec((n, HDD), lambda i, ids: (0, 0))],
            out_specs=pl.BlockSpec((R, HDD), lambda i, ids: (i, 0)),
        ),
        compiler_params=pltpu.CompilerParams(dimension_semantics=("parallel",)),
    )(flat_ids, maps_flat)

    return out[:total].reshape(B, S, H, D, D)


# ------------------------------------------------------------- parameter setup

def init_primitives(key, dim: int, num_heads: int) -> jax.Array:
    """Mirrors __init__ + the `primitives` property (matrix_exp of A - A^H)."""
    raw = jax.random.uniform(key, (num_heads, dim, dim), dtype=jnp.float32)
    params = jnp.cumsum(jax.nn.softmax(raw, axis=-1), axis=-1)     # _primitives
    herm = params - jnp.swapaxes(params, -1, -2)                   # hermitian (real)
    prim = jax.vmap(jax.scipy.linalg.expm)(herm)                   # matrix_exp
    return prim.astype(jnp.float32)


# ------------------------------------------------------------------------ main

if __name__ == "__main__":
    dim, num_heads = 16, 4
    size = 12          # precompute(size)
    B, S = 2, 8

    key = jax.random.PRNGKey(0)
    kp, ki = jax.random.split(key)

    primitives = init_primitives(kp, dim, num_heads)                   # (H, D, D)
    maps = precompute_maps(primitives, size)                           # (size+1, H, D, D)
    position_ids = jax.random.randint(ki, (B, S), 0, size + 1, jnp.int32)

    out = forward(maps, position_ids)                                  # (B, S, H, D, D)
    out = jax.block_until_ready(out)

    # Pure-JAX reference for both stages.
    eye = jnp.broadcast_to(jnp.eye(dim, dtype=jnp.float32), (num_heads, dim, dim))
    ref_list = [eye]
    cur = eye
    for _ in range(size):
        cur = jnp.einsum("hij,hjk->hik", cur, primitives,
                         precision=jax.lax.Precision.HIGHEST)
        ref_list.append(cur)
    ref_maps = jnp.stack(ref_list, axis=0)
    ref_out = ref_maps[position_ids]

    np.testing.assert_allclose(np.asarray(maps), np.asarray(ref_maps),
                               rtol=1e-4, atol=1e-4)
    np.testing.assert_allclose(np.asarray(out), np.asarray(ref_out),
                               rtol=1e-4, atol=1e-4)
    assert out.shape == (B, S, num_heads, dim, dim)
    print("KERNEL_OK")
</pallas_src>

<mosaic_0001>
module attributes {stable_mosaic.version = 11 : i64} {
  func.func @_powers_kernel(%arg0: i32, %arg1: memref<4x16x16xf32, #tpu.memory_space<vmem>>, %arg2: memref<13x4x16x16xf32, #tpu.memory_space<vmem>>) attributes {dimension_semantics = [#tpu.dimension_semantics<arbitrary>], iteration_bounds = array<i64: 1>, scalar_prefetch = 0 : i64, scratch_operands = 0 : i64, tpu.core_type = #tpu.core_type<tc>, window_params = [{pipeline_mode = #tpu.pipeline_mode<synchronous>, transform_indices = @transform_0, window_bounds = array<i64: 4, 16, 16>}, {pipeline_mode = #tpu.pipeline_mode<synchronous>, transform_indices = @transform_1, window_bounds = array<i64: 13, 4, 16, 16>}]} {
    %c0 = arith.constant 0 : index
    %c0_0 = arith.constant 0 : index
    %c0_1 = arith.constant 0 : index
    %0 = vector.load %arg1[%c0, %c0_0, %c0_1] : memref<4x16x16xf32, #tpu.memory_space<vmem>>, vector<4x16x16xf32>
    %1 = tpu.iota {dimensions = array<i32: 1>} : vector<4x16x16xi32>
    %2 = tpu.iota {dimensions = array<i32: 2>} : vector<4x16x16xi32>
    %3 = arith.cmpi eq, %1, %2 : vector<4x16x16xi32>
    %4 = arith.extui %3 : vector<4x16x16xi1> to vector<4x16x16xi32>
    %5 = arith.sitofp %4 : vector<4x16x16xi32> to vector<4x16x16xf32>
    %c0_2 = arith.constant 0 : index
    %c0_3 = arith.constant 0 : index
    %c0_4 = arith.constant 0 : index
    %c0_5 = arith.constant 0 : index
    %6 = vector.load %arg2[%c0_2, %c0_3, %c0_4, %c0_5] : memref<13x4x16x16xf32, #tpu.memory_space<vmem>>, vector<1x4x16x16xf32>
    %7 = vector.shape_cast %6 : vector<1x4x16x16xf32> to vector<4x16x16xf32>
    %8 = vector.shape_cast %5 : vector<4x16x16xf32> to vector<1x4x16x16xf32>
    tpu.vector_store %arg2[%c0_2, %c0_3, %c0_4, %c0_5], %8 {strides = array<i32>} : memref<13x4x16x16xf32, #tpu.memory_space<vmem>>, vector<1x4x16x16xf32>,
    "tpu.trace_start"() <{level = 10 : i32, message = "hij,hjk->hik"}> : () -> ()
    %cst = arith.constant dense<0.000000e+00> : vector<4x16x16xf32>
    %9 = tpu.matmul %5, %0, %cst {dimension_numbers = #tpu.dot_dimension_numbers<[2], [1], [1], [2], [0, 0, 0, 1, 1, 2], [0], [0]>, precision = #tpu.contract_precision<fp32>} : vector<4x16x16xf32>, vector<4x16x16xf32>, vector<4x16x16xf32> -> vector<4x16x16xf32>
    "tpu.trace_stop"() : () -> ()
    %c1 = arith.constant 1 : index
    %c0_6 = arith.constant 0 : index
    %c0_7 = arith.constant 0 : index
    %c0_8 = arith.constant 0 : index
    %10 = vector.load %arg2[%c1, %c0_6, %c0_7, %c0_8] : memref<13x4x16x16xf32, #tpu.memory_space<vmem>>, vector<1x4x16x16xf32>
    %11 = vector.shape_cast %10 : vector<1x4x16x16xf32> to vector<4x16x16xf32>
    %12 = vector.shape_cast %9 : vector<4x16x16xf32> to vector<1x4x16x16xf32>
    tpu.vector_store %arg2[%c1, %c0_6, %c0_7, %c0_8], %12 {strides = array<i32>} : memref<13x4x16x16xf32, #tpu.memory_space<vmem>>, vector<1x4x16x16xf32>,
    "tpu.trace_start"() <{level = 10 : i32, message = "hij,hjk->hik"}> : () -> ()
    %cst_9 = arith.constant dense<0.000000e+00> : vector<4x16x16xf32>
    %13 = tpu.matmul %9, %0, %cst_9 {dimension_numbers = #tpu.dot_dimension_numbers<[2], [1], [1], [2], [0, 0, 0, 1, 1, 2], [0], [0]>, precision = #tpu.contract_precision<fp32>} : vector<4x16x16xf32>, vector<4x16x16xf32>, vector<4x16x16xf32> -> vector<4x16x16xf32>
    "tpu.trace_stop"() : () -> ()
    %c2 = arith.constant 2 : index
    %c0_10 = arith.constant 0 : index
    %c0_11 = arith.constant 0 : index
    %c0_12 = arith.constant 0 : index
    %14 = vector.load %arg2[%c2, %c0_10, %c0_11, %c0_12] : memref<13x4x16x16xf32, #tpu.memory_space<vmem>>, vector<1x4x16x16xf32>
    %15 = vector.shape_cast %14 : vector<1x4x16x16xf32> to vector<4x16x16xf32>
    %16 = vector.shape_cast %13 : vector<4x16x16xf32> to vector<1x4x16x16xf32>
    tpu.vector_store %arg2[%c2, %c0_10, %c0_11, %c0_12], %16 {strides = array<i32>} : memref<13x4x16x16xf32, #tpu.memory_space<vmem>>, vector<1x4x16x16xf32>,
    "tpu.trace_start"() <{level = 10 : i32, message = "hij,hjk->hik"}> : () -> ()
    %cst_13 = arith.constant dense<0.000000e+00> : vector<4x16x16xf32>
    %17 = tpu.matmul %13, %0, %cst_13 {dimension_numbers = #tpu.dot_dimension_numbers<[2], [1], [1], [2], [0, 0, 0, 1, 1, 2], [0], [0]>, precision = #tpu.contract_precision<fp32>} : vector<4x16x16xf32>, vector<4x16x16xf32>, vector<4x16x16xf32> -> vector<4x16x16xf32>
    "tpu.trace_stop"() : () -> ()
    %c3 = arith.constant 3 : index
    %c0_14 = arith.constant 0 : index
    %c0_15 = arith.constant 0 : index
    %c0_16 = arith.constant 0 : index
    %18 = vector.load %arg2[%c3, %c0_14, %c0_15, %c0_16] : memref<13x4x16x16xf32, #tpu.memory_space<vmem>>, vector<1x4x16x16xf32>
    %19 = vector.shape_cast %18 : vector<1x4x16x16xf32> to vector<4x16x16xf32>
    %20 = vector.shape_cast %17 : vector<4x16x16xf32> to vector<1x4x16x16xf32>
    tpu.vector_store %arg2[%c3, %c0_14, %c0_15, %c0_16], %20 {strides = array<i32>} : memref<13x4x16x16xf32, #tpu.memory_space<vmem>>, vector<1x4x16x16xf32>,
    "tpu.trace_start"() <{level = 10 : i32, message = "hij,hjk->hik"}> : () -> ()
    %cst_17 = arith.constant dense<0.000000e+00> : vector<4x16x16xf32>
    %21 = tpu.matmul %17, %0, %cst_17 {dimension_numbers = #tpu.dot_dimension_numbers<[2], [1], [1], [2], [0, 0, 0, 1, 1, 2], [0], [0]>, precision = #tpu.contract_precision<fp32>} : vector<4x16x16xf32>, vector<4x16x16xf32>, vector<4x16x16xf32> -> vector<4x16x16xf32>
    "tpu.trace_stop"() : () -> ()
    %c4 = arith.constant 4 : index
    %c0_18 = arith.constant 0 : index
    %c0_19 = arith.constant 0 : index
    %c0_20 = arith.constant 0 : index
    %22 = vector.load %arg2[%c4, %c0_18, %c0_19, %c0_20] : memref<13x4x16x16xf32, #tpu.memory_space<vmem>>, vector<1x4x16x16xf32>
    %23 = vector.shape_cast %22 : vector<1x4x16x16xf32> to vector<4x16x16xf32>
    %24 = vector.shape_cast %21 : vector<4x16x16xf32> to vector<1x4x16x16xf32>
    tpu.vector_store %arg2[%c4, %c0_18, %c0_19, %c0_20], %24 {strides = array<i32>} : memref<13x4x16x16xf32, #tpu.memory_space<vmem>>, vector<1x4x16x16xf32>,
    "tpu.trace_start"() <{level = 10 : i32, message = "hij,hjk->hik"}> : () -> ()
    %cst_21 = arith.constant dense<0.000000e+00> : vector<4x16x16xf32>
    %25 = tpu.matmul %21, %0, %cst_21 {dimension_numbers = #tpu.dot_dimension_numbers<[2], [1], [1], [2], [0, 0, 0, 1, 1, 2], [0], [0]>, precision = #tpu.contract_precision<fp32>} : vector<4x16x16xf32>, vector<4x16x16xf32>, vector<4x16x16xf32> -> vector<4x16x16xf32>
    "tpu.trace_stop"() : () -> ()
    %c5 = arith.constant 5 : index
    %c0_22 = arith.constant 0 : index
    %c0_23 = arith.constant 0 : index
    %c0_24 = arith.constant 0 : index
    %26 = vector.load %arg2[%c5, %c0_22, %c0_23, %c0_24] : memref<13x4x16x16xf32, #tpu.memory_space<vmem>>, vector<1x4x16x16xf32>
    %27 = vector.shape_cast %26 : vector<1x4x16x16xf32> to vector<4x16x16xf32>
    %28 = vector.shape_cast %25 : vector<4x16x16xf32> to vector<1x4x16x16xf32>
    tpu.vector_store %arg2[%c5, %c0_22, %c0_23, %c0_24], %28 {strides = array<i32>} : memref<13x4x16x16xf32, #tpu.memory_space<vmem>>, vector<1x4x16x16xf32>,
    "tpu.trace_start"() <{level = 10 : i32, message = "hij,hjk->hik"}> : () -> ()
    %cst_25 = arith.constant dense<0.000000e+00> : vector<4x16x16xf32>
    %29 = tpu.matmul %25, %0, %cst_25 {dimension_numbers = #tpu.dot_dimension_numbers<[2], [1], [1], [2], [0, 0, 0, 1, 1, 2], [0], [0]>, precision = #tpu.contract_precision<fp32>} : vector<4x16x16xf32>, vector<4x16x16xf32>, vector<4x16x16xf32> -> vector<4x16x16xf32>
    "tpu.trace_stop"() : () -> ()
    %c6 = arith.constant 6 : index
    %c0_26 = arith.constant 0 : index
    %c0_27 = arith.constant 0 : index
    %c0_28 = arith.constant 0 : index
    %30 = vector.load %arg2[%c6, %c0_26, %c0_27, %c0_28] : memref<13x4x16x16xf32, #tpu.memory_space<vmem>>, vector<1x4x16x16xf32>
    %31 = vector.shape_cast %30 : vector<1x4x16x16xf32> to vector<4x16x16xf32>
    %32 = vector.shape_cast %29 : vector<4x16x16xf32> to vector<1x4x16x16xf32>
    tpu.vector_store %arg2[%c6, %c0_26, %c0_27, %c0_28], %32 {strides = array<i32>} : memref<13x4x16x16xf32, #tpu.memory_space<vmem>>, vector<1x4x16x16xf32>,
    "tpu.trace_start"() <{level = 10 : i32, message = "hij,hjk->hik"}> : () -> ()
    %cst_29 = arith.constant dense<0.000000e+00> : vector<4x16x16xf32>
    %33 = tpu.matmul %29, %0, %cst_29 {dimension_numbers = #tpu.dot_dimension_numbers<[2], [1], [1], [2], [0, 0, 0, 1, 1, 2], [0], [0]>, precision = #tpu.contract_precision<fp32>} : vector<4x16x16xf32>, vector<4x16x16xf32>, vector<4x16x16xf32> -> vector<4x16x16xf32>
    "tpu.trace_stop"() : () -> ()
    %c7 = arith.constant 7 : index
    %c0_30 = arith.constant 0 : index
    %c0_31 = arith.constant 0 : index
    %c0_32 = arith.constant 0 : index
    %34 = vector.load %arg2[%c7, %c0_30, %c0_31, %c0_32] : memref<13x4x16x16xf32, #tpu.memory_space<vmem>>, vector<1x4x16x16xf32>
    %35 = vector.shape_cast %34 : vector<1x4x16x16xf32> to vector<4x16x16xf32>
    %36 = vector.shape_cast %33 : vector<4x16x16xf32> to vector<1x4x16x16xf32>
    tpu.vector_store %arg2[%c7, %c0_30, %c0_31, %c0_32], %36 {strides = array<i32>} : memref<13x4x16x16xf32, #tpu.memory_space<vmem>>, vector<1x4x16x16xf32>,
    "tpu.trace_start"() <{level = 10 : i32, message = "hij,hjk->hik"}> : () -> ()
    %cst_33 = arith.constant dense<0.000000e+00> : vector<4x16x16xf32>
    %37 = tpu.matmul %33, %0, %cst_33 {dimension_numbers = #tpu.dot_dimension_numbers<[2], [1], [1], [2], [0, 0, 0, 1, 1, 2], [0], [0]>, precision = #tpu.contract_precision<fp32>} : vector<4x16x16xf32>, vector<4x16x16xf32>, vector<4x16x16xf32> -> vector<4x16x16xf32>
    "tpu.trace_stop"() : () -> ()
    %c8 = arith.constant 8 : index
    %c0_34 = arith.constant 0 : index
    %c0_35 = arith.constant 0 : index
    %c0_36 = arith.constant 0 : index
    %38 = vector.load %arg2[%c8, %c0_34, %c0_35, %c0_36] : memref<13x4x16x16xf32, #tpu.memory_space<vmem>>, vector<1x4x16x16xf32>
    %39 = vector.shape_cast %38 : vector<1x4x16x16xf32> to vector<4x16x16xf32>
    %40 = vector.shape_cast %37 : vector<4x16x16xf32> to vector<1x4x16x16xf32>
    tpu.vector_store %arg2[%c8, %c0_34, %c0_35, %c0_36], %40 {strides = array<i32>} : memref<13x4x16x16xf32, #tpu.memory_space<vmem>>, vector<1x4x16x16xf32>,
    "tpu.trace_start"() <{level = 10 : i32, message = "hij,hjk->hik"}> : () -> ()
    %cst_37 = arith.constant dense<0.000000e+00> : vector<4x16x16xf32>
    %41 = tpu.matmul %37, %0, %cst_37 {dimension_numbers = #tpu.dot_dimension_numbers<[2], [1], [1], [2], [0, 0, 0, 1, 1, 2], [0], [0]>, precision = #tpu.contract_precision<fp32>} : vector<4x16x16xf32>, vector<4x16x16xf32>, vector<4x16x16xf32> -> vector<4x16x16xf32>
    "tpu.trace_stop"() : () -> ()
    %c9 = arith.constant 9 : index
    %c0_38 = arith.constant 0 : index
    %c0_39 = arith.constant 0 : index
    %c0_40 = arith.constant 0 : index
    %42 = vector.load %arg2[%c9, %c0_38, %c0_39, %c0_40] : memref<13x4x16x16xf32, #tpu.memory_space<vmem>>, vector<1x4x16x16xf32>
    %43 = vector.shape_cast %42 : vector<1x4x16x16xf32> to vector<4x16x16xf32>
    %44 = vector.shape_cast %41 : vector<4x16x16xf32> to vector<1x4x16x16xf32>
    tpu.vector_store %arg2[%c9, %c0_38, %c0_39, %c0_40], %44 {strides = array<i32>} : memref<13x4x16x16xf32, #tpu.memory_space<vmem>>, vector<1x4x16x16xf32>,
    "tpu.trace_start"() <{level = 10 : i32, message = "hij,hjk->hik"}> : () -> ()
    %cst_41 = arith.constant dense<0.000000e+00> : vector<4x16x16xf32>
    %45 = tpu.matmul %41, %0, %cst_41 {dimension_numbers = #tpu.dot_dimension_numbers<[2], [1], [1], [2], [0, 0, 0, 1, 1, 2], [0], [0]>, precision = #tpu.contract_precision<fp32>} : vector<4x16x16xf32>, vector<4x16x16xf32>, vector<4x16x16xf32> -> vector<4x16x16xf32>
    "tpu.trace_stop"() : () -> ()
    %c10 = arith.constant 10 : index
    %c0_42 = arith.constant 0 : index
    %c0_43 = arith.constant 0 : index
    %c0_44 = arith.constant 0 : index
    %46 = vector.load %arg2[%c10, %c0_42, %c0_43, %c0_44] : memref<13x4x16x16xf32, #tpu.memory_space<vmem>>, vector<1x4x16x16xf32>
    %47 = vector.shape_cast %46 : vector<1x4x16x16xf32> to vector<4x16x16xf32>
    %48 = vector.shape_cast %45 : vector<4x16x16xf32> to vector<1x4x16x16xf32>
    tpu.vector_store %arg2[%c10, %c0_42, %c0_43, %c0_44], %48 {strides = array<i32>} : memref<13x4x16x16xf32, #tpu.memory_space<vmem>>, vector<1x4x16x16xf32>,
    "tpu.trace_start"() <{level = 10 : i32, message = "hij,hjk->hik"}> : () -> ()
    %cst_45 = arith.constant dense<0.000000e+00> : vector<4x16x16xf32>
    %49 = tpu.matmul %45, %0, %cst_45 {dimension_numbers = #tpu.dot_dimension_numbers<[2], [1], [1], [2], [0, 0, 0, 1, 1, 2], [0], [0]>, precision = #tpu.contract_precision<fp32>} : vector<4x16x16xf32>, vector<4x16x16xf32>, vector<4x16x16xf32> -> vector<4x16x16xf32>
    "tpu.trace_stop"() : () -> ()
    %c11 = arith.constant 11 : index
    %c0_46 = arith.constant 0 : index
    %c0_47 = arith.constant 0 : index
    %c0_48 = arith.constant 0 : index
    %50 = vector.load %arg2[%c11, %c0_46, %c0_47, %c0_48] : memref<13x4x16x16xf32, #tpu.memory_space<vmem>>, vector<1x4x16x16xf32>
    %51 = vector.shape_cast %50 : vector<1x4x16x16xf32> to vector<4x16x16xf32>
    %52 = vector.shape_cast %49 : vector<4x16x16xf32> to vector<1x4x16x16xf32>
    tpu.vector_store %arg2[%c11, %c0_46, %c0_47, %c0_48], %52 {strides = array<i32>} : memref<13x4x16x16xf32, #tpu.memory_space<vmem>>, vector<1x4x16x16xf32>,
    "tpu.trace_start"() <{level = 10 : i32, message = "hij,hjk->hik"}> : () -> ()
    %cst_49 = arith.constant dense<0.000000e+00> : vector<4x16x16xf32>
    %53 = tpu.matmul %49, %0, %cst_49 {dimension_numbers = #tpu.dot_dimension_numbers<[2], [1], [1], [2], [0, 0, 0, 1, 1, 2], [0], [0]>, precision = #tpu.contract_precision<fp32>} : vector<4x16x16xf32>, vector<4x16x16xf32>, vector<4x16x16xf32> -> vector<4x16x16xf32>
    "tpu.trace_stop"() : () -> ()
    %c12 = arith.constant 12 : index
    %c0_50 = arith.constant 0 : index
    %c0_51 = arith.constant 0 : index
    %c0_52 = arith.constant 0 : index
    %54 = vector.load %arg2[%c12, %c0_50, %c0_51, %c0_52] : memref<13x4x16x16xf32, #tpu.memory_space<vmem>>, vector<1x4x16x16xf32>
    %55 = vector.shape_cast %54 : vector<1x4x16x16xf32> to vector<4x16x16xf32>
    %56 = vector.shape_cast %53 : vector<4x16x16xf32> to vector<1x4x16x16xf32>
    tpu.vector_store %arg2[%c12, %c0_50, %c0_51, %c0_52], %56 {strides = array<i32>} : memref<13x4x16x16xf32, #tpu.memory_space<vmem>>, vector<1x4x16x16xf32>,
    return
  }
  func.func @transform_0(%arg0: i32) -> (i32, i32, i32) {
    %c0_i32 = arith.constant 0 : i32
    %c0_i32_0 = arith.constant 0 : i32
    %c0_i32_1 = arith.constant 0 : i32
    %c0_i32_2 = arith.constant 0 : i32
    return %c0_i32, %c0_i32_0, %c0_i32_1 : i32, i32, i32
  }
  func.func @transform_1(%arg0: i32) -> (i32, i32, i32, i32) {
    %c0_i32 = arith.constant 0 : i32
    %c0_i32_0 = arith.constant 0 : i32
    %c0_i32_1 = arith.constant 0 : i32
    %c0_i32_2 = arith.constant 0 : i32
    %c0_i32_3 = arith.constant 0 : i32
    return %c0_i32, %c0_i32_0, %c0_i32_1, %c0_i32_2 : i32, i32, i32, i32
  }
}

</mosaic_0001>

<bundles_post_ra>
// kernel: tpu_custom_call.1
= control target key start
LH: loop header
LB: loop body
LE: loop exit
PB: predicated region body
PF: predicated region fallthrough
CT: control target
= control target key end

     0   :  { %6 = vsyncpa [#allocation3], 0  ;;  %s29648_s0 = inlined_call_operand.hbm [shape: f32[4,16,16], index: 0, kind: input, shape index: {}]   ;;  %s29649_s1 = inlined_call_operand.hbm [shape: f32[13,4,16,16], index: 1, kind: output, shape index: {}]  }
   0x1   :  { %7 = vsyncpa [#allocation4], 0  ;;  %s27785_s6 = smov [#allocation2]  }
   0x2   :  { %s13_s7 = sshll.u32 %s27785_s6, 4  ;;  %s14_s7 = int_to_ptr.vmem [resolvable:$true] %s13_s7 }
   0x3   :  { %s27749_s8 = scalar_lea.vmem %s14_s7, 1024  ;;  %p27754_p1 = scmp.lt.s32.totalorder %s14_s7, %s14_s7 }
   0x4   :  { %p27750_p0 = scmp.ne.s32.totalorder %s14_s7, %s27749_s8  ;;  %p27755_p2 = scmp.lt.s32.totalorder %s27749_s8, %s27749_s8 }
   0x6   :  { %p27756_p3 = por %p27755_p2, %p27754_p1 }
   0x8   :  { %p27757_p4 = pnand %p27756_p3, %p27750_p0 }
   0xa   :  { %27760 = shalt.err (!%p27757_p4)
}
   0xb   :  { %s27786_s9 = smov 128   ;;  %s27787_s10 = smov 8  }
   0xc   :  { %19 = dma.hbm_to_vmem [thread:$0]  %s29648_s0, 1024, %s14_s7, [#allocation3], %s27786_s9, %s27786_s9, %s27787_s10  }
   0xd   :  { %27781 = dma.done.wait [#allocation3], 1024  }
   0xe   :  { %27782 = vsyncadd [#allocation3], 4294966272  ;;  %v31_v0 = vlaneseq  ;;  %vm42_vm0 = vcmask 130048   ;;  %v27788_v4 = vmov 0.0   ;;  %v24_v7 = vld [vmem:[#allocation2 + $0x8] sm:$0xff]  ;;  %v23_v8 = vld [vmem:[#allocation2] sm:$0xff] }
   0xf   :  { %v27824_v11 = vand.u32 4294901760, %v24_v7  ;;  %v27826_v12 = vand.u32 4294901760, %v23_v8  ;;  %v26_v20 = vld [vmem:[#allocation2 + $0x18] sm:$0xff]  ;;  %v25_v25 = vld [vmem:[#allocation2 + $0x10] sm:$0xff]  ;;  %v28_v39 = vld [vmem:[#allocation2 + $0x28] sm:$0xff]  ;;  %s27789_s0 = smov [#allocation5]  }
  0x10   :  { %v32_v1 = vshrl.u32 %v31_v0, 7  ;;  %v35_v2 = vand.u32 127, %v31_v0  ;;  %v27873_v28 = vand.u32 4294901760, %v26_v20  ;;  %v27882_v32 = vand.u32 4294901760, %v25_v25  ;;  %v27_v41 = vld [vmem:[#allocation2 + $0x20] sm:$0xff]  ;;  %v30_v51 = vld [vmem:[#allocation2 + $0x38] sm:$0xff] }
  0x11   :  { %25720 = vmatprep.subr.mxu0 %v27824_v11  ;;  %v27845_v16 = vsub.f32 %v24_v7, %v27824_v11  ;;  %v27848_v17 = vsub.f32 %v23_v8, %v27826_v12  ;;  %v27939_v43 = vand.u32 4294901760, %v28_v39  ;;  %v27946_v44 = vand.u32 4294901760, %v27_v41  ;;  %v29_v53 = vld [vmem:[#allocation2 + $0x30] sm:$0xff]  ;;  %s24530_s13 = sshll.u32 %s27789_s0, 4  ;;  %s24531_s13 = int_to_ptr.vmem [resolvable:$true] %s24530_s13 }
  0x12   :  { %vm36_vm1 = vcmp.eq.s32.totalorder %v32_v1, %v35_v2  ;;  %v33_v3 = vadd.s32 8, %v32_v1  ;;  %25721 = vmatpush3.msra.mxu0 %v27824_v11  ;;  %v27888_v33 = vsub.f32 %v26_v20, %v27873_v28  ;;  %v27895_v34 = vsub.f32 %v25_v25, %v27882_v32  ;;  %s27761_s14 = scalar_lea.vmem %s24531_s13, 13312  ;;  %p27766_p6 = scmp.lt.s32.totalorder %s24531_s13, %s24531_s13 }
  0x13   :  { %v27806_v5 = vsel %vm36_vm1, 1.0, %v27788_v4  ;;  %25722 = vmatprep.subr.mxu0 %v27826_v12  ;;  %v27858_v21 = vand.u32 4294901760, %v27845_v16  ;;  %v27861_v22 = vand.u32 4294901760, %v27848_v17  ;;  %v27953_v45 = vsub.f32 %v28_v39, %v27939_v43  ;;  %p27762_p5 = scmp.ne.s32.totalorder %s24531_s13, %s27761_s14  ;;  %p27767_p7 = scmp.lt.s32.totalorder %s27761_s14, %s27761_s14 }
  0x14   :  { %43 = vst.msk [vmem:[#allocation5] sm:$0xff] %vm42_vm0, %v27806_v5  ;;  %45 = vst.msk [vmem:[#allocation5 + $0x10] sm:$0xff] %vm42_vm0, %v27806_v5  ;;  %v52_v6 = vsel %vm42_vm0, %v27806_v5, 0  ;;  %vm37_vm2 = vcmp.eq.s32.totalorder %v33_v3, %v35_v2  ;;  %25731 = vmatprep.mubr.msk.f32.mxu1 %vm42_vm0, %v27806_v5  ;;  %25723 = vmatpush3.msra.mxu0 %v27826_v12  ;;  %v27903_v35 = vand.u32 4294901760, %v27888_v33  ;;  %v27910_v36 = vand.u32 4294901760, %v27895_v34 }
  0x15   :  { %47 = vst.msk [vmem:[#allocation5 + $0x20] sm:$0xff] %vm42_vm0, %v27806_v5  ;;  %49 = vst.msk [vmem:[#allocation5 + $0x30] sm:$0xff] %vm42_vm0, %v27806_v5  ;;  %v27820_v9 = vsub.f32 %v52_v6, %v52_v6  ;;  %v27822_v10 = vsel %vm37_vm2, 1.0, %v27788_v4  ;;  %v176_v26 = vsub.f32 %v27845_v16, %v27858_v21  ;;  %25734 = vmatprep.subr.mxu0 %v27845_v16  ;;  %v27969_v47 = vand.u32 4294901760, %v27953_v45  ;;  %p27768_p8 = por %p27767_p7, %p27766_p6 }
  0x16   :  { %44 = vst.msk [vmem:[#allocation5 + $0x8] sm:$0xff] %vm42_vm0, %v27822_v10  ;;  %46 = vst.msk [vmem:[#allocation5 + $0x18] sm:$0xff] %vm42_vm0, %v27822_v10  ;;  %v55_v13 = vsel %vm42_vm0, %v27822_v10, 0  ;;  %v183_v27 = vsub.f32 %v27848_v17, %v27861_v22  ;;  %v678_v37 = vsub.f32 %v27888_v33, %v27903_v35  ;;  %v685_v38 = vsub.f32 %v27895_v34, %v27910_v36 }
  0x17   :  { %48 = vst.msk [vmem:[#allocation5 + $0x28] sm:$0xff] %vm42_vm0, %v27822_v10  ;;  %50 = vst.msk [vmem:[#allocation5 + $0x38] sm:$0xff] %vm42_vm0, %v27822_v10  ;;  %v27839_v14 = vand.u32 4294901760, %v27820_v9  ;;  %v27841_v15 = vsub.f32 %v55_v13, %v55_v13  ;;  %v27878_v30 = vand.u32 4294901760, %v176_v26  ;;  %v27961_v46 = vsub.f32 %v27_v41, %v27946_v44  ;;  %p27769_p9 = pnand %p27768_p8, %p27762_p5 }
  0x18   :  { %v27880_v31 = vand.u32 4294901760, %v183_v27  ;;  %v27930_v40 = vand.u32 4294901760, %v678_v37  ;;  %v27937_v42 = vand.u32 4294901760, %v685_v38  ;;  %v1180_v49 = vsub.f32 %v27953_v45, %v27969_v47 }
  0x19   :  { %v127_v18 = vsub.f32 %v27820_v9, %v27839_v14  ;;  %v27854_v19 = vand.u32 4294901760, %v27841_v15  ;;  %25727 = vmatprep.subr.mxu1 %v27878_v30  ;;  %v27976_v48 = vand.u32 4294901760, %v27961_v46  ;;  %v28005_v55 = vand.u32 4294901760, %v30_v51 }
  0x1a   :  { %25728 = vmatpush3.msra.mxu1 %v27878_v30  ;;  %v27996_v52 = vand.u32 4294901760, %v1180_v49  ;;  %v28012_v56 = vand.u32 4294901760, %v29_v53 }
  0x1b   :  { %v27864_v23 = vand.u32 4294901760, %v127_v18  ;;  %v137_v24 = vsub.f32 %v27841_v15, %v27854_v19  ;;  %25729 = vmatprep.subr.mxu1 %v27880_v31  ;;  %v1187_v50 = vsub.f32 %v27961_v46, %v27976_v48  ;;  %v28019_v57 = vsub.f32 %v30_v51, %v28005_v55 }
  0x1c   :  { %25730 = vmatpush3.msra.mxu1 %v27880_v31  ;;  %v28027_v58 = vsub.f32 %v29_v53, %v28012_v56 }
  0x1d   :  { %25724 = vmatprep.mubr.f32.mxu0 %v27864_v23  ;;  %v27876_v29 = vand.u32 4294901760, %v137_v24  ;;  %25732 = vmatmul.mubr.msk.f32.vlgmr.msra.gmra.mxu1 %vm42_vm0, %v27822_v10  ;;  %v28003_v54 = vand.u32 4294901760, %v1187_v50  ;;  %v28035_v59 = vand.u32 4294901760, %v28019_v57 }
  0x1e   :  { %25741 = vmatprep.subr.mxu1 %v27824_v11  ;;  %25745 = vmatprep.mubr.f32.mxu1 %v27839_v14  ;;  %v28042_v60 = vand.u32 4294901760, %v28027_v58 }
  0x1f   :  { %25725 = vmatmul.mubr.f32.vlgmr.msra.gmra.mxu0 %v27876_v29  ;;  %25742 = vmatpush3.msra.mxu1 %v27824_v11  ;;  %v1682_v61 = vsub.f32 %v28019_v57, %v28035_v59 }
  0x20   :  { %25735 = vmatpush3.msra.mxu0 %v27845_v16  ;;  %25738 = vmatprep.mubr.f32.mxu0 %v27820_v9  ;;  %v1689_v62 = vsub.f32 %v28027_v58, %v28042_v60 }
  0x21   :  { %25736 = vmatprep.subr.mxu0 %v27848_v17  ;;  %25743 = vmatprep.subr.mxu1 %v27826_v12  ;;  %v28062_v63 = vand.u32 4294901760, %v1682_v61 }
  0x22   :  { %25737 = vmatpush3.msra.mxu0 %v27848_v17  ;;  %25744 = vmatpush3.msra.mxu1 %v27826_v12  ;;  %v28069_v0 = vand.u32 4294901760, %v1689_v62 }
  0x23   :  { %25739 = vmatmul.mubr.f32.vlgmr.msra.gmra.mxu0 %v27841_v15  ;;  %25748 = vmatprep.subr.mxu0 %v27858_v21 }
  0x24   :  { %25749 = vmatpush3.msra.mxu0 %v27858_v21  ;;  %25746 = vmatmul.mubr.f32.vlgmr.msra.gmra.mxu1 %v27854_v19 }
  0x25   :  { %25750 = vmatprep.subr.mxu0 %v27861_v22  ;;  %25752 = vmatprep.mubr.msk.f32.mxu0 %vm42_vm0, %v27806_v5 }
  0x26   :  { %25751 = vmatpush3.msra.mxu0 %v27861_v22  ;;  %25755 = vmatprep.subr.mxu1 %v27824_v11 }
  0x27   :  { %25753 = vmatmul.mubr.msk.f32.vlgmr.msra.gmra.mxu0 %vm42_vm0, %v27822_v10  ;;  %25756 = vmatpush3.msra.mxu1 %v27824_v11 }
  0x28   :  { %25762 = vmatprep.subr.mxu0 %v27873_v28  ;;  %25757 = vmatprep.subr.mxu1 %v27826_v12 }
  0x29   :  { %25763 = vmatpush3.msra.mxu0 %v27873_v28  ;;  %25758 = vmatpush3.msra.mxu1 %v27826_v12 }
  0x2a   :  { %25759 = vmatprep.mubr.msk.f32.mxu1 %vm42_vm0, %v27806_v5  ;;  %25764 = vmatprep.subr.mxu0 %v27882_v32 }
  0x2b   :  { %25760 = vmatmul.mubr.msk.f32.vlgmr.msra.gmra.mxu1 %vm42_vm0, %v27822_v10  ;;  %25765 = vmatpush3.msra.mxu0 %v27882_v32 }
  0x2c   :  { %25766 = vmatprep.mubr.f32.mxu0 %v27864_v23  ;;  %25769 = vmatprep.subr.mxu1 %v27930_v40 }
  0x2d   :  { %25767 = vmatmul.mubr.f32.vlgmr.msra.gmra.mxu0 %v27876_v29  ;;  %25770 = vmatpush3.msra.mxu1 %v27930_v40 }
  0x2e   :  { %25776 = vmatprep.subr.mxu0 %v27888_v33  ;;  %25771 = vmatprep.subr.mxu1 %v27937_v42 }
  0x2f   :  { %25777 = vmatpush3.msra.mxu0 %v27888_v33  ;;  %25772 = vmatpush3.msra.mxu1 %v27937_v42 }
  0x30   :  { %25773 = vmatprep.mubr.msk.f32.mxu1 %vm42_vm0, %v27806_v5  ;;  %25778 = vmatprep.subr.mxu0 %v27895_v34 }
  0x31   :  { %25774 = vmatmul.mubr.msk.f32.vlgmr.msra.gmra.mxu1 %vm42_vm0, %v27822_v10  ;;  %25779 = vmatpush3.msra.mxu0 %v27895_v34 }
  0x32   :  { %25780 = vmatprep.mubr.f32.mxu0 %v27820_v9  ;;  %25783 = vmatprep.subr.mxu1 %v27873_v28 }
  0x33   :  { %25781 = vmatmul.mubr.f32.vlgmr.msra.gmra.mxu0 %v27841_v15  ;;  %25784 = vmatpush3.msra.mxu1 %v27873_v28 }
  0x34   :  { %25790 = vmatprep.subr.mxu0 %v27903_v35  ;;  %25785 = vmatprep.subr.mxu1 %v27882_v32 }
  0x35   :  { %25791 = vmatpush3.msra.mxu0 %v27903_v35  ;;  %25786 = vmatpush3.msra.mxu1 %v27882_v32 }
  0x36   :  { %25787 = vmatprep.mubr.f32.mxu1 %v27839_v14  ;;  %25792 = vmatprep.subr.mxu0 %v27910_v36 }
  0x37   :  { %25788 = vmatmul.mubr.f32.vlgmr.msra.gmra.mxu1 %v27854_v19  ;;  %25793 = vmatpush3.msra.mxu0 %v27910_v36 }
  0x38   :  { %25794 = vmatprep.mubr.msk.f32.mxu0 %vm42_vm0, %v27806_v5  ;;  %25797 = vmatprep.subr.mxu1 %v27873_v28 }
  0x39   :  { %25795 = vmatmul.mubr.msk.f32.vlgmr.msra.gmra.mxu0 %vm42_vm0, %v27822_v10  ;;  %25798 = vmatpush3.msra.mxu1 %v27873_v28 }
  0x3a   :  { %25804 = vmatprep.subr.mxu0 %v27939_v43  ;;  %25799 = vmatprep.subr.mxu1 %v27882_v32 }
  0x3b   :  { %25805 = vmatpush3.msra.mxu0 %v27939_v43  ;;  %25800 = vmatpush3.msra.mxu1 %v27882_v32 }
  0x3c   :  { %25801 = vmatprep.mubr.msk.f32.mxu1 %vm42_vm0, %v27806_v5  ;;  %25806 = vmatprep.subr.mxu0 %v27946_v44 }
  0x3d   :  { %25802 = vmatmul.mubr.msk.f32.vlgmr.msra.gmra.mxu1 %vm42_vm0, %v27822_v10  ;;  %25807 = vmatpush3.msra.mxu0 %v27946_v44 }
  0x3e   :  { %25808 = vmatprep.mubr.f32.mxu0 %v27864_v23  ;;  %25811 = vmatprep.subr.mxu1 %v27996_v52 }
  0x3f   :  { %25809 = vmatmul.mubr.f32.vlgmr.msra.gmra.mxu0 %v27876_v29  ;;  %25812 = vmatpush3.msra.mxu1 %v27996_v52 }
  0x40   :  { %25818 = vmatprep.subr.mxu0 %v27953_v45  ;;  %25813 = vmatprep.subr.mxu1 %v28003_v54 }
  0x41   :  { %25819 = vmatpush3.msra.mxu0 %v27953_v45  ;;  %25814 = vmatpush3.msra.mxu1 %v28003_v54 }
  0x42   :  { %25815 = vmatprep.mubr.msk.f32.mxu1 %vm42_vm0, %v27806_v5  ;;  %25820 = vmatprep.subr.mxu0 %v27961_v46 }
  0x43   :  { %25816 = vmatmul.mubr.msk.f32.vlgmr.msra.gmra.mxu1 %vm42_vm0, %v27822_v10  ;;  %25821 = vmatpush3.msra.mxu0 %v27961_v46 }
  0x44   :  { %25822 = vmatprep.mubr.f32.mxu0 %v27820_v9  ;;  %25825 = vmatprep.subr.mxu1 %v27939_v43 }
  0x45   :  { %25823 = vmatmul.mubr.f32.vlgmr.msra.gmra.mxu0 %v27841_v15  ;;  %25826 = vmatpush3.msra.mxu1 %v27939_v43 }
  0x46   :  { %25832 = vmatprep.subr.mxu0 %v27969_v47  ;;  %25827 = vmatprep.subr.mxu1 %v27946_v44 }
  0x47   :  { %25833 = vmatpush3.msra.mxu0 %v27969_v47  ;;  %25828 = vmatpush3.msra.mxu1 %v27946_v44 }
  0x48   :  { %25829 = vmatprep.mubr.f32.mxu1 %v27839_v14  ;;  %25834 = vmatprep.subr.mxu0 %v27976_v48 }
  0x49   :  { %25830 = vmatmul.mubr.f32.vlgmr.msra.gmra.mxu1 %v27854_v19  ;;  %25835 = vmatpush3.msra.mxu0 %v27976_v48 }
  0x4a   :  { %25836 = vmatprep.mubr.msk.f32.mxu0 %vm42_vm0, %v27806_v5  ;;  %25839 = vmatprep.subr.mxu1 %v27939_v43 }
  0x4b   :  { %25837 = vmatmul.mubr.msk.f32.vlgmr.msra.gmra.mxu0 %vm42_vm0, %v27822_v10  ;;  %25840 = vmatpush3.msra.mxu1 %v27939_v43 }
  0x4c   :  { %25846 = vmatprep.subr.mxu0 %v28005_v55  ;;  %25841 = vmatprep.subr.mxu1 %v27946_v44 }
  0x4d   :  { %25847 = vmatpush3.msra.mxu0 %v28005_v55  ;;  %25842 = vmatpush3.msra.mxu1 %v27946_v44 }
  0x4e   :  { %25843 = vmatprep.mubr.msk.f32.mxu1 %vm42_vm0, %v27806_v5  ;;  %25848 = vmatprep.subr.mxu0 %v28012_v56 }
  0x4f   :  { %25844 = vmatmul.mubr.msk.f32.vlgmr.msra.gmra.mxu1 %vm42_vm0, %v27822_v10  ;;  %25849 = vmatpush3.msra.mxu0 %v28012_v56 }
  0x50   :  { %25850 = vmatprep.mubr.f32.mxu0 %v27864_v23  ;;  %25853 = vmatprep.subr.mxu1 %v28062_v63 }
  0x51   :  { %25851 = vmatmul.mubr.f32.vlgmr.msra.gmra.mxu0 %v27876_v29  ;;  %25854 = vmatpush3.msra.mxu1 %v28062_v63 }
  0x52   :  { %25860 = vmatprep.subr.mxu0 %v28019_v57  ;;  %25855 = vmatprep.subr.mxu1 %v28069_v0 }
  0x53   :  { %25861 = vmatpush3.msra.mxu0 %v28019_v57  ;;  %25856 = vmatpush3.msra.mxu1 %v28069_v0 }
  0x54   :  { %25857 = vmatprep.mubr.msk.f32.mxu1 %vm42_vm0, %v27806_v5  ;;  %25862 = vmatprep.subr.mxu0 %v28027_v58 }
  0x55   :  { %25858 = vmatmul.mubr.msk.f32.vlgmr.msra.gmra.mxu1 %vm42_vm0, %v27822_v10  ;;  %25863 = vmatpush3.msra.mxu0 %v28027_v58 }
  0x56   :  { %25864 = vmatprep.mubr.f32.mxu0 %v27820_v9  ;;  %25867 = vmatprep.subr.mxu1 %v28005_v55 }
  0x57   :  { %25865 = vmatmul.mubr.f32.vlgmr.msra.gmra.mxu0 %v27841_v15  ;;  %25868 = vmatpush3.msra.mxu1 %v28005_v55 }
  0x58   :  { %25874 = vmatprep.subr.mxu0 %v28035_v59  ;;  %25869 = vmatprep.subr.mxu1 %v28012_v56 }
  0x59   :  { %25875 = vmatpush3.msra.mxu0 %v28035_v59  ;;  %25870 = vmatpush3.msra.mxu1 %v28012_v56 }
  0x5a   :  { %25871 = vmatprep.mubr.f32.mxu1 %v27839_v14  ;;  %25876 = vmatprep.subr.mxu0 %v28042_v60 }
  0x5b   :  { %25872 = vmatmul.mubr.f32.vlgmr.msra.gmra.mxu1 %v27854_v19  ;;  %25877 = vmatpush3.msra.mxu0 %v28042_v60 }
  0x5c   :  { %25878 = vmatprep.mubr.msk.f32.mxu0 %vm42_vm0, %v27806_v5  ;;  %25881 = vmatprep.subr.mxu1 %v28005_v55 }
  0x5d   :  { %25879 = vmatmul.mubr.msk.f32.vlgmr.msra.gmra.mxu0 %vm42_vm0, %v27822_v10  ;;  %25882 = vmatpush3.msra.mxu1 %v28005_v55 }
  0x5e   :  { %25883 = vmatprep.subr.mxu1 %v28012_v56  ;;  %25885 = vmatprep.mubr.msk.f32.mxu1 %vm42_vm0, %v27806_v5 }
  0x5f   :  { %25884 = vmatpush3.msra.mxu1 %v28012_v56  ;;  %25888 = vmatprep.subr.mxu0 %v27824_v11 }
  0x60   :  { %25886 = vmatmul.mubr.msk.f32.vlgmr.msra.gmra.mxu1 %vm42_vm0, %v27822_v10  ;;  %25895 = vmatprep.subr.mxu1 %v27878_v30 }
  0x61   :  { %25896 = vmatpush3.msra.mxu1 %v27878_v30  ;;  %25889 = vmatpush3.msra.mxu0 %v27824_v11 }
  0x62   :  { %25897 = vmatprep.subr.mxu1 %v27880_v31  ;;  %25890 = vmatprep.subr.mxu0 %v27826_v12 }
  0x63   :  { %25898 = vmatpush3.msra.mxu1 %v27880_v31  ;;  %25891 = vmatpush3.msra.mxu0 %v27826_v12 }
  0x64   :  { %25909 = vmatprep.subr.mxu1 %v27824_v11  ;;  %25902 = vmatprep.subr.mxu0 %v27845_v16 }
  0xdd   :  { %v25733_v3 = vpop.f32.mrf.mxu1 }
  0xdf   :  { %v25726_v1 = vpop.f32.mrf.mxu0  ;;  %v221_v6 = vpop.f32.mrf.mxu1 }
  0xe0   :  { %v228_v4 = vadd.f32 %v25733_v3, %v25726_v1 }
  0xe1   :  { %v130_v2 = vpop.f32.mrf.mxu0 }
  0xe2   :  { %v222_v8 = vadd.f32 %v221_v6, %v130_v2 }
  0xe3   :  { %v25740_v5 = vpop.f32.mrf.mxu0 }
  0xe4   :  { %v311_v7 = vadd.f32 %v25740_v5, %v228_v4  ;;  %v25747_v13 = vpop.f32.mrf.mxu1 }
  0xe5   :  { %v303_v9 = vpop.f32.mrf.mxu0 }
  0xe6   :  { %v304_v10 = vadd.f32 %v303_v9, %v222_v8  ;;  %v394_v14 = vadd.f32 %v25747_v13, %v311_v7  ;;  %v385_v18 = vpop.f32.mrf.mxu1 }
  0xe7   :  { %v25754_v15 = vpop.f32.mrf.mxu0 }
  0xe8   :  { %v477_v19 = vadd.f32 %v25754_v15, %v394_v14  ;;  %v386_v20 = vadd.f32 %v385_v18, %v304_v10 }
  0xe9   :  { %v470_v23 = vpop.f32.mrf.mxu0 }
  0xea   :  { %v471_v24 = vadd.f32 %v470_v23, %v386_v20 }
  0xeb   :  { %v25761_v25 = vpop.f32.mrf.mxu1 }
  0xec   :  { %v556_v26 = vadd.f32 %v25761_v25, %v477_v19 }
  0xed   :  { %v25768_v27 = vpop.f32.mrf.mxu0  ;;  %v549_v29 = vpop.f32.mrf.mxu1 }
  0xee   :  { %2067 = vst.msk [vmem:[#allocation5 + $0x48] sm:$0xff] %vm42_vm0, %v556_v26  ;;  %v2078_v37 = vsel %vm42_vm0, %v556_v26, 0  ;;  %v550_v38 = vadd.f32 %v549_v29, %v471_v24 }
  0xef   :  { %v28124_v39 = vand.u32 4294901760, %v2078_v37  ;;  %v632_v41 = vpop.f32.mrf.mxu0 }
  0xf0   :  { %2066 = vst.msk [vmem:[#allocation5 + $0x40] sm:$0xff] %vm42_vm0, %v550_v38  ;;  %v2075_v49 = vsel %vm42_vm0, %v550_v38, 0 }
  0xf1   :  { %v2158_v50 = vsub.f32 %v2078_v37, %v28124_v39  ;;  %v28129_v51 = vand.u32 4294901760, %v2075_v49  ;;  %v25775_v53 = vpop.f32.mrf.mxu1 }
  0xf2   :  { %v730_v61 = vadd.f32 %v25775_v53, %v25768_v27 }
  0xf3   :  { %v2148_v62 = vsub.f32 %v2075_v49, %v28129_v51  ;;  %v25782_v1 = vpop.f32.mrf.mxu0  ;;  %v723_v2 = vpop.f32.mrf.mxu1  ;;  %25899 = vmatprep.mubr.f32.mxu1 %v28129_v51  ;;  %v2159_v3 = vand.u32 4294901760, %v2158_v50 }
  0xf4   :  { %v813_v4 = vadd.f32 %v25782_v1, %v730_v61  ;;  %v724_v5 = vadd.f32 %v723_v2, %v632_v41  ;;  %25900 = vmatmul.mubr.f32.vlgmr.msra.gmra.mxu1 %v28124_v39 }
  0xf5   :  { %v805_v6 = vpop.f32.mrf.mxu0  ;;  %25910 = vmatpush3.msra.mxu1 %v27824_v11  ;;  %v2149_v7 = vand.u32 4294901760, %v2148_v62  ;;  %v2160_v9 = vsub.f32 %v2158_v50, %v2159_v3 }
  0xf6   :  { %v806_v8 = vadd.f32 %v805_v6, %v724_v5  ;;  %25911 = vmatprep.subr.mxu1 %v27826_v12 }
  0xf7   :  { %v25789_v10 = vpop.f32.mrf.mxu1  ;;  %25912 = vmatpush3.msra.mxu1 %v27826_v12  ;;  %25913 = vmatprep.mubr.f32.mxu1 %v2149_v7  ;;  %v2150_v13 = vsub.f32 %v2148_v62, %v2149_v7  ;;  %v2161_v24 = vand.u32 4294901760, %v2160_v9 }
  0xf8   :  { %v896_v14 = vadd.f32 %v25789_v10, %v813_v4  ;;  %25914 = vmatmul.mubr.f32.vlgmr.msra.gmra.mxu1 %v2159_v3  ;;  %25923 = vmatprep.subr.mxu1 %v27824_v11 }
  0xf9   :  { %v25796_v15 = vpop.f32.mrf.mxu0  ;;  %v887_v18 = vpop.f32.mrf.mxu1  ;;  %25924 = vmatpush3.msra.mxu1 %v27824_v11  ;;  %25927 = vmatprep.mubr.f32.mxu1 %v28129_v51  ;;  %v2151_v19 = vand.u32 4294901760, %v2150_v13 }
  0xfa   :  { %v979_v20 = vadd.f32 %v25796_v15, %v896_v14  ;;  %v888_v23 = vadd.f32 %v887_v18, %v806_v8  ;;  %25925 = vmatprep.subr.mxu1 %v27826_v12 }
  0xfb   :  { %v972_v25 = vpop.f32.mrf.mxu0  ;;  %25892 = vmatprep.mubr.f32.mxu0 %v2151_v19  ;;  %25926 = vmatpush3.msra.mxu1 %v27826_v12 }
  0xfc   :  { %v973_v26 = vadd.f32 %v972_v25, %v888_v23  ;;  %25893 = vmatmul.mubr.f32.vlgmr.msra.gmra.mxu0 %v2161_v24  ;;  %25928 = vmatmul.mubr.f32.vlgmr.msra.gmra.mxu1 %v28124_v39 }
  0xfd   :  { %v25803_v27 = vpop.f32.mrf.mxu1  ;;  %25937 = vmatprep.subr.mxu1 %v27930_v40  ;;  %25903 = vmatpush3.msra.mxu0 %v27845_v16 }
  0xfe   :  { %v1058_v29 = vadd.f32 %v25803_v27, %v979_v20  ;;  %25906 = vmatprep.mubr.f32.mxu0 %v2148_v62  ;;  %25938 = vmatpush3.msra.mxu1 %v27930_v40 }
  0xff   :  { %v25810_v37 = vpop.f32.mrf.mxu0  ;;  %v1051_v38 = vpop.f32.mrf.mxu1  ;;  %25904 = vmatprep.subr.mxu0 %v27848_v17  ;;  %25939 = vmatprep.subr.mxu1 %v27937_v42 }
 0x100   :  { %2069 = vst.msk [vmem:[#allocation5 + $0x58] sm:$0xff] %vm42_vm0, %v1058_v29  ;;  %v2586_v41 = vsel %vm42_vm0, %v1058_v29, 0  ;;  %v1052_v49 = vadd.f32 %v1051_v38, %v973_v26  ;;  %25905 = vmatpush3.msra.mxu0 %v27848_v17  ;;  %25940 = vmatpush3.msra.mxu1 %v27937_v42 }
 0x101   :  { %v28152_v53 = vand.u32 4294901760, %v2586_v41  ;;  %v1134_v61 = vpop.f32.mrf.mxu0  ;;  %25907 = vmatmul.mubr.f32.vlgmr.msra.gmra.mxu0 %v2158_v50  ;;  %25916 = vmatprep.subr.mxu0 %v27858_v21 }
 0x102   :  { %2068 = vst.msk [vmem:[#allocation5 + $0x50] sm:$0xff] %vm42_vm0, %v1052_v49  ;;  %v2583_v62 = vsel %vm42_vm0, %v1052_v49, 0  ;;  %25951 = vmatprep.subr.mxu1 %v27873_v28  ;;  %25917 = vmatpush3.msra.mxu0 %v27858_v21 }
 0x103   :  { %v28160_v1 = vsub.f32 %v2586_v41, %v28152_v53  ;;  %v28162_v2 = vand.u32 4294901760, %v2583_v62  ;;  %v25817_v3 = vpop.f32.mrf.mxu1  ;;  %25920 = vmatprep.mubr.f32.mxu0 %v28129_v51  ;;  %25918 = vmatprep.subr.mxu0 %v27861_v22 }
 0x104   :  { %v1232_v50 = vadd.f32 %v25817_v3, %v25810_v37  ;;  %25919 = vmatpush3.msra.mxu0 %v27861_v22 }
 0x105   :  { %v2656_v4 = vsub.f32 %v2583_v62, %v28162_v2  ;;  %v25824_v5 = vpop.f32.mrf.mxu0  ;;  %v1225_v6 = vpop.f32.mrf.mxu1  ;;  %25941 = vmatprep.mubr.f32.mxu1 %v28162_v2  ;;  %25921 = vmatmul.mubr.f32.vlgmr.msra.gmra.mxu0 %v28124_v39  ;;  %v2667_v7 = vand.u32 4294901760, %v28160_v1 }
 0x106   :  { %v1315_v8 = vadd.f32 %v25824_v5, %v1232_v50  ;;  %v1226_v9 = vadd.f32 %v1225_v6, %v1134_v61  ;;  %25942 = vmatmul.mubr.f32.vlgmr.msra.gmra.mxu1 %v28152_v53  ;;  %25930 = vmatprep.subr.mxu0 %v27873_v28 }
 0x107   :  { %v1307_v51 = vpop.f32.mrf.mxu0  ;;  %25952 = vmatpush3.msra.mxu1 %v27873_v28  ;;  %v2657_v10 = vand.u32 4294901760, %v2656_v4  ;;  %25931 = vmatpush3.msra.mxu0 %v27873_v28  ;;  %v2668_v39 = vsub.f32 %v28160_v1, %v2667_v7 }
 0x108   :  { %v1308_v13 = vadd.f32 %v1307_v51, %v1226_v9  ;;  %25953 = vmatprep.subr.mxu1 %v27882_v32  ;;  %25932 = vmatprep.subr.mxu0 %v27882_v32 }
 0x109   :  { %v25831_v14 = vpop.f32.mrf.mxu1  ;;  %25954 = vmatpush3.msra.mxu1 %v27882_v32  ;;  %25955 = vmatprep.mubr.f32.mxu1 %v2657_v10  ;;  %v2658_v15 = vsub.f32 %v2656_v4, %v2657_v10  ;;  %v2669_v26 = vand.u32 4294901760, %v2668_v39 }
 0x10a   :  { %v1398_v18 = vadd.f32 %v25831_v14, %v1315_v8  ;;  %25956 = vmatmul.mubr.f32.vlgmr.msra.gmra.mxu1 %v2667_v7  ;;  %25965 = vmatprep.subr.mxu1 %v27873_v28 }
 0x10b   :  { %v25838_v19 = vpop.f32.mrf.mxu0  ;;  %v1389_v20 = vpop.f32.mrf.mxu1  ;;  %25966 = vmatpush3.msra.mxu1 %v27873_v28  ;;  %25969 = vmatprep.mubr.f32.mxu1 %v28162_v2  ;;  %v2659_v23 = vand.u32 4294901760, %v2658_v15 }
 0x10c   :  { %v1481_v24 = vadd.f32 %v25838_v19, %v1398_v18  ;;  %v1390_v25 = vadd.f32 %v1389_v20, %v1308_v13  ;;  %25967 = vmatprep.subr.mxu1 %v27882_v32  ;;  %25933 = vmatpush3.msra.mxu0 %v27882_v32 }
 0x10d   :  { %v1474_v27 = vpop.f32.mrf.mxu0  ;;  %25934 = vmatprep.mubr.f32.mxu0 %v2659_v23  ;;  %25968 = vmatpush3.msra.mxu1 %v27882_v32 }
 0x10e   :  { %v1475_v29 = vadd.f32 %v1474_v27, %v1390_v25  ;;  %25935 = vmatmul.mubr.f32.vlgmr.msra.gmra.mxu0 %v2669_v26  ;;  %25944 = vmatprep.subr.mxu0 %v27888_v33 }
 0x10f   :  { %v25845_v37 = vpop.f32.mrf.mxu1  ;;  %25970 = vmatmul.mubr.f32.vlgmr.msra.gmra.mxu1 %v28152_v53  ;;  %25979 = vmatprep.subr.mxu1 %v27996_v52 }
 0x110   :  { %v1560_v38 = vadd.f32 %v25845_v37, %v1481_v24  ;;  %25945 = vmatpush3.msra.mxu0 %v27888_v33  ;;  %25948 = vmatprep.mubr.f32.mxu0 %v2656_v4 }
 0x111   :  { %v25852_v41 = vpop.f32.mrf.mxu0  ;;  %v1553_v49 = vpop.f32.mrf.mxu1  ;;  %25980 = vmatpush3.msra.mxu1 %v27996_v52  ;;  %25946 = vmatprep.subr.mxu0 %v27895_v34 }
 0x112   :  { %2071 = vst.msk [vmem:[#allocation5 + $0x68] sm:$0xff] %vm42_vm0, %v1560_v38  ;;  %v3094_v61 = vsel %vm42_vm0, %v1560_v38, 0  ;;  %v1554_v62 = vadd.f32 %v1553_v49, %v1475_v29  ;;  %25981 = vmatprep.subr.mxu1 %v28003_v54  ;;  %25947 = vmatpush3.msra.mxu0 %v27895_v34 }
 0x113   :  { %v28195_v3 = vand.u32 4294901760, %v3094_v61  ;;  %v1636_v50 = vpop.f32.mrf.mxu0  ;;  %25982 = vmatpush3.msra.mxu1 %v28003_v54  ;;  %25949 = vmatmul.mubr.f32.vlgmr.msra.gmra.mxu0 %v28160_v1 }
 0x114   :  { %2070 = vst.msk [vmem:[#allocation5 + $0x60] sm:$0xff] %vm42_vm0, %v1554_v62  ;;  %v3091_v4 = vsel %vm42_vm0, %v1554_v62, 0  ;;  %25958 = vmatprep.subr.mxu0 %v27903_v35  ;;  %25993 = vmatprep.subr.mxu1 %v27939_v43 }
 0x115   :  { %v28204_v5 = vsub.f32 %v3094_v61, %v28195_v3  ;;  %v28206_v6 = vand.u32 4294901760, %v3091_v4  ;;  %v25859_v7 = vpop.f32.mrf.mxu1  ;;  %25959 = vmatpush3.msra.mxu0 %v27903_v35  ;;  %25962 = vmatprep.mubr.f32.mxu0 %v28162_v2 }
 0x116   :  { %v1734_v8 = vadd.f32 %v25859_v7, %v25852_v41  ;;  %25960 = vmatprep.subr.mxu0 %v27910_v36 }
 0x117   :  { %v3164_v1 = vsub.f32 %v3091_v4, %v28206_v6  ;;  %v25866_v9 = vpop.f32.mrf.mxu0  ;;  %v1727_v51 = vpop.f32.mrf.mxu1  ;;  %25983 = vmatprep.mubr.f32.mxu1 %v28206_v6  ;;  %25961 = vmatpush3.msra.mxu0 %v27910_v36  ;;  %v3175_v10 = vand.u32 4294901760, %v28204_v5 }
 0x118   :  { %v1817_v13 = vadd.f32 %v25866_v9, %v1734_v8  ;;  %v1728_v39 = vadd.f32 %v1727_v51, %v1636_v50  ;;  %25984 = vmatmul.mubr.f32.vlgmr.msra.gmra.mxu1 %v28195_v3  ;;  %25963 = vmatmul.mubr.f32.vlgmr.msra.gmra.mxu0 %v28152_v53 }
 0x119   :  { %v1809_v2 = vpop.f32.mrf.mxu0  ;;  %25994 = vmatpush3.msra.mxu1 %v27939_v43  ;;  %v3165_v14 = vand.u32 4294901760, %v3164_v1  ;;  %25972 = vmatprep.subr.mxu0 %v27939_v43  ;;  %v3176_v18 = vsub.f32 %v28204_v5, %v3175_v10 }
 0x11a   :  { %v1810_v15 = vadd.f32 %v1809_v2, %v1728_v39  ;;  %25995 = vmatprep.subr.mxu1 %v27946_v44  ;;  %25973 = vmatpush3.msra.mxu0 %v27939_v43 }
 0x11b   :  { %v25873_v19 = vpop.f32.mrf.mxu1  ;;  %25996 = vmatpush3.msra.mxu1 %v27946_v44  ;;  %25997 = vmatprep.mubr.f32.mxu1 %v3165_v14  ;;  %v3166_v20 = vsub.f32 %v3164_v1, %v3165_v14  ;;  %v3177_v29 = vand.u32 4294901760, %v3176_v18 }
 0x11c   :  { %v1900_v23 = vadd.f32 %v25873_v19, %v1817_v13  ;;  %25998 = vmatmul.mubr.f32.vlgmr.msra.gmra.mxu1 %v3175_v10  ;;  %26007 = vmatprep.subr.mxu1 %v27939_v43 }
 0x11d   :  { %v25880_v53 = vpop.f32.mrf.mxu0  ;;  %v1891_v24 = vpop.f32.mrf.mxu1  ;;  %26008 = vmatpush3.msra.mxu1 %v27939_v43  ;;  %26011 = vmatprep.mubr.f32.mxu1 %v28206_v6  ;;  %v3167_v25 = vand.u32 4294901760, %v3166_v20 }
 0x11e   :  { %v1983_v26 = vadd.f32 %v25880_v53, %v1900_v23  ;;  %v1892_v27 = vadd.f32 %v1891_v24, %v1810_v15  ;;  %25974 = vmatprep.subr.mxu0 %v27946_v44  ;;  %26009 = vmatprep.subr.mxu1 %v27946_v44 }
 0x11f   :  { %v1976_v37 = vpop.f32.mrf.mxu0  ;;  %25975 = vmatpush3.msra.mxu0 %v27946_v44  ;;  %25976 = vmatprep.mubr.f32.mxu0 %v3167_v25 }
 0x120   :  { %v1977_v38 = vadd.f32 %v1976_v37, %v1892_v27  ;;  %v25887_v41 = vpop.f32.mrf.mxu1  ;;  %26010 = vmatpush3.msra.mxu1 %v27946_v44  ;;  %25977 = vmatmul.mubr.f32.vlgmr.msra.gmra.mxu0 %v3177_v29 }
 0x121   :  { %v2062_v49 = vadd.f32 %v25887_v41, %v1983_v26  ;;  %25986 = vmatprep.subr.mxu0 %v27953_v45  ;;  %26012 = vmatmul.mubr.f32.vlgmr.msra.gmra.mxu1 %v28195_v3 }
 0x122   :  { %v2055_v61 = vpop.f32.mrf.mxu1  ;;  %26021 = vmatprep.subr.mxu1 %v28062_v63  ;;  %25987 = vmatpush3.msra.mxu0 %v27953_v45 }
 0x123   :  { %2073 = vst.msk [vmem:[#allocation5 + $0x78] sm:$0xff] %vm42_vm0, %v2062_v49  ;;  %v3602_v62 = vsel %vm42_vm0, %v2062_v49, 0  ;;  %v2056_v50 = vadd.f32 %v2055_v61, %v1977_v38  ;;  %25990 = vmatprep.mubr.f32.mxu0 %v3164_v1  ;;  %26022 = vmatpush3.msra.mxu1 %v28062_v63 }
 0x124   :  { %v3681_v4 = vand.u32 4294901760, %v3602_v62  ;;  %25988 = vmatprep.subr.mxu0 %v27961_v46  ;;  %26023 = vmatprep.subr.mxu1 %v28069_v0 }
 0x125   :  { %2072 = vst.msk [vmem:[#allocation5 + $0x70] sm:$0xff] %vm42_vm0, %v2056_v50  ;;  %v3599_v7 = vsel %vm42_vm0, %v2056_v50, 0  ;;  %25989 = vmatpush3.msra.mxu0 %v27961_v46  ;;  %26024 = vmatpush3.msra.mxu1 %v28069_v0 }
 0x126   :  { %v3682_v8 = vsub.f32 %v3602_v62, %v3681_v4  ;;  %v3671_v9 = vand.u32 4294901760, %v3599_v7  ;;  %25991 = vmatmul.mubr.f32.vlgmr.msra.gmra.mxu0 %v28204_v5  ;;  %26000 = vmatprep.subr.mxu0 %v27969_v47 }
 0x127   :  { %26035 = vmatprep.subr.mxu1 %v28005_v55  ;;  %26001 = vmatpush3.msra.mxu0 %v27969_v47 }
 0x128   :  { %v3672_v1 = vsub.f32 %v3599_v7, %v3671_v9  ;;  %26025 = vmatprep.mubr.f32.mxu1 %v3671_v9  ;;  %26004 = vmatprep.mubr.f32.mxu0 %v28206_v6  ;;  %v3683_v51 = vand.u32 4294901760, %v3682_v8 }
 0x129   :  { %26026 = vmatmul.mubr.f32.vlgmr.msra.gmra.mxu1 %v3681_v4  ;;  %26002 = vmatprep.subr.mxu0 %v27976_v48 }
 0x12a   :  { %26036 = vmatpush3.msra.mxu1 %v28005_v55  ;;  %26003 = vmatpush3.msra.mxu0 %v27976_v48  ;;  %v3673_v10 = vand.u32 4294901760, %v3672_v1  ;;  %v3684_v13 = vsub.f32 %v3682_v8, %v3683_v51 }
 0x12b   :  { %26037 = vmatprep.subr.mxu1 %v28012_v56  ;;  %26005 = vmatmul.mubr.f32.vlgmr.msra.gmra.mxu0 %v28195_v3 }
 0x12c   :  { %26038 = vmatpush3.msra.mxu1 %v28012_v56  ;;  %26039 = vmatprep.mubr.f32.mxu1 %v3673_v10  ;;  %v3674_v5 = vsub.f32 %v3672_v1, %v3673_v10  ;;  %v3685_v3 = vand.u32 4294901760, %v3684_v13 }
 0x12d   :  { %26014 = vmatprep.subr.mxu0 %v28005_v55  ;;  %26040 = vmatmul.mubr.f32.vlgmr.msra.gmra.mxu1 %v3683_v51 }
 0x12e   :  { %26049 = vmatprep.subr.mxu1 %v28005_v55  ;;  %26015 = vmatpush3.msra.mxu0 %v28005_v55  ;;  %v3675_v6 = vand.u32 4294901760, %v3674_v5 }
 0x12f   :  { %26050 = vmatpush3.msra.mxu1 %v28005_v55  ;;  %26053 = vmatprep.mubr.f32.mxu1 %v3671_v9 }
 0x130   :  { %26016 = vmatprep.subr.mxu0 %v28012_v56  ;;  %26051 = vmatprep.subr.mxu1 %v28012_v56 }
 0x131   :  { %26017 = vmatpush3.msra.mxu0 %v28012_v56  ;;  %26018 = vmatprep.mubr.f32.mxu0 %v3675_v6 }
 0x132   :  { %26052 = vmatpush3.msra.mxu1 %v28012_v56  ;;  %26019 = vmatmul.mubr.f32.vlgmr.msra.gmra.mxu0 %v3685_v3 }
 0x133   :  { %26028 = vmatprep.subr.mxu0 %v28019_v57  ;;  %26054 = vmatmul.mubr.f32.vlgmr.msra.gmra.mxu1 %v3681_v4 }
 0x134   :  { %26029 = vmatpush3.msra.mxu0 %v28019_v57  ;;  %26032 = vmatprep.mubr.f32.mxu0 %v3672_v1 }
 0x135   :  { %26030 = vmatprep.subr.mxu0 %v28027_v58  ;;  %26063 = vmatprep.subr.mxu1 %v27878_v30 }
 0x136   :  { %26031 = vmatpush3.msra.mxu0 %v28027_v58  ;;  %26064 = vmatpush3.msra.mxu1 %v27878_v30 }
 0x137   :  { %26033 = vmatmul.mubr.f32.vlgmr.msra.gmra.mxu0 %v3682_v8  ;;  %26042 = vmatprep.subr.mxu0 %v28035_v59 }
 0x138   :  { %26043 = vmatpush3.msra.mxu0 %v28035_v59  ;;  %26046 = vmatprep.mubr.f32.mxu0 %v3671_v9 }
 0x139   :  { %26044 = vmatprep.subr.mxu0 %v28042_v60  ;;  %26065 = vmatprep.subr.mxu1 %v27880_v31 }
 0x13a   :  { %26045 = vmatpush3.msra.mxu0 %v28042_v60  ;;  %26066 = vmatpush3.msra.mxu1 %v27880_v31 }
 0x13b   :  { %26047 = vmatmul.mubr.f32.vlgmr.msra.gmra.mxu0 %v3681_v4  ;;  %26077 = vmatprep.subr.mxu1 %v27824_v11 }
 0x13c   :  { %26056 = vmatprep.subr.mxu0 %v27824_v11 }
 0x13d   :  { %26057 = vmatpush3.msra.mxu0 %v27824_v11 }
 0x13e   :  { %26058 = vmatprep.subr.mxu0 %v27826_v12 }
 0x13f   :  { %26059 = vmatpush3.msra.mxu0 %v27826_v12 }
 0x140   :  { %26070 = vmatprep.subr.mxu0 %v27845_v16 }
 0x1b4   :  { %v25901_v39 = vpop.f32.mrf.mxu1 }
 0x1b6   :  { %v2244_v2 = vpop.f32.mrf.mxu1 }
 0x1b8   :  { %v25915_v14 = vpop.f32.mrf.mxu1 }
 0x1ba   :  { %v2408_v15 = vpop.f32.mrf.mxu1 }
 0x1bc   :  { %v25894_v18 = vpop.f32.mrf.mxu0  ;;  %v25929_v19 = vpop.f32.mrf.mxu1 }
 0x1bd   :  { %v2251_v23 = vadd.f32 %v25901_v39, %v25894_v18 }
 0x1be   :  { %v2153_v20 = vpop.f32.mrf.mxu0  ;;  %v2572_v25 = vpop.f32.mrf.mxu1 }
 0x1bf   :  { %v2245_v24 = vadd.f32 %v2244_v2, %v2153_v20 }
 0x1c1   :  { %v25908_v53 = vpop.f32.mrf.mxu0 }
 0x1c2   :  { %v2334_v26 = vadd.f32 %v25908_v53, %v2251_v23 }
 0x1c3   :  { %v2326_v27 = vpop.f32.mrf.mxu0 }
 0x1c4   :  { %v2327_v29 = vadd.f32 %v2326_v27, %v2245_v24  ;;  %v2417_v37 = vadd.f32 %v25915_v14, %v2334_v26 }
 0x1c5   :  { %v25922_v38 = vpop.f32.mrf.mxu0 }
 0x1c6   :  { %v25943_v41 = vpop.f32.mrf.mxu1  ;;  %v2500_v49 = vadd.f32 %v25922_v38, %v2417_v37  ;;  %v2409_v61 = vadd.f32 %v2408_v15, %v2327_v29 }
 0x1c7   :  { %v2493_v62 = vpop.f32.mrf.mxu0 }
 0x1c8   :  { %v2752_v50 = vpop.f32.mrf.mxu1  ;;  %v2579_v4 = vadd.f32 %v25929_v19, %v2500_v49  ;;  %v2494_v7 = vadd.f32 %v2493_v62, %v2409_v61 }
 0x1ca   :  { %4108 = vst.msk [vmem:[#allocation5 + $0x88] sm:$0xff] %vm42_vm0, %v2579_v4  ;;  %v4119_v8 = vsel %vm42_vm0, %v2579_v4, 0  ;;  %v25957_v9 = vpop.f32.mrf.mxu1  ;;  %v2573_v1 = vadd.f32 %v2572_v25, %v2494_v7 }
 0x1cb   :  { %v28282_v51 = vand.u32 4294901760, %v4119_v8 }
 0x1cc   :  { %4107 = vst.msk [vmem:[#allocation5 + $0x80] sm:$0xff] %vm42_vm0, %v2573_v1  ;;  %v4116_v10 = vsel %vm42_vm0, %v2573_v1, 0  ;;  %v2916_v5 = vpop.f32.mrf.mxu1 }
 0x1cd   :  { %v4199_v13 = vsub.f32 %v4119_v8, %v28282_v51  ;;  %v4188_v6 = vand.u32 4294901760, %v4116_v10 }
 0x1ce   :  { %v25936_v3 = vpop.f32.mrf.mxu0 }
 0x1cf   :  { %v4189_v39 = vsub.f32 %v4116_v10, %v4188_v6  ;;  %26067 = vmatprep.mubr.f32.mxu1 %v4188_v6  ;;  %v4200_v2 = vand.u32 4294901760, %v4199_v13  ;;  %v25971_v14 = vpop.f32.mrf.mxu1  ;;  %v2759_v19 = vadd.f32 %v25943_v41, %v25936_v3 }
 0x1d0   :  { %v2661_v15 = vpop.f32.mrf.mxu0  ;;  %26068 = vmatmul.mubr.f32.vlgmr.msra.gmra.mxu1 %v28282_v51 }
 0x1d1   :  { %26078 = vmatpush3.msra.mxu1 %v27824_v11  ;;  %v4190_v18 = vand.u32 4294901760, %v4189_v39  ;;  %v4201_v20 = vsub.f32 %v4199_v13, %v4200_v2  ;;  %v2753_v24 = vadd.f32 %v2752_v50, %v2661_v15  ;;  %v3080_v25 = vpop.f32.mrf.mxu1 }
 0x1d2   :  { %26079 = vmatprep.subr.mxu1 %v27826_v12 }
 0x1d3   :  { %v25950_v23 = vpop.f32.mrf.mxu0  ;;  %26080 = vmatpush3.msra.mxu1 %v27826_v12  ;;  %26081 = vmatprep.mubr.f32.mxu1 %v4190_v18  ;;  %v4191_v53 = vsub.f32 %v4189_v39, %v4190_v18  ;;  %v4202_v41 = vand.u32 4294901760, %v4201_v20 }
 0x1d4   :  { %v2842_v26 = vadd.f32 %v25950_v23, %v2759_v19  ;;  %26082 = vmatmul.mubr.f32.vlgmr.msra.gmra.mxu1 %v4200_v2  ;;  %26091 = vmatprep.subr.mxu1 %v27824_v11 }
 0x1d5   :  { %v2834_v27 = vpop.f32.mrf.mxu0  ;;  %26092 = vmatpush3.msra.mxu1 %v27824_v11  ;;  %26095 = vmatprep.mubr.f32.mxu1 %v4188_v6  ;;  %v4192_v29 = vand.u32 4294901760, %v4191_v53 }
 0x1d6   :  { %v2835_v37 = vadd.f32 %v2834_v27, %v2753_v24  ;;  %v2925_v38 = vadd.f32 %v25957_v9, %v2842_v26  ;;  %26093 = vmatprep.subr.mxu1 %v27826_v12 }
 0x1d7   :  { %26060 = vmatprep.mubr.f32.mxu0 %v4192_v29  ;;  %26094 = vmatpush3.msra.mxu1 %v27826_v12 }
 0x1d8   :  { %v25985_v49 = vpop.f32.mrf.mxu1  ;;  %v25964_v61 = vpop.f32.mrf.mxu0  ;;  %v2917_v62 = vadd.f32 %v2916_v5, %v2835_v37  ;;  %26061 = vmatmul.mubr.f32.vlgmr.msra.gmra.mxu0 %v4202_v41  ;;  %26096 = vmatmul.mubr.f32.vlgmr.msra.gmra.mxu1 %v28282_v51 }
 0x1d9   :  { %v3008_v50 = vadd.f32 %v25964_v61, %v2925_v38  ;;  %26105 = vmatprep.subr.mxu1 %v27930_v40  ;;  %26071 = vmatpush3.msra.mxu0 %v27845_v16 }
 0x1da   :  { %v3260_v4 = vpop.f32.mrf.mxu1  ;;  %v3001_v7 = vpop.f32.mrf.mxu0  ;;  %26074 = vmatprep.mubr.f32.mxu0 %v4189_v39  ;;  %26106 = vmatpush3.msra.mxu1 %v27930_v40 }
 0x1db   :  { %v3087_v8 = vadd.f32 %v25971_v14, %v3008_v50  ;;  %v3002_v9 = vadd.f32 %v3001_v7, %v2917_v62  ;;  %26072 = vmatprep.subr.mxu0 %v27848_v17  ;;  %26107 = vmatprep.subr.mxu1 %v27937_v42 }
 0x1dc   :  { %v25999_v1 = vpop.f32.mrf.mxu1  ;;  %26073 = vmatpush3.msra.mxu0 %v27848_v17  ;;  %26108 = vmatpush3.msra.mxu1 %v27937_v42 }
 0x1dd   :  { %4110 = vst.msk [vmem:[#allocation5 + $0x98] sm:$0xff] %vm42_vm0, %v3087_v8  ;;  %v4627_v10 = vsel %vm42_vm0, %v3087_v8, 0  ;;  %v3081_v5 = vadd.f32 %v3080_v25, %v3002_v9  ;;  %26075 = vmatmul.mubr.f32.vlgmr.msra.gmra.mxu0 %v4199_v13  ;;  %26084 = vmatprep.subr.mxu0 %v27858_v21 }
 0x1de   :  { %v28306_v3 = vand.u32 4294901760, %v4627_v10  ;;  %26119 = vmatprep.subr.mxu1 %v27873_v28  ;;  %26085 = vmatpush3.msra.mxu0 %v27858_v21  ;;  %v3424_v2 = vpop.f32.mrf.mxu1 }
 0x1df   :  { %4109 = vst.msk [vmem:[#allocation5 + $0x90] sm:$0xff] %vm42_vm0, %v3081_v5  ;;  %v4624_v39 = vsel %vm42_vm0, %v3081_v5, 0  ;;  %26088 = vmatprep.mubr.f32.mxu0 %v4188_v6  ;;  %26086 = vmatprep.subr.mxu0 %v27861_v22 }
 0x1e0   :  { %v4707_v14 = vsub.f32 %v4627_v10, %v28306_v3  ;;  %v28314_v15 = vand.u32 4294901760, %v4624_v39  ;;  %v25978_v13 = vpop.f32.mrf.mxu0  ;;  %26087 = vmatpush3.msra.mxu0 %v27861_v22 }
 0x1e1   :  { %26089 = vmatmul.mubr.f32.vlgmr.msra.gmra.mxu0 %v28282_v51  ;;  %26098 = vmatprep.subr.mxu0 %v27873_v28  ;;  %v26013_v6 = vpop.f32.mrf.mxu1  ;;  %v3267_v51 = vadd.f32 %v25985_v49, %v25978_v13 }
 0x1e2   :  { %v4697_v18 = vsub.f32 %v4624_v39, %v28314_v15  ;;  %v3169_v19 = vpop.f32.mrf.mxu0  ;;  %26109 = vmatprep.mubr.f32.mxu1 %v28314_v15  ;;  %v4708_v20 = vand.u32 4294901760, %v4707_v14  ;;  %26099 = vmatpush3.msra.mxu0 %v27873_v28 }
 0x1e3   :  { %26110 = vmatmul.mubr.f32.vlgmr.msra.gmra.mxu1 %v28306_v3  ;;  %26100 = vmatprep.subr.mxu0 %v27882_v32  ;;  %v3261_v26 = vadd.f32 %v3260_v4, %v3169_v19  ;;  %v3588_v27 = vpop.f32.mrf.mxu1 }
 0x1e4   :  { %26120 = vmatpush3.msra.mxu1 %v27873_v28  ;;  %v4698_v23 = vand.u32 4294901760, %v4697_v18  ;;  %26101 = vmatpush3.msra.mxu0 %v27882_v32  ;;  %v4709_v53 = vsub.f32 %v4707_v14, %v4708_v20 }
 0x1e5   :  { %26121 = vmatprep.subr.mxu1 %v27882_v32  ;;  %26112 = vmatprep.subr.mxu0 %v27888_v33 }
 0x1e6   :  { %v25992_v24 = vpop.f32.mrf.mxu0  ;;  %26122 = vmatpush3.msra.mxu1 %v27882_v32  ;;  %26123 = vmatprep.mubr.f32.mxu1 %v4698_v23  ;;  %v4699_v25 = vsub.f32 %v4697_v18, %v4698_v23  ;;  %v4710_v61 = vand.u32 4294901760, %v4709_v53 }
 0x1e7   :  { %v3350_v29 = vadd.f32 %v25992_v24, %v3267_v51  ;;  %26124 = vmatmul.mubr.f32.vlgmr.msra.gmra.mxu1 %v4708_v20  ;;  %26133 = vmatprep.subr.mxu1 %v27873_v28 }
 0x1e8   :  { %v3342_v37 = vpop.f32.mrf.mxu0  ;;  %26134 = vmatpush3.msra.mxu1 %v27873_v28  ;;  %26137 = vmatprep.mubr.f32.mxu1 %v28314_v15  ;;  %v4700_v38 = vand.u32 4294901760, %v4699_v25 }
 0x1e9   :  { %v3343_v41 = vadd.f32 %v3342_v37, %v3261_v26  ;;  %v3433_v49 = vadd.f32 %v25999_v1, %v3350_v29  ;;  %26135 = vmatprep.subr.mxu1 %v27882_v32  ;;  %v26027_v62 = vpop.f32.mrf.mxu1 }
 0x1ea   :  { %26102 = vmatprep.mubr.f32.mxu0 %v4700_v38  ;;  %26136 = vmatpush3.msra.mxu1 %v27882_v32 }
 0x1eb   :  { %v26006_v50 = vpop.f32.mrf.mxu0  ;;  %v3425_v4 = vadd.f32 %v3424_v2, %v3343_v41  ;;  %26103 = vmatmul.mubr.f32.vlgmr.msra.gmra.mxu0 %v4710_v61  ;;  %26138 = vmatmul.mubr.f32.vlgmr.msra.gmra.mxu1 %v28306_v3  ;;  %v3768_v10 = vpop.f32.mrf.mxu1 }
 0x1ec   :  { %v3516_v7 = vadd.f32 %v26006_v50, %v3433_v49  ;;  %26147 = vmatprep.subr.mxu1 %v27996_v52  ;;  %26113 = vmatpush3.msra.mxu0 %v27888_v33 }
 0x1ed   :  { %v3509_v8 = vpop.f32.mrf.mxu0  ;;  %26116 = vmatprep.mubr.f32.mxu0 %v4697_v18  ;;  %26148 = vmatpush3.msra.mxu1 %v27996_v52 }
 0x1ee   :  { %v3595_v9 = vadd.f32 %v26013_v6, %v3516_v7  ;;  %v3510_v1 = vadd.f32 %v3509_v8, %v3425_v4  ;;  %26114 = vmatprep.subr.mxu0 %v27895_v34  ;;  %26149 = vmatprep.subr.mxu1 %v28003_v54 }
 0x1ef   :  { %26115 = vmatpush3.msra.mxu0 %v27895_v34  ;;  %26150 = vmatpush3.msra.mxu1 %v28003_v54 }
 0x1f0   :  { %4112 = vst.msk [vmem:[#allocation5 + $0xa8] sm:$0xff] %vm42_vm0, %v3595_v9  ;;  %v5135_v5 = vsel %vm42_vm0, %v3595_v9, 0  ;;  %v3589_v39 = vadd.f32 %v3588_v27, %v3510_v1  ;;  %26117 = vmatmul.mubr.f32.vlgmr.msra.gmra.mxu0 %v4707_v14  ;;  %26126 = vmatprep.subr.mxu0 %v27903_v35  ;;  %v26041_v14 = vpop.f32.mrf.mxu1 }
 0x1f1   :  { %v28345_v2 = vand.u32 4294901760, %v5135_v5  ;;  %26161 = vmatprep.subr.mxu1 %v27939_v43  ;;  %26127 = vmatpush3.msra.mxu0 %v27903_v35 }
 0x1f2   :  { %4111 = vst.msk [vmem:[#allocation5 + $0xa0] sm:$0xff] %vm42_vm0, %v3589_v39  ;;  %v5132_v13 = vsel %vm42_vm0, %v3589_v39, 0  ;;  %v26020_v18 = vpop.f32.mrf.mxu0  ;;  %26130 = vmatprep.mubr.f32.mxu0 %v28314_v15  ;;  %26128 = vmatprep.subr.mxu0 %v27910_v36  ;;  %v3932_v53 = vpop.f32.mrf.mxu1 }
 0x1f3   :  { %v28354_v19 = vsub.f32 %v5135_v5, %v28345_v2  ;;  %v28356_v20 = vand.u32 4294901760, %v5132_v13  ;;  %26129 = vmatpush3.msra.mxu0 %v27910_v36  ;;  %v3775_v51 = vadd.f32 %v26027_v62, %v26020_v18 }
 0x1f4   :  { %v3677_v6 = vpop.f32.mrf.mxu0  ;;  %26131 = vmatmul.mubr.f32.vlgmr.msra.gmra.mxu0 %v28306_v3  ;;  %26140 = vmatprep.subr.mxu0 %v27939_v43  ;;  %v26055_v49 = vpop.f32.mrf.mxu1 }
 0x1f5   :  { %v5205_v23 = vsub.f32 %v5132_v13, %v28356_v20  ;;  %26151 = vmatprep.mubr.f32.mxu1 %v28356_v20  ;;  %v5216_v15 = vand.u32 4294901760, %v28354_v19  ;;  %26141 = vmatpush3.msra.mxu0 %v27939_v43  ;;  %v3769_v25 = vadd.f32 %v3768_v10, %v3677_v6 }
 0x1f6   :  { %26152 = vmatmul.mubr.f32.vlgmr.msra.gmra.mxu1 %v28345_v2  ;;  %26142 = vmatprep.subr.mxu0 %v27946_v44  ;;  %v4096_v10 = vpop.f32.mrf.mxu1 }
 0x1f7   :  { %v26034_v24 = vpop.f32.mrf.mxu0  ;;  %26162 = vmatpush3.msra.mxu1 %v27939_v43  ;;  %v5206_v3 = vand.u32 4294901760, %v5205_v23  ;;  %26143 = vmatpush3.msra.mxu0 %v27946_v44  ;;  %v5217_v27 = vsub.f32 %v28354_v19, %v5216_v15 }
 0x1f8   :  { %v3858_v26 = vadd.f32 %v26034_v24, %v3775_v51  ;;  %26163 = vmatprep.subr.mxu1 %v27946_v44  ;;  %26154 = vmatprep.subr.mxu0 %v27953_v45 }
 0x1f9   :  { %v3850_v29 = vpop.f32.mrf.mxu0  ;;  %26164 = vmatpush3.msra.mxu1 %v27946_v44  ;;  %26165 = vmatprep.mubr.f32.mxu1 %v5206_v3  ;;  %v5207_v37 = vsub.f32 %v5205_v23, %v5206_v3  ;;  %v5218_v7 = vand.u32 4294901760, %v5217_v27 }
 0x1fa   :  { %v3851_v38 = vadd.f32 %v3850_v29, %v3769_v25  ;;  %v3941_v41 = vadd.f32 %v26041_v14, %v3858_v26  ;;  %26166 = vmatmul.mubr.f32.vlgmr.msra.gmra.mxu1 %v5216_v15  ;;  %26175 = vmatprep.subr.mxu1 %v27939_v43 }
 0x1fb   :  { %v26048_v61 = vpop.f32.mrf.mxu0  ;;  %26176 = vmatpush3.msra.mxu1 %v27939_v43  ;;  %26179 = vmatprep.mubr.f32.mxu1 %v28356_v20  ;;  %v5208_v62 = vand.u32 4294901760, %v5207_v37 }
 0x1fc   :  { %v4024_v50 = vadd.f32 %v26048_v61, %v3941_v41  ;;  %v3933_v4 = vadd.f32 %v3932_v53, %v3851_v38  ;;  %26177 = vmatprep.subr.mxu1 %v27946_v44 }
 0x1fd   :  { %v4017_v8 = vpop.f32.mrf.mxu0  ;;  %26144 = vmatprep.mubr.f32.mxu0 %v5208_v62  ;;  %26178 = vmatpush3.msra.mxu1 %v27946_v44 }
 0x1fe   :  { %v4103_v9 = vadd.f32 %v26055_v49, %v4024_v50  ;;  %v4018_v1 = vadd.f32 %v4017_v8, %v3933_v4  ;;  %26145 = vmatmul.mubr.f32.vlgmr.msra.gmra.mxu0 %v5218_v7  ;;  %26180 = vmatmul.mubr.f32.vlgmr.msra.gmra.mxu1 %v28345_v2 }
 0x1ff   :  { %26189 = vmatprep.subr.mxu1 %v28062_v63  ;;  %26155 = vmatpush3.msra.mxu0 %v27953_v45 }
 0x200   :  { %4114 = vst.msk [vmem:[#allocation5 + $0xb8] sm:$0xff] %vm42_vm0, %v4103_v9  ;;  %v5643_v5 = vsel %vm42_vm0, %v4103_v9, 0  ;;  %v4097_v39 = vadd.f32 %v4096_v10, %v4018_v1  ;;  %26158 = vmatprep.mubr.f32.mxu0 %v5205_v23  ;;  %26190 = vmatpush3.msra.mxu1 %v28062_v63 }
 0x201   :  { %v5722_v13 = vand.u32 4294901760, %v5643_v5  ;;  %26156 = vmatprep.subr.mxu0 %v27961_v46  ;;  %26191 = vmatprep.subr.mxu1 %v28069_v0 }
 0x202   :  { %4113 = vst.msk [vmem:[#allocation5 + $0xb0] sm:$0xff] %vm42_vm0, %v4097_v39  ;;  %v5640_v18 = vsel %vm42_vm0, %v4097_v39, 0  ;;  %26157 = vmatpush3.msra.mxu0 %v27961_v46  ;;  %26192 = vmatpush3.msra.mxu1 %v28069_v0 }
 0x203   :  { %v5723_v14 = vsub.f32 %v5643_v5, %v5722_v13  ;;  %v5712_v6 = vand.u32 4294901760, %v5640_v18  ;;  %26159 = vmatmul.mubr.f32.vlgmr.msra.gmra.mxu0 %v28354_v19  ;;  %26168 = vmatprep.subr.mxu0 %v27969_v47 }
 0x204   :  { %26203 = vmatprep.subr.mxu1 %v28005_v55  ;;  %26169 = vmatpush3.msra.mxu0 %v27969_v47 }
 0x205   :  { %v5713_v23 = vsub.f32 %v5640_v18, %v5712_v6  ;;  %26193 = vmatprep.mubr.f32.mxu1 %v5712_v6  ;;  %26172 = vmatprep.mubr.f32.mxu0 %v28356_v20  ;;  %v5724_v15 = vand.u32 4294901760, %v5723_v14 }
 0x206   :  { %26194 = vmatmul.mubr.f32.vlgmr.msra.gmra.mxu1 %v5722_v13  ;;  %26170 = vmatprep.subr.mxu0 %v27976_v48 }
 0x207   :  { %26204 = vmatpush3.msra.mxu1 %v28005_v55  ;;  %26171 = vmatpush3.msra.mxu0 %v27976_v48  ;;  %v5714_v51 = vand.u32 4294901760, %v5713_v23  ;;  %v5725_v53 = vsub.f32 %v5723_v14, %v5724_v15 }
 0x208   :  { %26205 = vmatprep.subr.mxu1 %v28012_v56  ;;  %26173 = vmatmul.mubr.f32.vlgmr.msra.gmra.mxu0 %v28345_v2 }
 0x209   :  { %26206 = vmatpush3.msra.mxu1 %v28012_v56  ;;  %26207 = vmatprep.mubr.f32.mxu1 %v5714_v51  ;;  %v5715_v19 = vsub.f32 %v5713_v23, %v5714_v51  ;;  %v5726_v2 = vand.u32 4294901760, %v5725_v53 }
 0x20a   :  { %26182 = vmatprep.subr.mxu0 %v28005_v55  ;;  %26208 = vmatmul.mubr.f32.vlgmr.msra.gmra.mxu1 %v5724_v15 }
 0x20b   :  { %26217 = vmatprep.subr.mxu1 %v28005_v55  ;;  %26183 = vmatpush3.msra.mxu0 %v28005_v55  ;;  %v5716_v20 = vand.u32 4294901760, %v5715_v19 }
 0x20c   :  { %26218 = vmatpush3.msra.mxu1 %v28005_v55  ;;  %26221 = vmatprep.mubr.f32.mxu1 %v5712_v6 }
 0x20d   :  { %26184 = vmatprep.subr.mxu0 %v28012_v56  ;;  %26219 = vmatprep.subr.mxu1 %v28012_v56 }
 0x20e   :  { %26185 = vmatpush3.msra.mxu0 %v28012_v56  ;;  %26186 = vmatprep.mubr.f32.mxu0 %v5716_v20 }
 0x20f   :  { %26220 = vmatpush3.msra.mxu1 %v28012_v56  ;;  %26187 = vmatmul.mubr.f32.vlgmr.msra.gmra.mxu0 %v5726_v2 }
 0x210   :  { %26196 = vmatprep.subr.mxu0 %v28019_v57  ;;  %26222 = vmatmul.mubr.f32.vlgmr.msra.gmra.mxu1 %v5722_v13 }
 0x211   :  { %26197 = vmatpush3.msra.mxu0 %v28019_v57  ;;  %26200 = vmatprep.mubr.f32.mxu0 %v5713_v23 }
 0x212   :  { %26198 = vmatprep.subr.mxu0 %v28027_v58  ;;  %26231 = vmatprep.subr.mxu1 %v27878_v30 }
 0x213   :  { %26199 = vmatpush3.msra.mxu0 %v28027_v58  ;;  %26232 = vmatpush3.msra.mxu1 %v27878_v30 }
 0x214   :  { %26201 = vmatmul.mubr.f32.vlgmr.msra.gmra.mxu0 %v5723_v14  ;;  %26210 = vmatprep.subr.mxu0 %v28035_v59 }
 0x215   :  { %26211 = vmatpush3.msra.mxu0 %v28035_v59  ;;  %26214 = vmatprep.mubr.f32.mxu0 %v5712_v6 }
 0x216   :  { %26212 = vmatprep.subr.mxu0 %v28042_v60  ;;  %26233 = vmatprep.subr.mxu1 %v27880_v31 }
 0x217   :  { %26213 = vmatpush3.msra.mxu0 %v28042_v60  ;;  %26234 = vmatpush3.msra.mxu1 %v27880_v31 }
 0x218   :  { %26215 = vmatmul.mubr.f32.vlgmr.msra.gmra.mxu0 %v5722_v13  ;;  %26245 = vmatprep.subr.mxu1 %v27824_v11 }
 0x219   :  { %26224 = vmatprep.subr.mxu0 %v27824_v11 }
 0x21a   :  { %26225 = vmatpush3.msra.mxu0 %v27824_v11 }
 0x21b   :  { %26226 = vmatprep.subr.mxu0 %v27826_v12 }
 0x21c   :  { %26227 = vmatpush3.msra.mxu0 %v27826_v12 }
 0x21d   :  { %26238 = vmatprep.subr.mxu0 %v27845_v16 }
 0x290   :  { %v26069_v24 = vpop.f32.mrf.mxu1 }
 0x292   :  { %v4285_v3 = vpop.f32.mrf.mxu1 }
 0x294   :  { %v26083_v25 = vpop.f32.mrf.mxu1 }
 0x296   :  { %v4449_v26 = vpop.f32.mrf.mxu1 }
 0x298   :  { %v26062_v27 = vpop.f32.mrf.mxu0  ;;  %v26097_v37 = vpop.f32.mrf.mxu1 }
 0x299   :  { %v4292_v38 = vadd.f32 %v26069_v24, %v26062_v27 }
 0x29a   :  { %v4194_v29 = vpop.f32.mrf.mxu0  ;;  %v4613_v62 = vpop.f32.mrf.mxu1 }
 0x29b   :  { %v4286_v49 = vadd.f32 %v4285_v3, %v4194_v29 }
 0x29d   :  { %v26076_v41 = vpop.f32.mrf.mxu0 }
 0x29e   :  { %v4375_v61 = vadd.f32 %v26076_v41, %v4292_v38 }
 0x29f   :  { %v4367_v50 = vpop.f32.mrf.mxu0 }
 0x2a0   :  { %v4368_v4 = vadd.f32 %v4367_v50, %v4286_v49  ;;  %v4458_v7 = vadd.f32 %v26083_v25, %v4375_v61 }
 0x2a1   :  { %v26090_v8 = vpop.f32.mrf.mxu0 }
 0x2a2   :  { %v4541_v9 = vadd.f32 %v26090_v8, %v4458_v7  ;;  %v4450_v1 = vadd.f32 %v4449_v26, %v4368_v4 }
 0x2a3   :  { %v26111_v10 = vpop.f32.mrf.mxu1  ;;  %v4534_v5 = vpop.f32.mrf.mxu0 }
 0x2a4   :  { %v4620_v39 = vadd.f32 %v26097_v37, %v4541_v9  ;;  %v4535_v13 = vadd.f32 %v4534_v5, %v4450_v1 }
 0x2a5   :  { %v4793_v18 = vpop.f32.mrf.mxu1 }
 0x2a6   :  { %6149 = vst.msk [vmem:[#allocation5 + $0xc8] sm:$0xff] %vm42_vm0, %v4620_v39  ;;  %v6160_v14 = vsel %vm42_vm0, %v4620_v39, 0  ;;  %v4614_v6 = vadd.f32 %v4613_v62, %v4535_v13 }
 0x2a7   :  { %v28429_v23 = vand.u32 4294901760, %v6160_v14  ;;  %v26125_v15 = vpop.f32.mrf.mxu1 }
 0x2a8   :  { %6148 = vst.msk [vmem:[#allocation5 + $0xc0] sm:$0xff] %vm42_vm0, %v4614_v6  ;;  %v6157_v51 = vsel %vm42_vm0, %v4614_v6, 0 }
 0x2a9   :  { %v6240_v19 = vsub.f32 %v6160_v14, %v28429_v23  ;;  %v6229_v53 = vand.u32 4294901760, %v6157_v51  ;;  %v4957_v20 = vpop.f32.mrf.mxu1 }
 0x2ab   :  { %v6230_v2 = vsub.f32 %v6157_v51, %v6229_v53  ;;  %v26104_v24 = vpop.f32.mrf.mxu0  ;;  %26235 = vmatprep.mubr.f32.mxu1 %v6229_v53  ;;  %v6241_v3 = vand.u32 4294901760, %v6240_v19  ;;  %v26139_v27 = vpop.f32.mrf.mxu1 }
 0x2ac   :  { %26236 = vmatmul.mubr.f32.vlgmr.msra.gmra.mxu1 %v28429_v23  ;;  %v4800_v37 = vadd.f32 %v26111_v10, %v26104_v24 }
 0x2ad   :  { %v4702_v25 = vpop.f32.mrf.mxu0  ;;  %26246 = vmatpush3.msra.mxu1 %v27824_v11  ;;  %v6231_v26 = vand.u32 4294901760, %v6230_v2  ;;  %v6242_v29 = vsub.f32 %v6240_v19, %v6241_v3  ;;  %v5121_v50 = vpop.f32.mrf.mxu1 }
 0x2ae   :  { %26247 = vmatprep.subr.mxu1 %v27826_v12  ;;  %v4794_v49 = vadd.f32 %v4793_v18, %v4702_v25 }
 0x2af   :  { %26248 = vmatpush3.msra.mxu1 %v27826_v12  ;;  %26249 = vmatprep.mubr.f32.mxu1 %v6231_v26  ;;  %v6232_v38 = vsub.f32 %v6230_v2, %v6231_v26  ;;  %v6243_v7 = vand.u32 4294901760, %v6242_v29 }
 0x2b0   :  { %v26118_v41 = vpop.f32.mrf.mxu0  ;;  %26250 = vmatmul.mubr.f32.vlgmr.msra.gmra.mxu1 %v6241_v3  ;;  %26259 = vmatprep.subr.mxu1 %v27824_v11 }
 0x2b1   :  { %v4883_v61 = vadd.f32 %v26118_v41, %v4800_v37  ;;  %26260 = vmatpush3.msra.mxu1 %v27824_v11  ;;  %26263 = vmatprep.mubr.f32.mxu1 %v6229_v53  ;;  %v6233_v62 = vand.u32 4294901760, %v6232_v38 }
 0x2b2   :  { %v4875_v4 = vpop.f32.mrf.mxu0  ;;  %26261 = vmatprep.subr.mxu1 %v27826_v12 }
 0x2b3   :  { %v4876_v8 = vadd.f32 %v4875_v4, %v4794_v49  ;;  %v4966_v9 = vadd.f32 %v26125_v15, %v4883_v61  ;;  %26228 = vmatprep.mubr.f32.mxu0 %v6233_v62  ;;  %26262 = vmatpush3.msra.mxu1 %v27826_v12 }
 0x2b4   :  { %v26132_v1 = vpop.f32.mrf.mxu0  ;;  %26229 = vmatmul.mubr.f32.vlgmr.msra.gmra.mxu0 %v6243_v7  ;;  %26264 = vmatmul.mubr.f32.vlgmr.msra.gmra.mxu1 %v28429_v23 }
 0x2b5   :  { %v5049_v10 = vadd.f32 %v26132_v1, %v4966_v9  ;;  %v4958_v5 = vadd.f32 %v4957_v20, %v4876_v8  ;;  %26273 = vmatprep.subr.mxu1 %v27930_v40  ;;  %26239 = vmatpush3.msra.mxu0 %v27845_v16 }
 0x2b6   :  { %v26153_v39 = vpop.f32.mrf.mxu1  ;;  %v5042_v13 = vpop.f32.mrf.mxu0  ;;  %26242 = vmatprep.mubr.f32.mxu0 %v6230_v2  ;;  %26274 = vmatpush3.msra.mxu1 %v27930_v40 }
 0x2b7   :  { %v5128_v18 = vadd.f32 %v26139_v27, %v5049_v10  ;;  %v5043_v14 = vadd.f32 %v5042_v13, %v4958_v5  ;;  %26240 = vmatprep.subr.mxu0 %v27848_v17  ;;  %26275 = vmatprep.subr.mxu1 %v27937_v42 }
 0x2b8   :  { %v5301_v6 = vpop.f32.mrf.mxu1  ;;  %26241 = vmatpush3.msra.mxu0 %v27848_v17  ;;  %26276 = vmatpush3.msra.mxu1 %v27937_v42 }
 0x2b9   :  { %6151 = vst.msk [vmem:[#allocation5 + $0xd8] sm:$0xff] %vm42_vm0, %v5128_v18  ;;  %v6668_v15 = vsel %vm42_vm0, %v5128_v18, 0  ;;  %v5122_v51 = vadd.f32 %v5121_v50, %v5043_v14  ;;  %26243 = vmatmul.mubr.f32.vlgmr.msra.gmra.mxu0 %v6240_v19  ;;  %26252 = vmatprep.subr.mxu0 %v27858_v21 }
 0x2ba   :  { %v28453_v20 = vand.u32 4294901760, %v6668_v15  ;;  %v26167_v2 = vpop.f32.mrf.mxu1  ;;  %26287 = vmatprep.subr.mxu1 %v27873_v28  ;;  %26253 = vmatpush3.msra.mxu0 %v27858_v21 }
 0x2bb   :  { %6150 = vst.msk [vmem:[#allocation5 + $0xd0] sm:$0xff] %vm42_vm0, %v5122_v51  ;;  %v6665_v24 = vsel %vm42_vm0, %v5122_v51, 0  ;;  %26256 = vmatprep.mubr.f32.mxu0 %v6229_v53  ;;  %26254 = vmatprep.subr.mxu0 %v27861_v22 }
 0x2bc   :  { %v6748_v3 = vsub.f32 %v6668_v15, %v28453_v20  ;;  %v28461_v25 = vand.u32 4294901760, %v6665_v24  ;;  %v5465_v19 = vpop.f32.mrf.mxu1  ;;  %26255 = vmatpush3.msra.mxu0 %v27861_v22 }
 0x2bd   :  { %26257 = vmatmul.mubr.f32.vlgmr.msra.gmra.mxu0 %v28429_v23  ;;  %26266 = vmatprep.subr.mxu0 %v27873_v28 }
 0x2be   :  { %v6738_v26 = vsub.f32 %v6665_v24, %v28461_v25  ;;  %v26146_v27 = vpop.f32.mrf.mxu0  ;;  %26277 = vmatprep.mubr.f32.mxu1 %v28461_v25  ;;  %v6749_v29 = vand.u32 4294901760, %v6748_v3  ;;  %26267 = vmatpush3.msra.mxu0 %v27873_v28  ;;  %v26181_v53 = vpop.f32.mrf.mxu1 }
 0x2bf   :  { %26278 = vmatmul.mubr.f32.vlgmr.msra.gmra.mxu1 %v28453_v20  ;;  %26268 = vmatprep.subr.mxu0 %v27882_v32  ;;  %v5308_v41 = vadd.f32 %v26153_v39, %v26146_v27 }
 0x2c0   :  { %v5210_v37 = vpop.f32.mrf.mxu0  ;;  %26288 = vmatpush3.msra.mxu1 %v27873_v28  ;;  %v6739_v38 = vand.u32 4294901760, %v6738_v26  ;;  %26269 = vmatpush3.msra.mxu0 %v27882_v32  ;;  %v6750_v23 = vsub.f32 %v6748_v3, %v6749_v29  ;;  %v5629_v50 = vpop.f32.mrf.mxu1 }
 0x2c1   :  { %26289 = vmatprep.subr.mxu1 %v27882_v32  ;;  %26280 = vmatprep.subr.mxu0 %v27888_v33  ;;  %v5302_v62 = vadd.f32 %v5301_v6, %v5210_v37 }
 0x2c2   :  { %26290 = vmatpush3.msra.mxu1 %v27882_v32  ;;  %26291 = vmatprep.mubr.f32.mxu1 %v6739_v38  ;;  %v6740_v49 = vsub.f32 %v6738_v26, %v6739_v38  ;;  %v6751_v9 = vand.u32 4294901760, %v6750_v23 }
 0x2c3   :  { %v26160_v61 = vpop.f32.mrf.mxu0  ;;  %26292 = vmatmul.mubr.f32.vlgmr.msra.gmra.mxu1 %v6749_v29  ;;  %26301 = vmatprep.subr.mxu1 %v27873_v28 }
 0x2c4   :  { %v5391_v4 = vadd.f32 %v26160_v61, %v5308_v41  ;;  %26302 = vmatpush3.msra.mxu1 %v27873_v28  ;;  %26305 = vmatprep.mubr.f32.mxu1 %v28461_v25  ;;  %v6741_v7 = vand.u32 4294901760, %v6740_v49 }
 0x2c5   :  { %v5383_v8 = vpop.f32.mrf.mxu0  ;;  %26303 = vmatprep.subr.mxu1 %v27882_v32 }
 0x2c6   :  { %v5384_v1 = vadd.f32 %v5383_v8, %v5302_v62  ;;  %v5474_v10 = vadd.f32 %v26167_v2, %v5391_v4  ;;  %26270 = vmatprep.mubr.f32.mxu0 %v6741_v7  ;;  %26304 = vmatpush3.msra.mxu1 %v27882_v32  ;;  %v26195_v5 = vpop.f32.mrf.mxu1 }
 0x2c7   :  { %26271 = vmatmul.mubr.f32.vlgmr.msra.gmra.mxu0 %v6751_v9  ;;  %26306 = vmatmul.mubr.f32.vlgmr.msra.gmra.mxu1 %v28453_v20 }
 0x2c8   :  { %v26174_v39 = vpop.f32.mrf.mxu0  ;;  %v5466_v13 = vadd.f32 %v5465_v19, %v5384_v1  ;;  %26315 = vmatprep.subr.mxu1 %v27996_v52  ;;  %26281 = vmatpush3.msra.mxu0 %v27888_v33  ;;  %v5809_v51 = vpop.f32.mrf.mxu1 }
 0x2c9   :  { %v5557_v18 = vadd.f32 %v26174_v39, %v5474_v10  ;;  %26284 = vmatprep.mubr.f32.mxu0 %v6738_v26  ;;  %26316 = vmatpush3.msra.mxu1 %v27996_v52 }
 0x2ca   :  { %v5550_v14 = vpop.f32.mrf.mxu0  ;;  %26282 = vmatprep.subr.mxu0 %v27895_v34  ;;  %26317 = vmatprep.subr.mxu1 %v28003_v54  ;;  %v26209_v29 = vpop.f32.mrf.mxu1 }
 0x2cb   :  { %v5636_v6 = vadd.f32 %v26181_v53, %v5557_v18  ;;  %v5551_v15 = vadd.f32 %v5550_v14, %v5466_v13  ;;  %26283 = vmatpush3.msra.mxu0 %v27895_v34  ;;  %26318 = vmatpush3.msra.mxu1 %v28003_v54 }
 0x2cc   :  { %26285 = vmatmul.mubr.f32.vlgmr.msra.gmra.mxu0 %v6748_v3  ;;  %26294 = vmatprep.subr.mxu0 %v27903_v35  ;;  %v5973_v41 = vpop.f32.mrf.mxu1 }
 0x2cd   :  { %6153 = vst.msk [vmem:[#allocation5 + $0xe8] sm:$0xff] %vm42_vm0, %v5636_v6  ;;  %v7176_v2 = vsel %vm42_vm0, %v5636_v6, 0  ;;  %v5630_v24 = vadd.f32 %v5629_v50, %v5551_v15  ;;  %26329 = vmatprep.subr.mxu1 %v27939_v43  ;;  %26295 = vmatpush3.msra.mxu0 %v27903_v35 }
 0x2ce   :  { %v28494_v19 = vand.u32 4294901760, %v7176_v2  ;;  %26298 = vmatprep.mubr.f32.mxu0 %v28461_v25  ;;  %26296 = vmatprep.subr.mxu0 %v27910_v36 }
 0x2cf   :  { %6152 = vst.msk [vmem:[#allocation5 + $0xe0] sm:$0xff] %vm42_vm0, %v5630_v24  ;;  %v7173_v3 = vsel %vm42_vm0, %v5630_v24, 0  ;;  %v26188_v26 = vpop.f32.mrf.mxu0  ;;  %26297 = vmatpush3.msra.mxu0 %v27910_v36 }
 0x2d0   :  { %v28502_v27 = vsub.f32 %v7176_v2, %v28494_v19  ;;  %v28504_v53 = vand.u32 4294901760, %v7173_v3  ;;  %26299 = vmatmul.mubr.f32.vlgmr.msra.gmra.mxu0 %v28453_v20  ;;  %26308 = vmatprep.subr.mxu0 %v27939_v43  ;;  %v5816_v23 = vadd.f32 %v26195_v5, %v26188_v26  ;;  %v26223_v1 = vpop.f32.mrf.mxu1 }
 0x2d1   :  { %v5718_v25 = vpop.f32.mrf.mxu0  ;;  %26309 = vmatpush3.msra.mxu0 %v27939_v43 }
 0x2d2   :  { %v7246_v37 = vsub.f32 %v7173_v3, %v28504_v53  ;;  %26319 = vmatprep.mubr.f32.mxu1 %v28504_v53  ;;  %v7257_v38 = vand.u32 4294901760, %v28502_v27  ;;  %26310 = vmatprep.subr.mxu0 %v27946_v44  ;;  %v5810_v61 = vadd.f32 %v5809_v51, %v5718_v25  ;;  %v6137_v51 = vpop.f32.mrf.mxu1 }
 0x2d3   :  { %26320 = vmatmul.mubr.f32.vlgmr.msra.gmra.mxu1 %v28494_v19  ;;  %26311 = vmatpush3.msra.mxu0 %v27946_v44 }
 0x2d4   :  { %v26202_v20 = vpop.f32.mrf.mxu0  ;;  %26330 = vmatpush3.msra.mxu1 %v27939_v43  ;;  %v7247_v49 = vand.u32 4294901760, %v7246_v37  ;;  %26322 = vmatprep.subr.mxu0 %v27953_v45  ;;  %v7258_v50 = vsub.f32 %v28502_v27, %v7257_v38 }
 0x2d5   :  { %v5899_v62 = vadd.f32 %v26202_v20, %v5816_v23  ;;  %26331 = vmatprep.subr.mxu1 %v27946_v44 }
 0x2d6   :  { %v5891_v4 = vpop.f32.mrf.mxu0  ;;  %26332 = vmatpush3.msra.mxu1 %v27946_v44  ;;  %26333 = vmatprep.mubr.f32.mxu1 %v7247_v49  ;;  %v7248_v7 = vsub.f32 %v7246_v37, %v7247_v49  ;;  %v7259_v18 = vand.u32 4294901760, %v7258_v50 }
 0x2d7   :  { %v5892_v8 = vadd.f32 %v5891_v4, %v5810_v61  ;;  %v5982_v9 = vadd.f32 %v26209_v29, %v5899_v62  ;;  %26334 = vmatmul.mubr.f32.vlgmr.msra.gmra.mxu1 %v7257_v38  ;;  %26343 = vmatprep.subr.mxu1 %v27939_v43 }
 0x2d8   :  { %v26216_v10 = vpop.f32.mrf.mxu0  ;;  %26344 = vmatpush3.msra.mxu1 %v27939_v43  ;;  %26347 = vmatprep.mubr.f32.mxu1 %v28504_v53  ;;  %v7249_v5 = vand.u32 4294901760, %v7248_v7 }
 0x2d9   :  { %v6065_v39 = vadd.f32 %v26216_v10, %v5982_v9  ;;  %v5974_v13 = vadd.f32 %v5973_v41, %v5892_v8  ;;  %26345 = vmatprep.subr.mxu1 %v27946_v44 }
 0x2da   :  { %v6058_v14 = vpop.f32.mrf.mxu0  ;;  %26312 = vmatprep.mubr.f32.mxu0 %v7249_v5  ;;  %26346 = vmatpush3.msra.mxu1 %v27946_v44 }
 0x2db   :  { %v6144_v6 = vadd.f32 %v26223_v1, %v6065_v39  ;;  %v6059_v15 = vadd.f32 %v6058_v14, %v5974_v13  ;;  %26313 = vmatmul.mubr.f32.vlgmr.msra.gmra.mxu0 %v7259_v18  ;;  %26348 = vmatmul.mubr.f32.vlgmr.msra.gmra.mxu1 %v28494_v19 }
 0x2dc   :  { %26357 = vmatprep.subr.mxu1 %v28062_v63  ;;  %26323 = vmatpush3.msra.mxu0 %v27953_v45 }
 0x2dd   :  { %6155 = vst.msk [vmem:[#allocation5 + $0xf8] sm:$0xff] %vm42_vm0, %v6144_v6  ;;  %v7684_v2 = vsel %vm42_vm0, %v6144_v6, 0  ;;  %v6138_v24 = vadd.f32 %v6137_v51, %v6059_v15  ;;  %26326 = vmatprep.mubr.f32.mxu0 %v7246_v37  ;;  %26358 = vmatpush3.msra.mxu1 %v28062_v63 }
 0x2de   :  { %v7763_v3 = vand.u32 4294901760, %v7684_v2  ;;  %26324 = vmatprep.subr.mxu0 %v27961_v46  ;;  %26359 = vmatprep.subr.mxu1 %v28069_v0 }
 0x2df   :  { %6154 = vst.msk [vmem:[#allocation5 + $0xf0] sm:$0xff] %vm42_vm0, %v6138_v24  ;;  %v7681_v26 = vsel %vm42_vm0, %v6138_v24, 0  ;;  %26325 = vmatpush3.msra.mxu0 %v27961_v46  ;;  %26360 = vmatpush3.msra.mxu1 %v28069_v0 }
 0x2e0   :  { %v7764_v29 = vsub.f32 %v7684_v2, %v7763_v3  ;;  %v7753_v25 = vand.u32 4294901760, %v7681_v26  ;;  %26327 = vmatmul.mubr.f32.vlgmr.msra.gmra.mxu0 %v28502_v27  ;;  %26336 = vmatprep.subr.mxu0 %v27969_v47 }
 0x2e1   :  { %26371 = vmatprep.subr.mxu1 %v28005_v55  ;;  %26337 = vmatpush3.msra.mxu0 %v27969_v47 }
 0x2e2   :  { %v7754_v37 = vsub.f32 %v7681_v26, %v7753_v25  ;;  %26361 = vmatprep.mubr.f32.mxu1 %v7753_v25  ;;  %26340 = vmatprep.mubr.f32.mxu0 %v28504_v53  ;;  %v7765_v38 = vand.u32 4294901760, %v7764_v29 }
 0x2e3   :  { %26362 = vmatmul.mubr.f32.vlgmr.msra.gmra.mxu1 %v7763_v3  ;;  %26338 = vmatprep.subr.mxu0 %v27976_v48 }
 0x2e4   :  { %26372 = vmatpush3.msra.mxu1 %v28005_v55  ;;  %26339 = vmatpush3.msra.mxu0 %v27976_v48  ;;  %v7755_v23 = vand.u32 4294901760, %v7754_v37  ;;  %v7766_v41 = vsub.f32 %v7764_v29, %v7765_v38 }
 0x2e5   :  { %26373 = vmatprep.subr.mxu1 %v28012_v56  ;;  %26341 = vmatmul.mubr.f32.vlgmr.msra.gmra.mxu0 %v28494_v19 }
 0x2e6   :  { %26374 = vmatpush3.msra.mxu1 %v28012_v56  ;;  %26375 = vmatprep.mubr.f32.mxu1 %v7755_v23  ;;  %v7756_v27 = vsub.f32 %v7754_v37, %v7755_v23  ;;  %v7767_v19 = vand.u32 4294901760, %v7766_v41 }
 0x2e7   :  { %26350 = vmatprep.subr.mxu0 %v28005_v55  ;;  %26376 = vmatmul.mubr.f32.vlgmr.msra.gmra.mxu1 %v7765_v38 }
 0x2e8   :  { %26385 = vmatprep.subr.mxu1 %v28005_v55  ;;  %26351 = vmatpush3.msra.mxu0 %v28005_v55  ;;  %v7757_v53 = vand.u32 4294901760, %v7756_v27 }
 0x2e9   :  { %26386 = vmatpush3.msra.mxu1 %v28005_v55  ;;  %26389 = vmatprep.mubr.f32.mxu1 %v7753_v25 }
 0x2ea   :  { %26352 = vmatprep.subr.mxu0 %v28012_v56  ;;  %26387 = vmatprep.subr.mxu1 %v28012_v56 }
 0x2eb   :  { %26353 = vmatpush3.msra.mxu0 %v28012_v56  ;;  %26354 = vmatprep.mubr.f32.mxu0 %v7757_v53 }
 0x2ec   :  { %26388 = vmatpush3.msra.mxu1 %v28012_v56  ;;  %26355 = vmatmul.mubr.f32.vlgmr.msra.gmra.mxu0 %v7767_v19 }
 0x2ed   :  { %26364 = vmatprep.subr.mxu0 %v28019_v57  ;;  %26390 = vmatmul.mubr.f32.vlgmr.msra.gmra.mxu1 %v7763_v3 }
 0x2ee   :  { %26365 = vmatpush3.msra.mxu0 %v28019_v57  ;;  %26368 = vmatprep.mubr.f32.mxu0 %v7754_v37 }
 0x2ef   :  { %26366 = vmatprep.subr.mxu0 %v28027_v58  ;;  %26399 = vmatprep.subr.mxu1 %v27878_v30 }
 0x2f0   :  { %26367 = vmatpush3.msra.mxu0 %v28027_v58  ;;  %26400 = vmatpush3.msra.mxu1 %v27878_v30 }
 0x2f1   :  { %26369 = vmatmul.mubr.f32.vlgmr.msra.gmra.mxu0 %v7764_v29  ;;  %26378 = vmatprep.subr.mxu0 %v28035_v59 }
 0x2f2   :  { %26379 = vmatpush3.msra.mxu0 %v28035_v59  ;;  %26382 = vmatprep.mubr.f32.mxu0 %v7753_v25 }
 0x2f3   :  { %26380 = vmatprep.subr.mxu0 %v28042_v60  ;;  %26401 = vmatprep.subr.mxu1 %v27880_v31 }
 0x2f4   :  { %26381 = vmatpush3.msra.mxu0 %v28042_v60  ;;  %26402 = vmatpush3.msra.mxu1 %v27880_v31 }
 0x2f5   :  { %26383 = vmatmul.mubr.f32.vlgmr.msra.gmra.mxu0 %v7763_v3  ;;  %26413 = vmatprep.subr.mxu1 %v27824_v11 }
 0x2f6   :  { %26392 = vmatprep.subr.mxu0 %v27824_v11 }
 0x2f7   :  { %26393 = vmatpush3.msra.mxu0 %v27824_v11 }
 0x2f8   :  { %26394 = vmatprep.subr.mxu0 %v27826_v12 }
 0x2f9   :  { %26395 = vmatpush3.msra.mxu0 %v27826_v12 }
 0x2fa   :  { %26406 = vmatprep.subr.mxu0 %v27845_v16 }
 0x36c   :  { %v26237_v20 = vpop.f32.mrf.mxu1 }
 0x36e   :  { %v6326_v49 = vpop.f32.mrf.mxu1 }
 0x370   :  { %v26251_v61 = vpop.f32.mrf.mxu1 }
 0x372   :  { %v6490_v62 = vpop.f32.mrf.mxu1 }
 0x374   :  { %v26230_v50 = vpop.f32.mrf.mxu0  ;;  %v26265_v7 = vpop.f32.mrf.mxu1 }
 0x375   :  { %v6333_v8 = vadd.f32 %v26237_v20, %v26230_v50 }
 0x376   :  { %v6235_v4 = vpop.f32.mrf.mxu0  ;;  %v6654_v5 = vpop.f32.mrf.mxu1 }
 0x377   :  { %v6327_v1 = vadd.f32 %v6326_v49, %v6235_v4 }
 0x379   :  { %v26244_v9 = vpop.f32.mrf.mxu0 }
 0x37a   :  { %v6416_v10 = vadd.f32 %v26244_v9, %v6333_v8 }
 0x37b   :  { %v6408_v39 = vpop.f32.mrf.mxu0 }
 0x37c   :  { %v6409_v13 = vadd.f32 %v6408_v39, %v6327_v1  ;;  %v6499_v18 = vadd.f32 %v26251_v61, %v6416_v10 }
 0x37d   :  { %v26258_v14 = vpop.f32.mrf.mxu0 }
 0x37e   :  { %v6582_v6 = vadd.f32 %v26258_v14, %v6499_v18  ;;  %v6491_v15 = vadd.f32 %v6490_v62, %v6409_v13 }
 0x37f   :  { %v26279_v51 = vpop.f32.mrf.mxu1  ;;  %v6575_v2 = vpop.f32.mrf.mxu0 }
 0x380   :  { %v6661_v24 = vadd.f32 %v26265_v7, %v6582_v6  ;;  %v6576_v3 = vadd.f32 %v6575_v2, %v6491_v15 }
 0x381   :  { %v6834_v26 = vpop.f32.mrf.mxu1 }
 0x382   :  { %8190 = vst.msk [vmem:[#allocation5 + $0x108] sm:$0xff] %vm42_vm0, %v6661_v24  ;;  %v8201_v29 = vsel %vm42_vm0, %v6661_v24, 0  ;;  %v6655_v25 = vadd.f32 %v6654_v5, %v6576_v3 }
 0x383   :  { %v28576_v37 = vand.u32 4294901760, %v8201_v29  ;;  %v26293_v38 = vpop.f32.mrf.mxu1 }
 0x384   :  { %8189 = vst.msk [vmem:[#allocation5 + $0x100] sm:$0xff] %vm42_vm0, %v6655_v25  ;;  %v8198_v23 = vsel %vm42_vm0, %v6655_v25, 0 }
 0x385   :  { %v8281_v27 = vsub.f32 %v8201_v29, %v28576_v37  ;;  %v8270_v41 = vand.u32 4294901760, %v8198_v23  ;;  %v6998_v19 = vpop.f32.mrf.mxu1 }
 0x387   :  { %v8271_v53 = vsub.f32 %v8198_v23, %v8270_v41  ;;  %v26272_v20 = vpop.f32.mrf.mxu0  ;;  %26403 = vmatprep.mubr.f32.mxu1 %v8270_v41  ;;  %v8282_v49 = vand.u32 4294901760, %v8281_v27  ;;  %v26307_v7 = vpop.f32.mrf.mxu1 }
 0x388   :  { %26404 = vmatmul.mubr.f32.vlgmr.msra.gmra.mxu1 %v28576_v37  ;;  %v6841_v4 = vadd.f32 %v26279_v51, %v26272_v20 }
 0x389   :  { %v6743_v61 = vpop.f32.mrf.mxu0  ;;  %26414 = vmatpush3.msra.mxu1 %v27824_v11  ;;  %v8272_v62 = vand.u32 4294901760, %v8271_v53  ;;  %v8283_v50 = vsub.f32 %v8281_v27, %v8282_v49  ;;  %v7162_v18 = vpop.f32.mrf.mxu1 }
 0x38a   :  { %26415 = vmatprep.subr.mxu1 %v27826_v12  ;;  %v6835_v1 = vadd.f32 %v6834_v26, %v6743_v61 }
 0x38b   :  { %26416 = vmatpush3.msra.mxu1 %v27826_v12  ;;  %26417 = vmatprep.mubr.f32.mxu1 %v8272_v62  ;;  %v8273_v8 = vsub.f32 %v8271_v53, %v8272_v62  ;;  %v8284_v13 = vand.u32 4294901760, %v8283_v50 }
 0x38c   :  { %v26286_v9 = vpop.f32.mrf.mxu0  ;;  %26418 = vmatmul.mubr.f32.vlgmr.msra.gmra.mxu1 %v8282_v49  ;;  %26427 = vmatprep.subr.mxu1 %v27824_v11 }
 0x38d   :  { %v6924_v10 = vadd.f32 %v26286_v9, %v6841_v4  ;;  %26428 = vmatpush3.msra.mxu1 %v27824_v11  ;;  %26431 = vmatprep.mubr.f32.mxu1 %v8270_v41  ;;  %v8274_v5 = vand.u32 4294901760, %v8273_v8 }
 0x38e   :  { %v6916_v39 = vpop.f32.mrf.mxu0  ;;  %26429 = vmatprep.subr.mxu1 %v27826_v12 }
 0x38f   :  { %v6917_v14 = vadd.f32 %v6916_v39, %v6835_v1  ;;  %v7007_v6 = vadd.f32 %v26293_v38, %v6924_v10  ;;  %26396 = vmatprep.mubr.f32.mxu0 %v8274_v5  ;;  %26430 = vmatpush3.msra.mxu1 %v27826_v12 }
 0x390   :  { %v26300_v15 = vpop.f32.mrf.mxu0  ;;  %26397 = vmatmul.mubr.f32.vlgmr.msra.gmra.mxu0 %v8284_v13  ;;  %26432 = vmatmul.mubr.f32.vlgmr.msra.gmra.mxu1 %v28576_v37 }
 0x391   :  { %v7090_v51 = vadd.f32 %v26300_v15, %v7007_v6  ;;  %v6999_v2 = vadd.f32 %v6998_v19, %v6917_v14  ;;  %26441 = vmatprep.subr.mxu1 %v27930_v40  ;;  %26407 = vmatpush3.msra.mxu0 %v27845_v16 }
 0x392   :  { %v7083_v24 = vpop.f32.mrf.mxu0  ;;  %26410 = vmatprep.mubr.f32.mxu0 %v8271_v53  ;;  %26442 = vmatpush3.msra.mxu1 %v27930_v40 }
 0x393   :  { %v26321_v3 = vpop.f32.mrf.mxu1  ;;  %v7169_v26 = vadd.f32 %v26307_v7, %v7090_v51  ;;  %v7084_v29 = vadd.f32 %v7083_v24, %v6999_v2  ;;  %26408 = vmatprep.subr.mxu0 %v27848_v17  ;;  %26443 = vmatprep.subr.mxu1 %v27937_v42 }
 0x394   :  { %26409 = vmatpush3.msra.mxu0 %v27848_v17  ;;  %26444 = vmatpush3.msra.mxu1 %v27937_v42 }
 0x395   :  { %v7342_v25 = vpop.f32.mrf.mxu1  ;;  %8192 = vst.msk [vmem:[#allocation5 + $0x118] sm:$0xff] %vm42_vm0, %v7169_v26  ;;  %v8709_v38 = vsel %vm42_vm0, %v7169_v26, 0  ;;  %v7163_v23 = vadd.f32 %v7162_v18, %v7084_v29  ;;  %26411 = vmatmul.mubr.f32.vlgmr.msra.gmra.mxu0 %v8281_v27  ;;  %26420 = vmatprep.subr.mxu0 %v27858_v21 }
 0x396   :  { %v28600_v53 = vand.u32 4294901760, %v8709_v38  ;;  %26455 = vmatprep.subr.mxu1 %v27873_v28  ;;  %26421 = vmatpush3.msra.mxu0 %v27858_v21 }
 0x397   :  { %v26335_v19 = vpop.f32.mrf.mxu1  ;;  %8191 = vst.msk [vmem:[#allocation5 + $0x110] sm:$0xff] %vm42_vm0, %v7163_v23  ;;  %v8706_v20 = vsel %vm42_vm0, %v7163_v23, 0  ;;  %26424 = vmatprep.mubr.f32.mxu0 %v8270_v41  ;;  %26422 = vmatprep.subr.mxu0 %v27861_v22 }
 0x398   :  { %v8789_v49 = vsub.f32 %v8709_v38, %v28600_v53  ;;  %v28608_v61 = vand.u32 4294901760, %v8706_v20  ;;  %26423 = vmatpush3.msra.mxu0 %v27861_v22 }
 0x399   :  { %v7506_v27 = vpop.f32.mrf.mxu1  ;;  %26425 = vmatmul.mubr.f32.vlgmr.msra.gmra.mxu0 %v28576_v37  ;;  %26434 = vmatprep.subr.mxu0 %v27873_v28 }
 0x39a   :  { %v8779_v62 = vsub.f32 %v8706_v20, %v28608_v61  ;;  %26445 = vmatprep.mubr.f32.mxu1 %v28608_v61  ;;  %v8790_v50 = vand.u32 4294901760, %v8789_v49  ;;  %26435 = vmatpush3.msra.mxu0 %v27873_v28 }
 0x39b   :  { %v26314_v41 = vpop.f32.mrf.mxu0  ;;  %26446 = vmatmul.mubr.f32.vlgmr.msra.gmra.mxu1 %v28600_v53  ;;  %26436 = vmatprep.subr.mxu0 %v27882_v32  ;;  %v26349_v37 = vpop.f32.mrf.mxu1 }
 0x39c   :  { %26456 = vmatpush3.msra.mxu1 %v27873_v28  ;;  %v8780_v4 = vand.u32 4294901760, %v8779_v62  ;;  %26437 = vmatpush3.msra.mxu0 %v27882_v32  ;;  %v8791_v8 = vsub.f32 %v8789_v49, %v8790_v50  ;;  %v7349_v1 = vadd.f32 %v26321_v3, %v26314_v41 }
 0x39d   :  { %v7251_v7 = vpop.f32.mrf.mxu0  ;;  %26457 = vmatprep.subr.mxu1 %v27882_v32  ;;  %26448 = vmatprep.subr.mxu0 %v27888_v33  ;;  %v7670_v13 = vpop.f32.mrf.mxu1 }
 0x39e   :  { %26458 = vmatpush3.msra.mxu1 %v27882_v32  ;;  %26459 = vmatprep.mubr.f32.mxu1 %v8780_v4  ;;  %v8781_v9 = vsub.f32 %v8779_v62, %v8780_v4  ;;  %v7343_v39 = vadd.f32 %v7342_v25, %v7251_v7  ;;  %v8792_v14 = vand.u32 4294901760, %v8791_v8 }
 0x39f   :  { %26460 = vmatmul.mubr.f32.vlgmr.msra.gmra.mxu1 %v8790_v50  ;;  %26469 = vmatprep.subr.mxu1 %v27873_v28 }
 0x3a0   :  { %v26328_v10 = vpop.f32.mrf.mxu0  ;;  %26470 = vmatpush3.msra.mxu1 %v27873_v28  ;;  %26473 = vmatprep.mubr.f32.mxu1 %v28608_v61  ;;  %v8782_v5 = vand.u32 4294901760, %v8781_v9 }
 0x3a1   :  { %v7432_v18 = vadd.f32 %v26328_v10, %v7349_v1  ;;  %26471 = vmatprep.subr.mxu1 %v27882_v32 }
 0x3a2   :  { %v7424_v6 = vpop.f32.mrf.mxu0  ;;  %26438 = vmatprep.mubr.f32.mxu0 %v8782_v5  ;;  %26472 = vmatpush3.msra.mxu1 %v27882_v32 }
 0x3a3   :  { %v7425_v15 = vadd.f32 %v7424_v6, %v7343_v39  ;;  %v7515_v51 = vadd.f32 %v26335_v19, %v7432_v18  ;;  %26439 = vmatmul.mubr.f32.vlgmr.msra.gmra.mxu0 %v8792_v14  ;;  %26474 = vmatmul.mubr.f32.vlgmr.msra.gmra.mxu1 %v28600_v53  ;;  %v26363_v2 = vpop.f32.mrf.mxu1 }
 0x3a4   :  { %26483 = vmatprep.subr.mxu1 %v27996_v52  ;;  %26449 = vmatpush3.msra.mxu0 %v27888_v33 }
 0x3a5   :  { %v26342_v24 = vpop.f32.mrf.mxu0  ;;  %v7507_v3 = vadd.f32 %v7506_v27, %v7425_v15  ;;  %26452 = vmatprep.mubr.f32.mxu0 %v8779_v62  ;;  %26484 = vmatpush3.msra.mxu1 %v27996_v52  ;;  %v7850_v23 = vpop.f32.mrf.mxu1 }
 0x3a6   :  { %v7598_v26 = vadd.f32 %v26342_v24, %v7515_v51  ;;  %26450 = vmatprep.subr.mxu0 %v27895_v34  ;;  %26485 = vmatprep.subr.mxu1 %v28003_v54 }
 0x3a7   :  { %v7591_v29 = vpop.f32.mrf.mxu0  ;;  %26451 = vmatpush3.msra.mxu0 %v27895_v34  ;;  %26486 = vmatpush3.msra.mxu1 %v28003_v54  ;;  %v26377_v41 = vpop.f32.mrf.mxu1 }
 0x3a8   :  { %v7677_v25 = vadd.f32 %v26349_v37, %v7598_v26  ;;  %v7592_v38 = vadd.f32 %v7591_v29, %v7507_v3  ;;  %26453 = vmatmul.mubr.f32.vlgmr.msra.gmra.mxu0 %v8789_v49  ;;  %26462 = vmatprep.subr.mxu0 %v27903_v35 }
 0x3a9   :  { %26497 = vmatprep.subr.mxu1 %v27939_v43  ;;  %26463 = vmatpush3.msra.mxu0 %v27903_v35  ;;  %v8014_v8 = vpop.f32.mrf.mxu1 }
 0x3aa   :  { %8194 = vst.msk [vmem:[#allocation5 + $0x128] sm:$0xff] %vm42_vm0, %v7677_v25  ;;  %v9217_v19 = vsel %vm42_vm0, %v7677_v25, 0  ;;  %v7671_v20 = vadd.f32 %v7670_v13, %v7592_v38  ;;  %26466 = vmatprep.mubr.f32.mxu0 %v28608_v61  ;;  %26464 = vmatprep.subr.mxu0 %v27910_v36 }
 0x3ab   :  { %v28643_v27 = vand.u32 4294901760, %v9217_v19  ;;  %26465 = vmatpush3.msra.mxu0 %v27910_v36 }
 0x3ac   :  { %8193 = vst.msk [vmem:[#allocation5 + $0x120] sm:$0xff] %vm42_vm0, %v7671_v20  ;;  %v9214_v49 = vsel %vm42_vm0, %v7671_v20, 0  ;;  %v26356_v62 = vpop.f32.mrf.mxu0  ;;  %26467 = vmatmul.mubr.f32.vlgmr.msra.gmra.mxu0 %v28600_v53  ;;  %26476 = vmatprep.subr.mxu0 %v27939_v43 }
 0x3ad   :  { %v9297_v50 = vsub.f32 %v9217_v19, %v28643_v27  ;;  %v28651_v4 = vand.u32 4294901760, %v9214_v49  ;;  %26477 = vmatpush3.msra.mxu0 %v27939_v43  ;;  %v7857_v53 = vadd.f32 %v26363_v2, %v26356_v62  ;;  %v26391_v15 = vpop.f32.mrf.mxu1 }
 0x3ae   :  { %v7759_v61 = vpop.f32.mrf.mxu0  ;;  %26478 = vmatprep.subr.mxu0 %v27946_v44 }
 0x3af   :  { %v9287_v37 = vsub.f32 %v9214_v49, %v28651_v4  ;;  %26487 = vmatprep.mubr.f32.mxu1 %v28651_v4  ;;  %v9298_v7 = vand.u32 4294901760, %v9297_v50  ;;  %26479 = vmatpush3.msra.mxu0 %v27946_v44  ;;  %v7851_v10 = vadd.f32 %v7850_v23, %v7759_v61  ;;  %v8178_v23 = vpop.f32.mrf.mxu1 }
 0x3b0   :  { %26488 = vmatmul.mubr.f32.vlgmr.msra.gmra.mxu1 %v28643_v27  ;;  %26490 = vmatprep.subr.mxu0 %v27953_v45 }
 0x3b1   :  { %v26370_v9 = vpop.f32.mrf.mxu0  ;;  %26498 = vmatpush3.msra.mxu1 %v27939_v43  ;;  %v9288_v1 = vand.u32 4294901760, %v9287_v37  ;;  %v9299_v39 = vsub.f32 %v9297_v50, %v9298_v7 }
 0x3b2   :  { %v7940_v5 = vadd.f32 %v26370_v9, %v7857_v53  ;;  %26499 = vmatprep.subr.mxu1 %v27946_v44 }
 0x3b3   :  { %v7932_v13 = vpop.f32.mrf.mxu0  ;;  %26500 = vmatpush3.msra.mxu1 %v27946_v44  ;;  %26501 = vmatprep.mubr.f32.mxu1 %v9288_v1  ;;  %v9289_v18 = vsub.f32 %v9287_v37, %v9288_v1  ;;  %v9300_v26 = vand.u32 4294901760, %v9299_v39 }
 0x3b4   :  { %v7933_v14 = vadd.f32 %v7932_v13, %v7851_v10  ;;  %v8023_v6 = vadd.f32 %v26377_v41, %v7940_v5  ;;  %26502 = vmatmul.mubr.f32.vlgmr.msra.gmra.mxu1 %v9298_v7  ;;  %26511 = vmatprep.subr.mxu1 %v27939_v43 }
 0x3b5   :  { %v26384_v51 = vpop.f32.mrf.mxu0  ;;  %26512 = vmatpush3.msra.mxu1 %v27939_v43  ;;  %26515 = vmatprep.mubr.f32.mxu1 %v28651_v4  ;;  %v9290_v2 = vand.u32 4294901760, %v9289_v18 }
 0x3b6   :  { %v8106_v24 = vadd.f32 %v26384_v51, %v8023_v6  ;;  %v8015_v3 = vadd.f32 %v8014_v8, %v7933_v14  ;;  %26513 = vmatprep.subr.mxu1 %v27946_v44 }
 0x3b7   :  { %v8099_v29 = vpop.f32.mrf.mxu0  ;;  %26480 = vmatprep.mubr.f32.mxu0 %v9290_v2  ;;  %26514 = vmatpush3.msra.mxu1 %v27946_v44 }
 0x3b8   :  { %v8185_v25 = vadd.f32 %v26391_v15, %v8106_v24  ;;  %v8100_v38 = vadd.f32 %v8099_v29, %v8015_v3  ;;  %26481 = vmatmul.mubr.f32.vlgmr.msra.gmra.mxu0 %v9300_v26  ;;  %26516 = vmatmul.mubr.f32.vlgmr.msra.gmra.mxu1 %v28643_v27 }
 0x3b9   :  { %26525 = vmatprep.subr.mxu1 %v28062_v63  ;;  %26491 = vmatpush3.msra.mxu0 %v27953_v45 }
 0x3ba   :  { %8196 = vst.msk [vmem:[#allocation5 + $0x138] sm:$0xff] %vm42_vm0, %v8185_v25  ;;  %v9725_v19 = vsel %vm42_vm0, %v8185_v25, 0  ;;  %v8179_v20 = vadd.f32 %v8178_v23, %v8100_v38  ;;  %26494 = vmatprep.mubr.f32.mxu0 %v9287_v37  ;;  %26526 = vmatpush3.msra.mxu1 %v28062_v63 }
 0x3bb   :  { %v9804_v49 = vand.u32 4294901760, %v9725_v19  ;;  %26492 = vmatprep.subr.mxu0 %v27961_v46  ;;  %26527 = vmatprep.subr.mxu1 %v28069_v0 }
 0x3bc   :  { %8195 = vst.msk [vmem:[#allocation5 + $0x130] sm:$0xff] %vm42_vm0, %v8179_v20  ;;  %v9722_v62 = vsel %vm42_vm0, %v8179_v20, 0  ;;  %26493 = vmatpush3.msra.mxu0 %v27961_v46  ;;  %26528 = vmatpush3.msra.mxu1 %v28069_v0 }
 0x3bd   :  { %v9805_v41 = vsub.f32 %v9725_v19, %v9804_v49  ;;  %v9794_v61 = vand.u32 4294901760, %v9722_v62  ;;  %26495 = vmatmul.mubr.f32.vlgmr.msra.gmra.mxu0 %v9297_v50  ;;  %26504 = vmatprep.subr.mxu0 %v27969_v47 }
 0x3be   :  { %26539 = vmatprep.subr.mxu1 %v28005_v55  ;;  %26505 = vmatpush3.msra.mxu0 %v27969_v47 }
 0x3bf   :  { %v9806_v37 = vand.u32 4294901760, %v9805_v41  ;;  %v9795_v7 = vsub.f32 %v9722_v62, %v9794_v61  ;;  %26529 = vmatprep.mubr.f32.mxu1 %v9794_v61  ;;  %26508 = vmatprep.mubr.f32.mxu0 %v28651_v4 }
 0x3c0   :  { %26530 = vmatmul.mubr.f32.vlgmr.msra.gmra.mxu1 %v9804_v49  ;;  %26506 = vmatprep.subr.mxu0 %v27976_v48 }
 0x3c1   :  { %26540 = vmatpush3.msra.mxu1 %v28005_v55  ;;  %26507 = vmatpush3.msra.mxu0 %v27976_v48  ;;  %v9796_v53 = vand.u32 4294901760, %v9795_v7  ;;  %v9807_v50 = vsub.f32 %v9805_v41, %v9806_v37 }
 0x3c2   :  { %26541 = vmatprep.subr.mxu1 %v28012_v56  ;;  %26509 = vmatmul.mubr.f32.vlgmr.msra.gmra.mxu0 %v28643_v27 }
 0x3c3   :  { %26542 = vmatpush3.msra.mxu1 %v28012_v56  ;;  %26543 = vmatprep.mubr.f32.mxu1 %v9796_v53  ;;  %v9797_v8 = vsub.f32 %v9795_v7, %v9796_v53  ;;  %v9808_v9 = vand.u32 4294901760, %v9807_v50 }
 0x3c4   :  { %26518 = vmatprep.subr.mxu0 %v28005_v55  ;;  %26544 = vmatmul.mubr.f32.vlgmr.msra.gmra.mxu1 %v9806_v37 }
 0x3c5   :  { %26553 = vmatprep.subr.mxu1 %v28005_v55  ;;  %26519 = vmatpush3.msra.mxu0 %v28005_v55  ;;  %v9798_v4 = vand.u32 4294901760, %v9797_v8 }
 0x3c6   :  { %26554 = vmatpush3.msra.mxu1 %v28005_v55  ;;  %26557 = vmatprep.mubr.f32.mxu1 %v9794_v61 }
 0x3c7   :  { %26520 = vmatprep.subr.mxu0 %v28012_v56  ;;  %26555 = vmatprep.subr.mxu1 %v28012_v56 }
 0x3c8   :  { %26521 = vmatpush3.msra.mxu0 %v28012_v56  ;;  %26522 = vmatprep.mubr.f32.mxu0 %v9798_v4 }
 0x3c9   :  { %26556 = vmatpush3.msra.mxu1 %v28012_v56  ;;  %26523 = vmatmul.mubr.f32.vlgmr.msra.gmra.mxu0 %v9808_v9 }
 0x3ca   :  { %26532 = vmatprep.subr.mxu0 %v28019_v57  ;;  %26558 = vmatmul.mubr.f32.vlgmr.msra.gmra.mxu1 %v9804_v49 }
 0x3cb   :  { %26533 = vmatpush3.msra.mxu0 %v28019_v57  ;;  %26536 = vmatprep.mubr.f32.mxu0 %v9795_v7 }
 0x3cc   :  { %26534 = vmatprep.subr.mxu0 %v28027_v58  ;;  %26567 = vmatprep.subr.mxu1 %v27878_v30 }
 0x3cd   :  { %26535 = vmatpush3.msra.mxu0 %v28027_v58  ;;  %26568 = vmatpush3.msra.mxu1 %v27878_v30 }
 0x3ce   :  { %26537 = vmatmul.mubr.f32.vlgmr.msra.gmra.mxu0 %v9805_v41  ;;  %26546 = vmatprep.subr.mxu0 %v28035_v59 }
 0x3cf   :  { %26547 = vmatpush3.msra.mxu0 %v28035_v59  ;;  %26550 = vmatprep.mubr.f32.mxu0 %v9794_v61 }
 0x3d0   :  { %26548 = vmatprep.subr.mxu0 %v28042_v60  ;;  %26569 = vmatprep.subr.mxu1 %v27880_v31 }
 0x3d1   :  { %26549 = vmatpush3.msra.mxu0 %v28042_v60  ;;  %26570 = vmatpush3.msra.mxu1 %v27880_v31 }
 0x3d2   :  { %26551 = vmatmul.mubr.f32.vlgmr.msra.gmra.mxu0 %v9804_v49  ;;  %26581 = vmatprep.subr.mxu1 %v27824_v11 }
 0x3d3   :  { %26560 = vmatprep.subr.mxu0 %v27824_v11 }
 0x3d4   :  { %26561 = vmatpush3.msra.mxu0 %v27824_v11 }
 0x3d5   :  { %26562 = vmatprep.subr.mxu0 %v27826_v12 }
 0x3d6   :  { %26563 = vmatpush3.msra.mxu0 %v27826_v12 }
 0x3d7   :  { %26574 = vmatprep.subr.mxu0 %v27845_v16 }
 0x448   :  { %v26405_v27 = vpop.f32.mrf.mxu1 }
 0x44a   :  { %v8367_v1 = vpop.f32.mrf.mxu1 }
 0x44c   :  { %v26419_v10 = vpop.f32.mrf.mxu1 }
 0x44e   :  { %v8531_v5 = vpop.f32.mrf.mxu1 }
 0x450   :  { %v26398_v39 = vpop.f32.mrf.mxu0  ;;  %v26433_v18 = vpop.f32.mrf.mxu1 }
 0x451   :  { %v8374_v14 = vadd.f32 %v26405_v27, %v26398_v39 }
 0x452   :  { %v8276_v13 = vpop.f32.mrf.mxu0  ;;  %v8695_v2 = vpop.f32.mrf.mxu1 }
 0x453   :  { %v8368_v15 = vadd.f32 %v8367_v1, %v8276_v13 }
 0x455   :  { %v26412_v6 = vpop.f32.mrf.mxu0 }
 0x456   :  { %v8457_v51 = vadd.f32 %v26412_v6, %v8374_v14 }
 0x457   :  { %v8449_v24 = vpop.f32.mrf.mxu0 }
 0x458   :  { %v8450_v3 = vadd.f32 %v8449_v24, %v8368_v15  ;;  %v8540_v26 = vadd.f32 %v26419_v10, %v8457_v51 }
 0x459   :  { %v26426_v29 = vpop.f32.mrf.mxu0 }
 0x45a   :  { %v8623_v25 = vadd.f32 %v26426_v29, %v8540_v26  ;;  %v8532_v38 = vadd.f32 %v8531_v5, %v8450_v3 }
 0x45b   :  { %v26447_v23 = vpop.f32.mrf.mxu1  ;;  %v8616_v19 = vpop.f32.mrf.mxu0 }
 0x45c   :  { %v8702_v20 = vadd.f32 %v26433_v18, %v8623_v25  ;;  %v8617_v49 = vadd.f32 %v8616_v19, %v8532_v38 }
 0x45d   :  { %v8875_v62 = vpop.f32.mrf.mxu1 }
 0x45e   :  { %10231 = vst.msk [vmem:[#allocation5 + $0x148] sm:$0xff] %vm42_vm0, %v8702_v20  ;;  %v10242_v41 = vsel %vm42_vm0, %v8702_v20, 0  ;;  %v8696_v61 = vadd.f32 %v8695_v2, %v8617_v49 }
 0x45f   :  { %v28718_v37 = vand.u32 4294901760, %v10242_v41  ;;  %v26461_v7 = vpop.f32.mrf.mxu1 }
 0x460   :  { %10230 = vst.msk [vmem:[#allocation5 + $0x140] sm:$0xff] %vm42_vm0, %v8696_v61  ;;  %v10239_v53 = vsel %vm42_vm0, %v8696_v61, 0 }
 0x461   :  { %v10322_v50 = vsub.f32 %v10242_v41, %v28718_v37  ;;  %v10311_v8 = vand.u32 4294901760, %v10239_v53  ;;  %v9039_v1 = vpop.f32.mrf.mxu1 }
 0x463   :  { %v10323_v4 = vand.u32 4294901760, %v10322_v50  ;;  %v10312_v9 = vsub.f32 %v10239_v53, %v10311_v8  ;;  %v26440_v27 = vpop.f32.mrf.mxu0  ;;  %26571 = vmatprep.mubr.f32.mxu1 %v10311_v8  ;;  %v26475_v14 = vpop.f32.mrf.mxu1 }
 0x464   :  { %26572 = vmatmul.mubr.f32.vlgmr.msra.gmra.mxu1 %v28718_v37  ;;  %v8882_v13 = vadd.f32 %v26447_v23, %v26440_v27 }
 0x465   :  { %v8784_v10 = vpop.f32.mrf.mxu0  ;;  %26582 = vmatpush3.msra.mxu1 %v27824_v11  ;;  %v10313_v5 = vand.u32 4294901760, %v10312_v9  ;;  %v10324_v39 = vsub.f32 %v10322_v50, %v10323_v4  ;;  %v9203_v25 = vpop.f32.mrf.mxu1 }
 0x466   :  { %26583 = vmatprep.subr.mxu1 %v27826_v12  ;;  %v8876_v15 = vadd.f32 %v8875_v62, %v8784_v10 }
 0x467   :  { %26584 = vmatpush3.msra.mxu1 %v27826_v12  ;;  %26585 = vmatprep.mubr.f32.mxu1 %v10313_v5  ;;  %v10314_v18 = vsub.f32 %v10312_v9, %v10313_v5  ;;  %v10325_v24 = vand.u32 4294901760, %v10324_v39 }
 0x468   :  { %v26454_v6 = vpop.f32.mrf.mxu0  ;;  %26586 = vmatmul.mubr.f32.vlgmr.msra.gmra.mxu1 %v10323_v4  ;;  %26595 = vmatprep.subr.mxu1 %v27824_v11 }
 0x469   :  { %v8965_v51 = vadd.f32 %v26454_v6, %v8882_v13  ;;  %26596 = vmatpush3.msra.mxu1 %v27824_v11  ;;  %26599 = vmatprep.mubr.f32.mxu1 %v10311_v8  ;;  %v10315_v2 = vand.u32 4294901760, %v10314_v18 }
 0x46a   :  { %v8957_v3 = vpop.f32.mrf.mxu0  ;;  %26597 = vmatprep.subr.mxu1 %v27826_v12 }
 0x46b   :  { %v8958_v26 = vadd.f32 %v8957_v3, %v8876_v15  ;;  %v9048_v29 = vadd.f32 %v26461_v7, %v8965_v51  ;;  %26564 = vmatprep.mubr.f32.mxu0 %v10315_v2  ;;  %26598 = vmatpush3.msra.mxu1 %v27826_v12 }
 0x46c   :  { %v26468_v38 = vpop.f32.mrf.mxu0  ;;  %26565 = vmatmul.mubr.f32.vlgmr.msra.gmra.mxu0 %v10325_v24  ;;  %26600 = vmatmul.mubr.f32.vlgmr.msra.gmra.mxu1 %v28718_v37 }
 0x46d   :  { %v9131_v23 = vadd.f32 %v26468_v38, %v9048_v29  ;;  %v9040_v19 = vadd.f32 %v9039_v1, %v8958_v26  ;;  %26609 = vmatprep.subr.mxu1 %v27930_v40  ;;  %26575 = vmatpush3.msra.mxu0 %v27845_v16 }
 0x46e   :  { %v9124_v20 = vpop.f32.mrf.mxu0  ;;  %26578 = vmatprep.mubr.f32.mxu0 %v10312_v9  ;;  %26610 = vmatpush3.msra.mxu1 %v27930_v40 }
 0x46f   :  { %v9210_v49 = vadd.f32 %v26475_v14, %v9131_v23  ;;  %v9125_v62 = vadd.f32 %v9124_v20, %v9040_v19  ;;  %26576 = vmatprep.subr.mxu0 %v27848_v17  ;;  %26611 = vmatprep.subr.mxu1 %v27937_v42 }
 0x470   :  { %v26489_v41 = vpop.f32.mrf.mxu1  ;;  %26577 = vmatpush3.msra.mxu0 %v27848_v17  ;;  %26612 = vmatpush3.msra.mxu1 %v27937_v42 }
 0x471   :  { %10233 = vst.msk [vmem:[#allocation5 + $0x158] sm:$0xff] %vm42_vm0, %v9210_v49  ;;  %v10750_v61 = vsel %vm42_vm0, %v9210_v49, 0  ;;  %v9204_v7 = vadd.f32 %v9203_v25, %v9125_v62  ;;  %26579 = vmatmul.mubr.f32.vlgmr.msra.gmra.mxu0 %v10322_v50  ;;  %26588 = vmatprep.subr.mxu0 %v27858_v21 }
 0x472   :  { %v9383_v53 = vpop.f32.mrf.mxu1  ;;  %v28742_v4 = vand.u32 4294901760, %v10750_v61  ;;  %26623 = vmatprep.subr.mxu1 %v27873_v28  ;;  %26589 = vmatpush3.msra.mxu0 %v27858_v21 }
 0x473   :  { %10232 = vst.msk [vmem:[#allocation5 + $0x150] sm:$0xff] %vm42_vm0, %v9204_v7  ;;  %v10747_v9 = vsel %vm42_vm0, %v9204_v7, 0  ;;  %26592 = vmatprep.mubr.f32.mxu0 %v10311_v8  ;;  %26590 = vmatprep.subr.mxu0 %v27861_v22 }
 0x474   :  { %v10830_v27 = vsub.f32 %v10750_v61, %v28742_v4  ;;  %v26503_v1 = vpop.f32.mrf.mxu1  ;;  %v10819_v50 = vand.u32 4294901760, %v10747_v9  ;;  %26591 = vmatpush3.msra.mxu0 %v27861_v22 }
 0x475   :  { %26593 = vmatmul.mubr.f32.vlgmr.msra.gmra.mxu0 %v28718_v37  ;;  %26602 = vmatprep.subr.mxu0 %v27873_v28 }
 0x476   :  { %v10831_v10 = vand.u32 4294901760, %v10830_v27  ;;  %v10820_v5 = vsub.f32 %v10747_v9, %v10819_v50  ;;  %v9547_v39 = vpop.f32.mrf.mxu1  ;;  %26613 = vmatprep.mubr.f32.mxu1 %v10819_v50  ;;  %26603 = vmatpush3.msra.mxu0 %v27873_v28 }
 0x477   :  { %26614 = vmatmul.mubr.f32.vlgmr.msra.gmra.mxu1 %v28742_v4  ;;  %26604 = vmatprep.subr.mxu0 %v27882_v32 }
 0x478   :  { %v26482_v8 = vpop.f32.mrf.mxu0  ;;  %26624 = vmatpush3.msra.mxu1 %v27873_v28  ;;  %v10821_v13 = vand.u32 4294901760, %v10820_v5  ;;  %26605 = vmatpush3.msra.mxu0 %v27882_v32  ;;  %v10832_v18 = vsub.f32 %v10830_v27, %v10831_v10  ;;  %v26517_v37 = vpop.f32.mrf.mxu1 }
 0x479   :  { %26625 = vmatprep.subr.mxu1 %v27882_v32  ;;  %26616 = vmatprep.subr.mxu0 %v27888_v33  ;;  %v9390_v15 = vadd.f32 %v26489_v41, %v26482_v8 }
 0x47a   :  { %v9292_v14 = vpop.f32.mrf.mxu0  ;;  %26626 = vmatpush3.msra.mxu1 %v27882_v32  ;;  %26627 = vmatprep.mubr.f32.mxu1 %v10821_v13  ;;  %v10822_v6 = vsub.f32 %v10820_v5, %v10821_v13  ;;  %v10833_v2 = vand.u32 4294901760, %v10832_v18  ;;  %v9711_v26 = vpop.f32.mrf.mxu1 }
 0x47b   :  { %26628 = vmatmul.mubr.f32.vlgmr.msra.gmra.mxu1 %v10831_v10  ;;  %26637 = vmatprep.subr.mxu1 %v27873_v28  ;;  %v9384_v3 = vadd.f32 %v9383_v53, %v9292_v14 }
 0x47c   :  { %26638 = vmatpush3.msra.mxu1 %v27873_v28  ;;  %26641 = vmatprep.mubr.f32.mxu1 %v10819_v50  ;;  %v10823_v51 = vand.u32 4294901760, %v10822_v6 }
 0x47d   :  { %v26496_v24 = vpop.f32.mrf.mxu0  ;;  %26639 = vmatprep.subr.mxu1 %v27882_v32 }
 0x47e   :  { %v9473_v29 = vadd.f32 %v26496_v24, %v9390_v15  ;;  %26606 = vmatprep.mubr.f32.mxu0 %v10823_v51  ;;  %26640 = vmatpush3.msra.mxu1 %v27882_v32 }
 0x47f   :  { %v9465_v25 = vpop.f32.mrf.mxu0  ;;  %26607 = vmatmul.mubr.f32.vlgmr.msra.gmra.mxu0 %v10833_v2  ;;  %26642 = vmatmul.mubr.f32.vlgmr.msra.gmra.mxu1 %v28742_v4 }
 0x480   :  { %v9466_v38 = vadd.f32 %v9465_v25, %v9384_v3  ;;  %v9556_v23 = vadd.f32 %v26503_v1, %v9473_v29  ;;  %26651 = vmatprep.subr.mxu1 %v27996_v52  ;;  %26617 = vmatpush3.msra.mxu0 %v27888_v33  ;;  %v26531_v19 = vpop.f32.mrf.mxu1 }
 0x481   :  { %26620 = vmatprep.mubr.f32.mxu0 %v10820_v5  ;;  %26652 = vmatpush3.msra.mxu1 %v27996_v52 }
 0x482   :  { %v26510_v20 = vpop.f32.mrf.mxu0  ;;  %v9548_v49 = vadd.f32 %v9547_v39, %v9466_v38  ;;  %26618 = vmatprep.subr.mxu0 %v27895_v34  ;;  %26653 = vmatprep.subr.mxu1 %v28003_v54  ;;  %v9891_v53 = vpop.f32.mrf.mxu1 }
 0x483   :  { %v9639_v62 = vadd.f32 %v26510_v20, %v9556_v23  ;;  %26619 = vmatpush3.msra.mxu0 %v27895_v34  ;;  %26654 = vmatpush3.msra.mxu1 %v28003_v54 }
 0x484   :  { %v9632_v41 = vpop.f32.mrf.mxu0  ;;  %26621 = vmatmul.mubr.f32.vlgmr.msra.gmra.mxu0 %v10830_v27  ;;  %26630 = vmatprep.subr.mxu0 %v27903_v35  ;;  %v26545_v39 = vpop.f32.mrf.mxu1 }
 0x485   :  { %v9718_v61 = vadd.f32 %v26517_v37, %v9639_v62  ;;  %v9633_v7 = vadd.f32 %v9632_v41, %v9548_v49  ;;  %26665 = vmatprep.subr.mxu1 %v27939_v43  ;;  %26631 = vmatpush3.msra.mxu0 %v27903_v35 }
 0x486   :  { %26634 = vmatprep.mubr.f32.mxu0 %v10819_v50  ;;  %26632 = vmatprep.subr.mxu0 %v27910_v36  ;;  %v10055_v14 = vpop.f32.mrf.mxu1 }
 0x487   :  { %10235 = vst.msk [vmem:[#allocation5 + $0x168] sm:$0xff] %vm42_vm0, %v9718_v61  ;;  %v11258_v9 = vsel %vm42_vm0, %v9718_v61, 0  ;;  %v9712_v1 = vadd.f32 %v9711_v26, %v9633_v7  ;;  %26633 = vmatpush3.msra.mxu0 %v27910_v36 }
 0x488   :  { %v28780_v27 = vand.u32 4294901760, %v11258_v9  ;;  %26635 = vmatmul.mubr.f32.vlgmr.msra.gmra.mxu0 %v28742_v4  ;;  %26644 = vmatprep.subr.mxu0 %v27939_v43 }
 0x489   :  { %10234 = vst.msk [vmem:[#allocation5 + $0x160] sm:$0xff] %vm42_vm0, %v9712_v1  ;;  %v11255_v10 = vsel %vm42_vm0, %v9712_v1, 0  ;;  %v26524_v50 = vpop.f32.mrf.mxu0  ;;  %26645 = vmatpush3.msra.mxu0 %v27939_v43 }
 0x48a   :  { %v11338_v5 = vsub.f32 %v11258_v9, %v28780_v27  ;;  %v28788_v8 = vand.u32 4294901760, %v11255_v10  ;;  %26646 = vmatprep.subr.mxu0 %v27946_v44  ;;  %v9898_v37 = vadd.f32 %v26531_v19, %v26524_v50  ;;  %v26559_v38 = vpop.f32.mrf.mxu1 }
 0x48b   :  { %v9800_v13 = vpop.f32.mrf.mxu0  ;;  %26647 = vmatpush3.msra.mxu0 %v27946_v44 }
 0x48c   :  { %v11339_v4 = vand.u32 4294901760, %v11338_v5  ;;  %v11328_v18 = vsub.f32 %v11255_v10, %v28788_v8  ;;  %26655 = vmatprep.mubr.f32.mxu1 %v28788_v8  ;;  %26658 = vmatprep.subr.mxu0 %v27953_v45  ;;  %v9892_v2 = vadd.f32 %v9891_v53, %v9800_v13  ;;  %v10219_v53 = vpop.f32.mrf.mxu1 }
 0x48d   :  { %26656 = vmatmul.mubr.f32.vlgmr.msra.gmra.mxu1 %v28780_v27 }
 0x48e   :  { %v26538_v6 = vpop.f32.mrf.mxu0  ;;  %26666 = vmatpush3.msra.mxu1 %v27939_v43  ;;  %v11329_v15 = vand.u32 4294901760, %v11328_v18  ;;  %v11340_v51 = vsub.f32 %v11338_v5, %v11339_v4 }
 0x48f   :  { %v9981_v24 = vadd.f32 %v26538_v6, %v9898_v37  ;;  %26667 = vmatprep.subr.mxu1 %v27946_v44 }
 0x490   :  { %v9973_v3 = vpop.f32.mrf.mxu0  ;;  %26668 = vmatpush3.msra.mxu1 %v27946_v44  ;;  %26669 = vmatprep.mubr.f32.mxu1 %v11329_v15  ;;  %v11330_v26 = vsub.f32 %v11328_v18, %v11329_v15  ;;  %v11341_v20 = vand.u32 4294901760, %v11340_v51 }
 0x491   :  { %v9974_v29 = vadd.f32 %v9973_v3, %v9892_v2  ;;  %v10064_v25 = vadd.f32 %v26545_v39, %v9981_v24  ;;  %26670 = vmatmul.mubr.f32.vlgmr.msra.gmra.mxu1 %v11339_v4  ;;  %26679 = vmatprep.subr.mxu1 %v27939_v43 }
 0x492   :  { %v26552_v23 = vpop.f32.mrf.mxu0  ;;  %26680 = vmatpush3.msra.mxu1 %v27939_v43  ;;  %26683 = vmatprep.mubr.f32.mxu1 %v28788_v8  ;;  %v11331_v19 = vand.u32 4294901760, %v11330_v26 }
 0x493   :  { %v10147_v49 = vadd.f32 %v26552_v23, %v10064_v25  ;;  %v10056_v62 = vadd.f32 %v10055_v14, %v9974_v29  ;;  %26681 = vmatprep.subr.mxu1 %v27946_v44 }
 0x494   :  { %v10140_v41 = vpop.f32.mrf.mxu0  ;;  %26648 = vmatprep.mubr.f32.mxu0 %v11331_v19  ;;  %26682 = vmatpush3.msra.mxu1 %v27946_v44 }
 0x495   :  { %v10226_v61 = vadd.f32 %v26559_v38, %v10147_v49  ;;  %v10141_v7 = vadd.f32 %v10140_v41, %v10056_v62  ;;  %26649 = vmatmul.mubr.f32.vlgmr.msra.gmra.mxu0 %v11341_v20  ;;  %26684 = vmatmul.mubr.f32.vlgmr.msra.gmra.mxu1 %v28780_v27 }
 0x496   :  { %26693 = vmatprep.subr.mxu1 %v28062_v63  ;;  %26659 = vmatpush3.msra.mxu0 %v27953_v45 }
 0x497   :  { %10237 = vst.msk [vmem:[#allocation5 + $0x178] sm:$0xff] %vm42_vm0, %v10226_v61  ;;  %v11766_v9 = vsel %vm42_vm0, %v10226_v61, 0  ;;  %v10220_v1 = vadd.f32 %v10219_v53, %v10141_v7  ;;  %26662 = vmatprep.mubr.f32.mxu0 %v11328_v18  ;;  %26694 = vmatpush3.msra.mxu1 %v28062_v63 }
 0x498   :  { %v11845_v10 = vand.u32 4294901760, %v11766_v9  ;;  %26660 = vmatprep.subr.mxu0 %v27961_v46  ;;  %26695 = vmatprep.subr.mxu1 %v28069_v0 }
 0x499   :  { %10236 = vst.msk [vmem:[#allocation5 + $0x170] sm:$0xff] %vm42_vm0, %v10220_v1  ;;  %v11763_v50 = vsel %vm42_vm0, %v10220_v1, 0  ;;  %26661 = vmatpush3.msra.mxu0 %v27961_v46  ;;  %26696 = vmatpush3.msra.mxu1 %v28069_v0 }
 0x49a   :  { %v11846_v39 = vsub.f32 %v11766_v9, %v11845_v10  ;;  %v11835_v13 = vand.u32 4294901760, %v11763_v50  ;;  %26663 = vmatmul.mubr.f32.vlgmr.msra.gmra.mxu0 %v11338_v5  ;;  %26672 = vmatprep.subr.mxu0 %v27969_v47 }
 0x49b   :  { %26707 = vmatprep.subr.mxu1 %v28005_v55  ;;  %26673 = vmatpush3.msra.mxu0 %v27969_v47 }
 0x49c   :  { %v11847_v4 = vand.u32 4294901760, %v11846_v39  ;;  %v11836_v18 = vsub.f32 %v11763_v50, %v11835_v13  ;;  %26697 = vmatprep.mubr.f32.mxu1 %v11835_v13  ;;  %26676 = vmatprep.mubr.f32.mxu0 %v28788_v8 }
 0x49d   :  { %26698 = vmatmul.mubr.f32.vlgmr.msra.gmra.mxu1 %v11845_v10  ;;  %26674 = vmatprep.subr.mxu0 %v27976_v48 }
 0x49e   :  { %26708 = vmatpush3.msra.mxu1 %v28005_v55  ;;  %26675 = vmatpush3.msra.mxu0 %v27976_v48  ;;  %v11837_v37 = vand.u32 4294901760, %v11836_v18  ;;  %v11848_v5 = vsub.f32 %v11846_v39, %v11847_v4 }
 0x49f   :  { %26709 = vmatprep.subr.mxu1 %v28012_v56  ;;  %26677 = vmatmul.mubr.f32.vlgmr.msra.gmra.mxu0 %v28780_v27 }
 0x4a0   :  { %26710 = vmatpush3.msra.mxu1 %v28012_v56  ;;  %26711 = vmatprep.mubr.f32.mxu1 %v11837_v37  ;;  %v11838_v14 = vsub.f32 %v11836_v18, %v11837_v37  ;;  %v11849_v6 = vand.u32 4294901760, %v11848_v5 }
 0x4a1   :  { %26686 = vmatprep.subr.mxu0 %v28005_v55  ;;  %26712 = vmatmul.mubr.f32.vlgmr.msra.gmra.mxu1 %v11847_v4 }
 0x4a2   :  { %26721 = vmatprep.subr.mxu1 %v28005_v55  ;;  %26687 = vmatpush3.msra.mxu0 %v28005_v55  ;;  %v11839_v8 = vand.u32 4294901760, %v11838_v14 }
 0x4a3   :  { %26722 = vmatpush3.msra.mxu1 %v28005_v55  ;;  %26725 = vmatprep.mubr.f32.mxu1 %v11835_v13 }
 0x4a4   :  { %26688 = vmatprep.subr.mxu0 %v28012_v56  ;;  %26723 = vmatprep.subr.mxu1 %v28012_v56 }
 0x4a5   :  { %26689 = vmatpush3.msra.mxu0 %v28012_v56  ;;  %26690 = vmatprep.mubr.f32.mxu0 %v11839_v8 }
 0x4a6   :  { %26724 = vmatpush3.msra.mxu1 %v28012_v56  ;;  %26691 = vmatmul.mubr.f32.vlgmr.msra.gmra.mxu0 %v11849_v6 }
 0x4a7   :  { %26700 = vmatprep.subr.mxu0 %v28019_v57  ;;  %26726 = vmatmul.mubr.f32.vlgmr.msra.gmra.mxu1 %v11845_v10 }
 0x4a8   :  { %26701 = vmatpush3.msra.mxu0 %v28019_v57  ;;  %26704 = vmatprep.mubr.f32.mxu0 %v11836_v18 }
 0x4a9   :  { %26702 = vmatprep.subr.mxu0 %v28027_v58  ;;  %26735 = vmatprep.subr.mxu1 %v27878_v30 }
 0x4aa   :  { %26703 = vmatpush3.msra.mxu0 %v28027_v58  ;;  %26736 = vmatpush3.msra.mxu1 %v27878_v30 }
 0x4ab   :  { %26705 = vmatmul.mubr.f32.vlgmr.msra.gmra.mxu0 %v11846_v39  ;;  %26714 = vmatprep.subr.mxu0 %v28035_v59 }
 0x4ac   :  { %26715 = vmatpush3.msra.mxu0 %v28035_v59  ;;  %26718 = vmatprep.mubr.f32.mxu0 %v11835_v13 }
 0x4ad   :  { %26716 = vmatprep.subr.mxu0 %v28042_v60  ;;  %26737 = vmatprep.subr.mxu1 %v27880_v31 }
 0x4ae   :  { %26717 = vmatpush3.msra.mxu0 %v28042_v60  ;;  %26738 = vmatpush3.msra.mxu1 %v27880_v31 }
 0x4af   :  { %26719 = vmatmul.mubr.f32.vlgmr.msra.gmra.mxu0 %v11845_v10  ;;  %26749 = vmatprep.subr.mxu1 %v27824_v11 }
 0x4b0   :  { %26728 = vmatprep.subr.mxu0 %v27824_v11 }
 0x4b1   :  { %26729 = vmatpush3.msra.mxu0 %v27824_v11 }
 0x4b2   :  { %26730 = vmatprep.subr.mxu0 %v27826_v12 }
 0x4b3   :  { %26731 = vmatpush3.msra.mxu0 %v27826_v12 }
 0x4b4   :  { %26742 = vmatprep.subr.mxu0 %v27845_v16 }
 0x524   :  { %v26573_v27 = vpop.f32.mrf.mxu1 }
 0x526   :  { %v10408_v15 = vpop.f32.mrf.mxu1 }
 0x528   :  { %v26587_v51 = vpop.f32.mrf.mxu1 }
 0x52a   :  { %v10572_v2 = vpop.f32.mrf.mxu1 }
 0x52c   :  { %v26566_v24 = vpop.f32.mrf.mxu0  ;;  %v26601_v26 = vpop.f32.mrf.mxu1 }
 0x52d   :  { %v10415_v29 = vadd.f32 %v26573_v27, %v26566_v24 }
 0x52e   :  { %v10317_v3 = vpop.f32.mrf.mxu0  ;;  %v10736_v19 = vpop.f32.mrf.mxu1 }
 0x52f   :  { %v10409_v38 = vadd.f32 %v10408_v15, %v10317_v3 }
 0x531   :  { %v26580_v25 = vpop.f32.mrf.mxu0 }
 0x532   :  { %v10498_v23 = vadd.f32 %v26580_v25, %v10415_v29 }
 0x533   :  { %v10490_v20 = vpop.f32.mrf.mxu0 }
 0x534   :  { %v10491_v49 = vadd.f32 %v10490_v20, %v10409_v38  ;;  %v10581_v62 = vadd.f32 %v26587_v51, %v10498_v23 }
 0x535   :  { %v26594_v41 = vpop.f32.mrf.mxu0 }
 0x536   :  { %v10664_v61 = vadd.f32 %v26594_v41, %v10581_v62  ;;  %v10573_v7 = vadd.f32 %v10572_v2, %v10491_v49 }
 0x537   :  { %v26615_v53 = vpop.f32.mrf.mxu1  ;;  %v10657_v9 = vpop.f32.mrf.mxu0 }
 0x538   :  { %v10743_v1 = vadd.f32 %v26601_v26, %v10664_v61  ;;  %v10658_v10 = vadd.f32 %v10657_v9, %v10573_v7 }
 0x539   :  { %v10916_v50 = vpop.f32.mrf.mxu1 }
 0x53a   :  { %12272 = vst.msk [vmem:[#allocation5 + $0x188] sm:$0xff] %vm42_vm0, %v10743_v1  ;;  %v12283_v39 = vsel %vm42_vm0, %v10743_v1, 0  ;;  %v10737_v13 = vadd.f32 %v10736_v19, %v10658_v10 }
 0x53b   :  { %v28854_v4 = vand.u32 4294901760, %v12283_v39  ;;  %v26629_v5 = vpop.f32.mrf.mxu1 }
 0x53c   :  { %12271 = vst.msk [vmem:[#allocation5 + $0x180] sm:$0xff] %vm42_vm0, %v10737_v13  ;;  %v12280_v18 = vsel %vm42_vm0, %v10737_v13, 0 }
 0x53d   :  { %v12363_v37 = vsub.f32 %v12283_v39, %v28854_v4  ;;  %v12352_v14 = vand.u32 4294901760, %v12280_v18  ;;  %v11080_v15 = vpop.f32.mrf.mxu1 }
 0x53f   :  { %v12364_v8 = vand.u32 4294901760, %v12363_v37  ;;  %v12353_v6 = vsub.f32 %v12280_v18, %v12352_v14  ;;  %v26608_v27 = vpop.f32.mrf.mxu0  ;;  %26739 = vmatprep.mubr.f32.mxu1 %v12352_v14  ;;  %v26643_v25 = vpop.f32.mrf.mxu1 }
 0x540   :  { %26740 = vmatmul.mubr.f32.vlgmr.msra.gmra.mxu1 %v28854_v4  ;;  %v10923_v3 = vadd.f32 %v26615_v53, %v26608_v27 }
 0x541   :  { %v10825_v51 = vpop.f32.mrf.mxu0  ;;  %26750 = vmatpush3.msra.mxu1 %v27824_v11  ;;  %v12354_v2 = vand.u32 4294901760, %v12353_v6  ;;  %v12365_v24 = vsub.f32 %v12363_v37, %v12364_v8  ;;  %v11244_v7 = vpop.f32.mrf.mxu1 }
 0x542   :  { %26751 = vmatprep.subr.mxu1 %v27826_v12  ;;  %v10917_v38 = vadd.f32 %v10916_v50, %v10825_v51 }
 0x543   :  { %26752 = vmatpush3.msra.mxu1 %v27826_v12  ;;  %26753 = vmatprep.mubr.f32.mxu1 %v12354_v2  ;;  %v12355_v26 = vsub.f32 %v12353_v6, %v12354_v2  ;;  %v12366_v20 = vand.u32 4294901760, %v12365_v24 }
 0x544   :  { %v26622_v29 = vpop.f32.mrf.mxu0  ;;  %26754 = vmatmul.mubr.f32.vlgmr.msra.gmra.mxu1 %v12364_v8  ;;  %26763 = vmatprep.subr.mxu1 %v27824_v11 }
 0x545   :  { %v11006_v23 = vadd.f32 %v26622_v29, %v10923_v3  ;;  %26764 = vmatpush3.msra.mxu1 %v27824_v11  ;;  %26767 = vmatprep.mubr.f32.mxu1 %v12352_v14  ;;  %v12356_v19 = vand.u32 4294901760, %v12355_v26 }
 0x546   :  { %v10998_v49 = vpop.f32.mrf.mxu0  ;;  %26765 = vmatprep.subr.mxu1 %v27826_v12 }
 0x547   :  { %v10999_v62 = vadd.f32 %v10998_v49, %v10917_v38  ;;  %v11089_v41 = vadd.f32 %v26629_v5, %v11006_v23  ;;  %26732 = vmatprep.mubr.f32.mxu0 %v12356_v19  ;;  %26766 = vmatpush3.msra.mxu1 %v27826_v12 }
 0x548   :  { %v26636_v61 = vpop.f32.mrf.mxu0  ;;  %26733 = vmatmul.mubr.f32.vlgmr.msra.gmra.mxu0 %v12366_v20  ;;  %26768 = vmatmul.mubr.f32.vlgmr.msra.gmra.mxu1 %v28854_v4 }
 0x549   :  { %v11172_v53 = vadd.f32 %v26636_v61, %v11089_v41  ;;  %v11081_v9 = vadd.f32 %v11080_v15, %v10999_v62  ;;  %26777 = vmatprep.subr.mxu1 %v27930_v40  ;;  %26743 = vmatpush3.msra.mxu0 %v27845_v16 }
 0x54a   :  { %v11165_v1 = vpop.f32.mrf.mxu0  ;;  %26746 = vmatprep.mubr.f32.mxu0 %v12353_v6  ;;  %26778 = vmatpush3.msra.mxu1 %v27930_v40 }
 0x54b   :  { %v11251_v10 = vadd.f32 %v26643_v25, %v11172_v53  ;;  %v11166_v50 = vadd.f32 %v11165_v1, %v11081_v9  ;;  %26744 = vmatprep.subr.mxu0 %v27848_v17  ;;  %26779 = vmatprep.subr.mxu1 %v27937_v42 }
 0x54c   :  { %26745 = vmatpush3.msra.mxu0 %v27848_v17  ;;  %26780 = vmatpush3.msra.mxu1 %v27937_v42 }
 0x54d   :  { %v26657_v39 = vpop.f32.mrf.mxu1  ;;  %12274 = vst.msk [vmem:[#allocation5 + $0x198] sm:$0xff] %vm42_vm0, %v11251_v10  ;;  %v12791_v13 = vsel %vm42_vm0, %v11251_v10, 0  ;;  %v11245_v18 = vadd.f32 %v11244_v7, %v11166_v50  ;;  %26747 = vmatmul.mubr.f32.vlgmr.msra.gmra.mxu0 %v12363_v37  ;;  %26756 = vmatprep.subr.mxu0 %v27858_v21 }
 0x54e   :  { %v28878_v5 = vand.u32 4294901760, %v12791_v13  ;;  %26791 = vmatprep.subr.mxu1 %v27873_v28  ;;  %26757 = vmatpush3.msra.mxu0 %v27858_v21 }
 0x54f   :  { %v11424_v8 = vpop.f32.mrf.mxu1  ;;  %12273 = vst.msk [vmem:[#allocation5 + $0x190] sm:$0xff] %vm42_vm0, %v11245_v18  ;;  %v12788_v6 = vsel %vm42_vm0, %v11245_v18, 0  ;;  %26760 = vmatprep.mubr.f32.mxu0 %v12352_v14  ;;  %26758 = vmatprep.subr.mxu0 %v27861_v22 }
 0x550   :  { %v12871_v27 = vsub.f32 %v12791_v13, %v28878_v5  ;;  %v12860_v15 = vand.u32 4294901760, %v12788_v6  ;;  %26759 = vmatpush3.msra.mxu0 %v27861_v22 }
 0x551   :  { %v26671_v37 = vpop.f32.mrf.mxu1  ;;  %26761 = vmatmul.mubr.f32.vlgmr.msra.gmra.mxu0 %v28854_v4  ;;  %26770 = vmatprep.subr.mxu0 %v27873_v28 }
 0x552   :  { %v12872_v51 = vand.u32 4294901760, %v12871_v27  ;;  %v12861_v2 = vsub.f32 %v12788_v6, %v12860_v15  ;;  %26781 = vmatprep.mubr.f32.mxu1 %v12860_v15  ;;  %26771 = vmatpush3.msra.mxu0 %v27873_v28 }
 0x553   :  { %v11588_v24 = vpop.f32.mrf.mxu1  ;;  %26782 = vmatmul.mubr.f32.vlgmr.msra.gmra.mxu1 %v28878_v5  ;;  %26772 = vmatprep.subr.mxu0 %v27882_v32 }
 0x554   :  { %26792 = vmatpush3.msra.mxu1 %v27873_v28  ;;  %v12862_v14 = vand.u32 4294901760, %v12861_v2  ;;  %26773 = vmatpush3.msra.mxu0 %v27882_v32  ;;  %v12873_v3 = vsub.f32 %v12871_v27, %v12872_v51 }
 0x555   :  { %v26650_v26 = vpop.f32.mrf.mxu0  ;;  %26793 = vmatprep.subr.mxu1 %v27882_v32  ;;  %26784 = vmatprep.subr.mxu0 %v27888_v33  ;;  %v26685_v29 = vpop.f32.mrf.mxu1 }
 0x556   :  { %26794 = vmatpush3.msra.mxu1 %v27882_v32  ;;  %26795 = vmatprep.mubr.f32.mxu1 %v12862_v14  ;;  %v12863_v4 = vsub.f32 %v12861_v2, %v12862_v14  ;;  %v12874_v23 = vand.u32 4294901760, %v12873_v3  ;;  %v11431_v19 = vadd.f32 %v26657_v39, %v26650_v26 }
 0x557   :  { %v11333_v25 = vpop.f32.mrf.mxu0  ;;  %26796 = vmatmul.mubr.f32.vlgmr.msra.gmra.mxu1 %v12872_v51  ;;  %26805 = vmatprep.subr.mxu1 %v27873_v28  ;;  %v11752_v62 = vpop.f32.mrf.mxu1 }
 0x558   :  { %26806 = vmatpush3.msra.mxu1 %v27873_v28  ;;  %26809 = vmatprep.mubr.f32.mxu1 %v12860_v15  ;;  %v12864_v38 = vand.u32 4294901760, %v12863_v4  ;;  %v11425_v49 = vadd.f32 %v11424_v8, %v11333_v25 }
 0x559   :  { %26807 = vmatprep.subr.mxu1 %v27882_v32 }
 0x55a   :  { %v26664_v20 = vpop.f32.mrf.mxu0  ;;  %26774 = vmatprep.mubr.f32.mxu0 %v12864_v38  ;;  %26808 = vmatpush3.msra.mxu1 %v27882_v32 }
 0x55b   :  { %v11514_v41 = vadd.f32 %v26664_v20, %v11431_v19  ;;  %26775 = vmatmul.mubr.f32.vlgmr.msra.gmra.mxu0 %v12874_v23  ;;  %26810 = vmatmul.mubr.f32.vlgmr.msra.gmra.mxu1 %v28878_v5 }
 0x55c   :  { %v11506_v61 = vpop.f32.mrf.mxu0  ;;  %26819 = vmatprep.subr.mxu1 %v27996_v52  ;;  %26785 = vmatpush3.msra.mxu0 %v27888_v33 }
 0x55d   :  { %v11507_v7 = vadd.f32 %v11506_v61, %v11425_v49  ;;  %v11597_v53 = vadd.f32 %v26671_v37, %v11514_v41  ;;  %26788 = vmatprep.mubr.f32.mxu0 %v12861_v2  ;;  %26820 = vmatpush3.msra.mxu1 %v27996_v52  ;;  %v26699_v9 = vpop.f32.mrf.mxu1 }
 0x55e   :  { %26786 = vmatprep.subr.mxu0 %v27895_v34  ;;  %26821 = vmatprep.subr.mxu1 %v28003_v54 }
 0x55f   :  { %v26678_v1 = vpop.f32.mrf.mxu0  ;;  %v11589_v10 = vadd.f32 %v11588_v24, %v11507_v7  ;;  %26787 = vmatpush3.msra.mxu0 %v27895_v34  ;;  %26822 = vmatpush3.msra.mxu1 %v28003_v54  ;;  %v11932_v8 = vpop.f32.mrf.mxu1 }
 0x560   :  { %v11680_v50 = vadd.f32 %v26678_v1, %v11597_v53  ;;  %26789 = vmatmul.mubr.f32.vlgmr.msra.gmra.mxu0 %v12871_v27  ;;  %26798 = vmatprep.subr.mxu0 %v27903_v35 }
 0x561   :  { %v11673_v39 = vpop.f32.mrf.mxu0  ;;  %26833 = vmatprep.subr.mxu1 %v27939_v43  ;;  %26799 = vmatpush3.msra.mxu0 %v27903_v35  ;;  %v26713_v24 = vpop.f32.mrf.mxu1 }
 0x562   :  { %v11759_v13 = vadd.f32 %v26685_v29, %v11680_v50  ;;  %v11674_v18 = vadd.f32 %v11673_v39, %v11589_v10  ;;  %26802 = vmatprep.mubr.f32.mxu0 %v12860_v15  ;;  %26800 = vmatprep.subr.mxu0 %v27910_v36 }
 0x563   :  { %26801 = vmatpush3.msra.mxu0 %v27910_v36  ;;  %v12096_v29 = vpop.f32.mrf.mxu1 }
 0x564   :  { %12276 = vst.msk [vmem:[#allocation5 + $0x1a8] sm:$0xff] %vm42_vm0, %v11759_v13  ;;  %v13299_v6 = vsel %vm42_vm0, %v11759_v13, 0  ;;  %v11753_v27 = vadd.f32 %v11752_v62, %v11674_v18  ;;  %26803 = vmatmul.mubr.f32.vlgmr.msra.gmra.mxu0 %v28878_v5  ;;  %26812 = vmatprep.subr.mxu0 %v27939_v43 }
 0x565   :  { %v28918_v37 = vand.u32 4294901760, %v13299_v6  ;;  %26813 = vmatpush3.msra.mxu0 %v27939_v43 }
 0x566   :  { %12275 = vst.msk [vmem:[#allocation5 + $0x1a0] sm:$0xff] %vm42_vm0, %v11753_v27  ;;  %v13296_v15 = vsel %vm42_vm0, %v11753_v27, 0  ;;  %v26692_v51 = vpop.f32.mrf.mxu0  ;;  %26814 = vmatprep.subr.mxu0 %v27946_v44 }
 0x567   :  { %v13379_v2 = vsub.f32 %v13299_v6, %v28918_v37  ;;  %v28925_v14 = vand.u32 4294901760, %v13296_v15  ;;  %26815 = vmatpush3.msra.mxu0 %v27946_v44  ;;  %v11939_v4 = vadd.f32 %v26699_v9, %v26692_v51  ;;  %v26727_v7 = vpop.f32.mrf.mxu1 }
 0x568   :  { %v11841_v5 = vpop.f32.mrf.mxu0  ;;  %26826 = vmatprep.subr.mxu0 %v27953_v45 }
 0x569   :  { %v13380_v3 = vand.u32 4294901760, %v13379_v2  ;;  %v13369_v26 = vsub.f32 %v13296_v15, %v28925_v14  ;;  %26823 = vmatprep.mubr.f32.mxu1 %v28925_v14  ;;  %v11933_v19 = vadd.f32 %v11932_v8, %v11841_v5  ;;  %v12260_v8 = vpop.f32.mrf.mxu1 }
 0x56a   :  { %26824 = vmatmul.mubr.f32.vlgmr.msra.gmra.mxu1 %v28918_v37 }
 0x56b   :  { %v26706_v25 = vpop.f32.mrf.mxu0  ;;  %26834 = vmatpush3.msra.mxu1 %v27939_v43  ;;  %v13370_v38 = vand.u32 4294901760, %v13369_v26  ;;  %v13381_v23 = vsub.f32 %v13379_v2, %v13380_v3 }
 0x56c   :  { %v12022_v20 = vadd.f32 %v26706_v25, %v11939_v4  ;;  %26835 = vmatprep.subr.mxu1 %v27946_v44 }
 0x56d   :  { %v12014_v49 = vpop.f32.mrf.mxu0  ;;  %26836 = vmatpush3.msra.mxu1 %v27946_v44  ;;  %26837 = vmatprep.mubr.f32.mxu1 %v13370_v38  ;;  %v13371_v62 = vsub.f32 %v13369_v26, %v13370_v38  ;;  %v13382_v1 = vand.u32 4294901760, %v13381_v23 }
 0x56e   :  { %v12015_v41 = vadd.f32 %v12014_v49, %v11933_v19  ;;  %v12105_v61 = vadd.f32 %v26713_v24, %v12022_v20  ;;  %26838 = vmatmul.mubr.f32.vlgmr.msra.gmra.mxu1 %v13380_v3  ;;  %26847 = vmatprep.subr.mxu1 %v27939_v43 }
 0x56f   :  { %v26720_v53 = vpop.f32.mrf.mxu0  ;;  %26848 = vmatpush3.msra.mxu1 %v27939_v43  ;;  %26851 = vmatprep.mubr.f32.mxu1 %v28925_v14  ;;  %v13372_v9 = vand.u32 4294901760, %v13371_v62 }
 0x570   :  { %v12188_v10 = vadd.f32 %v26720_v53, %v12105_v61  ;;  %v12097_v50 = vadd.f32 %v12096_v29, %v12015_v41  ;;  %26849 = vmatprep.subr.mxu1 %v27946_v44 }
 0x571   :  { %v12181_v39 = vpop.f32.mrf.mxu0  ;;  %26816 = vmatprep.mubr.f32.mxu0 %v13372_v9  ;;  %26850 = vmatpush3.msra.mxu1 %v27946_v44 }
 0x572   :  { %v12267_v13 = vadd.f32 %v26727_v7, %v12188_v10  ;;  %v12182_v18 = vadd.f32 %v12181_v39, %v12097_v50  ;;  %26817 = vmatmul.mubr.f32.vlgmr.msra.gmra.mxu0 %v13382_v1  ;;  %26852 = vmatmul.mubr.f32.vlgmr.msra.gmra.mxu1 %v28918_v37 }
 0x573   :  { %26861 = vmatprep.subr.mxu1 %v28062_v63  ;;  %26827 = vmatpush3.msra.mxu0 %v27953_v45 }
 0x574   :  { %12278 = vst.msk [vmem:[#allocation5 + $0x1b8] sm:$0xff] %vm42_vm0, %v12267_v13  ;;  %v13807_v6 = vsel %vm42_vm0, %v12267_v13, 0  ;;  %v12261_v27 = vadd.f32 %v12260_v8, %v12182_v18  ;;  %26830 = vmatprep.mubr.f32.mxu0 %v13369_v26  ;;  %26862 = vmatpush3.msra.mxu1 %v28062_v63 }
 0x575   :  { %v13886_v15 = vand.u32 4294901760, %v13807_v6  ;;  %26828 = vmatprep.subr.mxu0 %v27961_v46  ;;  %26863 = vmatprep.subr.mxu1 %v28069_v0 }
 0x576   :  { %12277 = vst.msk [vmem:[#allocation5 + $0x1b0] sm:$0xff] %vm42_vm0, %v12261_v27  ;;  %v13804_v51 = vsel %vm42_vm0, %v12261_v27, 0  ;;  %26829 = vmatpush3.msra.mxu0 %v27961_v46  ;;  %26864 = vmatpush3.msra.mxu1 %v28069_v0 }
 0x577   :  { %v13887_v24 = vsub.f32 %v13807_v6, %v13886_v15  ;;  %v13876_v5 = vand.u32 4294901760, %v13804_v51  ;;  %26831 = vmatmul.mubr.f32.vlgmr.msra.gmra.mxu0 %v13379_v2  ;;  %26840 = vmatprep.subr.mxu0 %v27969_v47 }
 0x578   :  { %26875 = vmatprep.subr.mxu1 %v28005_v55  ;;  %26841 = vmatpush3.msra.mxu0 %v27969_v47 }
 0x579   :  { %v13888_v3 = vand.u32 4294901760, %v13887_v24  ;;  %v13877_v26 = vsub.f32 %v13804_v51, %v13876_v5  ;;  %26865 = vmatprep.mubr.f32.mxu1 %v13876_v5  ;;  %26844 = vmatprep.mubr.f32.mxu0 %v28925_v14 }
 0x57a   :  { %26866 = vmatmul.mubr.f32.vlgmr.msra.gmra.mxu1 %v13886_v15  ;;  %26842 = vmatprep.subr.mxu0 %v27976_v48 }
 0x57b   :  { %26876 = vmatpush3.msra.mxu1 %v28005_v55  ;;  %26843 = vmatpush3.msra.mxu0 %v27976_v48  ;;  %v13878_v4 = vand.u32 4294901760, %v13877_v26  ;;  %v13889_v2 = vsub.f32 %v13887_v24, %v13888_v3 }
 0x57c   :  { %26877 = vmatprep.subr.mxu1 %v28012_v56  ;;  %26845 = vmatmul.mubr.f32.vlgmr.msra.gmra.mxu0 %v28918_v37 }
 0x57d   :  { %26878 = vmatpush3.msra.mxu1 %v28012_v56  ;;  %26879 = vmatprep.mubr.f32.mxu1 %v13878_v4  ;;  %v13879_v29 = vsub.f32 %v13877_v26, %v13878_v4  ;;  %v13890_v25 = vand.u32 4294901760, %v13889_v2 }
 0x57e   :  { %26854 = vmatprep.subr.mxu0 %v28005_v55  ;;  %26880 = vmatmul.mubr.f32.vlgmr.msra.gmra.mxu1 %v13888_v3 }
 0x57f   :  { %26889 = vmatprep.subr.mxu1 %v28005_v55  ;;  %26855 = vmatpush3.msra.mxu0 %v28005_v55  ;;  %v13880_v14 = vand.u32 4294901760, %v13879_v29 }
 0x580   :  { %26890 = vmatpush3.msra.mxu1 %v28005_v55  ;;  %26893 = vmatprep.mubr.f32.mxu1 %v13876_v5 }
 0x581   :  { %26856 = vmatprep.subr.mxu0 %v28012_v56  ;;  %26891 = vmatprep.subr.mxu1 %v28012_v56 }
 0x582   :  { %26857 = vmatpush3.msra.mxu0 %v28012_v56  ;;  %26858 = vmatprep.mubr.f32.mxu0 %v13880_v14 }
 0x583   :  { %26892 = vmatpush3.msra.mxu1 %v28012_v56  ;;  %26859 = vmatmul.mubr.f32.vlgmr.msra.gmra.mxu0 %v13890_v25 }
 0x584   :  { %26868 = vmatprep.subr.mxu0 %v28019_v57  ;;  %26894 = vmatmul.mubr.f32.vlgmr.msra.gmra.mxu1 %v13886_v15 }
 0x585   :  { %26869 = vmatpush3.msra.mxu0 %v28019_v57  ;;  %26872 = vmatprep.mubr.f32.mxu0 %v13877_v26 }
 0x586   :  { %26870 = vmatprep.subr.mxu0 %v28027_v58  ;;  %26903 = vmatprep.subr.mxu1 %v27878_v30 }
 0x587   :  { %26871 = vmatpush3.msra.mxu0 %v28027_v58  ;;  %26904 = vmatpush3.msra.mxu1 %v27878_v30 }
 0x588   :  { %26873 = vmatmul.mubr.f32.vlgmr.msra.gmra.mxu0 %v13887_v24  ;;  %26882 = vmatprep.subr.mxu0 %v28035_v59 }
 0x589   :  { %26883 = vmatpush3.msra.mxu0 %v28035_v59  ;;  %26886 = vmatprep.mubr.f32.mxu0 %v13876_v5 }
 0x58a   :  { %26884 = vmatprep.subr.mxu0 %v28042_v60  ;;  %26905 = vmatprep.subr.mxu1 %v27880_v31 }
 0x58b   :  { %26885 = vmatpush3.msra.mxu0 %v28042_v60  ;;  %26906 = vmatpush3.msra.mxu1 %v27880_v31 }
 0x58c   :  { %26887 = vmatmul.mubr.f32.vlgmr.msra.gmra.mxu0 %v13886_v15  ;;  %26917 = vmatprep.subr.mxu1 %v27824_v11 }
 0x58d   :  { %26896 = vmatprep.subr.mxu0 %v27824_v11 }
 0x58e   :  { %26897 = vmatpush3.msra.mxu0 %v27824_v11 }
 0x58f   :  { %26898 = vmatprep.subr.mxu0 %v27826_v12 }
 0x590   :  { %26899 = vmatpush3.msra.mxu0 %v27826_v12 }
 0x591   :  { %26910 = vmatprep.subr.mxu0 %v27845_v16 }
 0x600   :  { %v26741_v37 = vpop.f32.mrf.mxu1 }
 0x602   :  { %v12449_v38 = vpop.f32.mrf.mxu1 }
 0x604   :  { %v26755_v23 = vpop.f32.mrf.mxu1 }
 0x606   :  { %v12613_v19 = vpop.f32.mrf.mxu1 }
 0x608   :  { %v26734_v20 = vpop.f32.mrf.mxu0  ;;  %v26769_v62 = vpop.f32.mrf.mxu1 }
 0x609   :  { %v12456_v41 = vadd.f32 %v26741_v37, %v26734_v20 }
 0x60a   :  { %v12358_v49 = vpop.f32.mrf.mxu0  ;;  %v12777_v9 = vpop.f32.mrf.mxu1 }
 0x60b   :  { %v12450_v7 = vadd.f32 %v12449_v38, %v12358_v49 }
 0x60d   :  { %v26748_v61 = vpop.f32.mrf.mxu0 }
 0x60e   :  { %v12539_v53 = vadd.f32 %v26748_v61, %v12456_v41 }
 0x60f   :  { %v12531_v1 = vpop.f32.mrf.mxu0 }
 0x610   :  { %v12532_v10 = vadd.f32 %v12531_v1, %v12450_v7  ;;  %v12622_v50 = vadd.f32 %v26755_v23, %v12539_v53 }
 0x611   :  { %v26762_v39 = vpop.f32.mrf.mxu0 }
 0x612   :  { %v12705_v13 = vadd.f32 %v26762_v39, %v12622_v50  ;;  %v12614_v18 = vadd.f32 %v12613_v19, %v12532_v10 }
 0x613   :  { %v26783_v8 = vpop.f32.mrf.mxu1  ;;  %v12698_v6 = vpop.f32.mrf.mxu0 }
 0x614   :  { %v12784_v27 = vadd.f32 %v26769_v62, %v12705_v13  ;;  %v12699_v15 = vadd.f32 %v12698_v6, %v12614_v18 }
 0x615   :  { %v12957_v51 = vpop.f32.mrf.mxu1 }
 0x616   :  { %14313 = vst.msk [vmem:[#allocation5 + $0x1c8] sm:$0xff] %vm42_vm0, %v12784_v27  ;;  %v14324_v24 = vsel %vm42_vm0, %v12784_v27, 0  ;;  %v12778_v5 = vadd.f32 %v12777_v9, %v12699_v15 }
 0x617   :  { %v28990_v3 = vand.u32 4294901760, %v14324_v24  ;;  %v26797_v29 = vpop.f32.mrf.mxu1 }
 0x618   :  { %14312 = vst.msk [vmem:[#allocation5 + $0x1c0] sm:$0xff] %vm42_vm0, %v12778_v5  ;;  %v14321_v26 = vsel %vm42_vm0, %v12778_v5, 0 }
 0x619   :  { %v14404_v4 = vsub.f32 %v14324_v24, %v28990_v3  ;;  %v14393_v2 = vand.u32 4294901760, %v14321_v26  ;;  %v13121_v20 = vpop.f32.mrf.mxu1 }
 0x61b   :  { %v14405_v14 = vand.u32 4294901760, %v14404_v4  ;;  %v14394_v25 = vsub.f32 %v14321_v26, %v14393_v2  ;;  %v26776_v37 = vpop.f32.mrf.mxu0  ;;  %26907 = vmatprep.mubr.f32.mxu1 %v14393_v2  ;;  %v26811_v1 = vpop.f32.mrf.mxu1 }
 0x61c   :  { %26908 = vmatmul.mubr.f32.vlgmr.msra.gmra.mxu1 %v28990_v3  ;;  %v12964_v49 = vadd.f32 %v26783_v8, %v26776_v37 }
 0x61d   :  { %v12866_v38 = vpop.f32.mrf.mxu0  ;;  %26918 = vmatpush3.msra.mxu1 %v27824_v11  ;;  %v14395_v23 = vand.u32 4294901760, %v14394_v25  ;;  %v14406_v19 = vsub.f32 %v14404_v4, %v14405_v14  ;;  %v13285_v6 = vpop.f32.mrf.mxu1 }
 0x61e   :  { %26919 = vmatprep.subr.mxu1 %v27826_v12  ;;  %v12958_v61 = vadd.f32 %v12957_v51, %v12866_v38 }
 0x61f   :  { %26920 = vmatpush3.msra.mxu1 %v27826_v12  ;;  %26921 = vmatprep.mubr.f32.mxu1 %v14395_v23  ;;  %v14396_v62 = vsub.f32 %v14394_v25, %v14395_v23  ;;  %v14407_v9 = vand.u32 4294901760, %v14406_v19 }
 0x620   :  { %v26790_v41 = vpop.f32.mrf.mxu0  ;;  %26922 = vmatmul.mubr.f32.vlgmr.msra.gmra.mxu1 %v14405_v14  ;;  %26931 = vmatprep.subr.mxu1 %v27824_v11 }
 0x621   :  { %v13047_v7 = vadd.f32 %v26790_v41, %v12964_v49  ;;  %26932 = vmatpush3.msra.mxu1 %v27824_v11  ;;  %26935 = vmatprep.mubr.f32.mxu1 %v14393_v2  ;;  %v14397_v53 = vand.u32 4294901760, %v14396_v62 }
 0x622   :  { %v13039_v10 = vpop.f32.mrf.mxu0  ;;  %26933 = vmatprep.subr.mxu1 %v27826_v12 }
 0x623   :  { %v13040_v50 = vadd.f32 %v13039_v10, %v12958_v61  ;;  %v13130_v39 = vadd.f32 %v26797_v29, %v13047_v7  ;;  %26900 = vmatprep.mubr.f32.mxu0 %v14397_v53  ;;  %26934 = vmatpush3.msra.mxu1 %v27826_v12 }
 0x624   :  { %v26804_v13 = vpop.f32.mrf.mxu0  ;;  %26901 = vmatmul.mubr.f32.vlgmr.msra.gmra.mxu0 %v14407_v9  ;;  %26936 = vmatmul.mubr.f32.vlgmr.msra.gmra.mxu1 %v28990_v3 }
 0x625   :  { %v13213_v18 = vadd.f32 %v26804_v13, %v13130_v39  ;;  %v13122_v8 = vadd.f32 %v13121_v20, %v13040_v50  ;;  %26945 = vmatprep.subr.mxu1 %v27930_v40  ;;  %26911 = vmatpush3.msra.mxu0 %v27845_v16 }
 0x626   :  { %v13206_v27 = vpop.f32.mrf.mxu0  ;;  %26914 = vmatprep.mubr.f32.mxu0 %v14394_v25  ;;  %26946 = vmatpush3.msra.mxu1 %v27930_v40 }
 0x627   :  { %v13292_v15 = vadd.f32 %v26811_v1, %v13213_v18  ;;  %v13207_v51 = vadd.f32 %v13206_v27, %v13122_v8  ;;  %26912 = vmatprep.subr.mxu0 %v27848_v17  ;;  %26947 = vmatprep.subr.mxu1 %v27937_v42 }
 0x628   :  { %26913 = vmatpush3.msra.mxu0 %v27848_v17  ;;  %26948 = vmatpush3.msra.mxu1 %v27937_v42 }
 0x629   :  { %14315 = vst.msk [vmem:[#allocation5 + $0x1d8] sm:$0xff] %vm42_vm0, %v13292_v15  ;;  %v14832_v24 = vsel %vm42_vm0, %v13292_v15, 0  ;;  %v13286_v5 = vadd.f32 %v13285_v6, %v13207_v51  ;;  %26915 = vmatmul.mubr.f32.vlgmr.msra.gmra.mxu0 %v14404_v4  ;;  %26924 = vmatprep.subr.mxu0 %v27858_v21 }
 0x62a   :  { %v26825_v26 = vpop.f32.mrf.mxu1  ;;  %v29014_v29 = vand.u32 4294901760, %v14832_v24  ;;  %26959 = vmatprep.subr.mxu1 %v27873_v28  ;;  %26925 = vmatpush3.msra.mxu0 %v27858_v21 }
 0x62b   :  { %14314 = vst.msk [vmem:[#allocation5 + $0x1d0] sm:$0xff] %vm42_vm0, %v13286_v5  ;;  %v14829_v14 = vsel %vm42_vm0, %v13286_v5, 0  ;;  %26928 = vmatprep.mubr.f32.mxu0 %v14393_v2  ;;  %26926 = vmatprep.subr.mxu0 %v27861_v22 }
 0x62c   :  { %v13465_v25 = vpop.f32.mrf.mxu1  ;;  %v14912_v37 = vsub.f32 %v14832_v24, %v29014_v29  ;;  %v14901_v4 = vand.u32 4294901760, %v14829_v14  ;;  %26927 = vmatpush3.msra.mxu0 %v27861_v22 }
 0x62d   :  { %26929 = vmatmul.mubr.f32.vlgmr.msra.gmra.mxu0 %v28990_v3  ;;  %26938 = vmatprep.subr.mxu0 %v27873_v28 }
 0x62e   :  { %v14913_v38 = vand.u32 4294901760, %v14912_v37  ;;  %v26839_v23 = vpop.f32.mrf.mxu1  ;;  %v14902_v19 = vsub.f32 %v14829_v14, %v14901_v4  ;;  %26949 = vmatprep.mubr.f32.mxu1 %v14901_v4  ;;  %26939 = vmatpush3.msra.mxu0 %v27873_v28 }
 0x62f   :  { %26950 = vmatmul.mubr.f32.vlgmr.msra.gmra.mxu1 %v29014_v29  ;;  %26940 = vmatprep.subr.mxu0 %v27882_v32 }
 0x630   :  { %v13629_v2 = vpop.f32.mrf.mxu1  ;;  %26960 = vmatpush3.msra.mxu1 %v27873_v28  ;;  %v14903_v20 = vand.u32 4294901760, %v14902_v19  ;;  %26941 = vmatpush3.msra.mxu0 %v27882_v32  ;;  %v14914_v49 = vsub.f32 %v14912_v37, %v14913_v38 }
 0x631   :  { %26961 = vmatprep.subr.mxu1 %v27882_v32  ;;  %26952 = vmatprep.subr.mxu0 %v27888_v33 }
 0x632   :  { %v26818_v3 = vpop.f32.mrf.mxu0  ;;  %26962 = vmatpush3.msra.mxu1 %v27882_v32  ;;  %26963 = vmatprep.mubr.f32.mxu1 %v14903_v20  ;;  %v14904_v62 = vsub.f32 %v14902_v19, %v14903_v20  ;;  %v26853_v41 = vpop.f32.mrf.mxu1  ;;  %v14915_v53 = vand.u32 4294901760, %v14914_v49 }
 0x633   :  { %26964 = vmatmul.mubr.f32.vlgmr.msra.gmra.mxu1 %v14913_v38  ;;  %26973 = vmatprep.subr.mxu1 %v27873_v28  ;;  %v13472_v9 = vadd.f32 %v26825_v26, %v26818_v3 }
 0x634   :  { %v13374_v61 = vpop.f32.mrf.mxu0  ;;  %26974 = vmatpush3.msra.mxu1 %v27873_v28  ;;  %26977 = vmatprep.mubr.f32.mxu1 %v14901_v4  ;;  %v14905_v7 = vand.u32 4294901760, %v14904_v62  ;;  %v13793_v50 = vpop.f32.mrf.mxu1 }
 0x635   :  { %26975 = vmatprep.subr.mxu1 %v27882_v32  ;;  %v13466_v10 = vadd.f32 %v13465_v25, %v13374_v61 }
 0x636   :  { %26942 = vmatprep.mubr.f32.mxu0 %v14905_v7  ;;  %26976 = vmatpush3.msra.mxu1 %v27882_v32 }
 0x637   :  { %v26832_v1 = vpop.f32.mrf.mxu0  ;;  %26943 = vmatmul.mubr.f32.vlgmr.msra.gmra.mxu0 %v14915_v53  ;;  %26978 = vmatmul.mubr.f32.vlgmr.msra.gmra.mxu1 %v29014_v29 }
 0x638   :  { %v13555_v39 = vadd.f32 %v26832_v1, %v13472_v9  ;;  %26987 = vmatprep.subr.mxu1 %v27996_v52  ;;  %26953 = vmatpush3.msra.mxu0 %v27888_v33 }
 0x639   :  { %v13547_v13 = vpop.f32.mrf.mxu0  ;;  %26956 = vmatprep.mubr.f32.mxu0 %v14902_v19  ;;  %26988 = vmatpush3.msra.mxu1 %v27996_v52 }
 0x63a   :  { %v13548_v18 = vadd.f32 %v13547_v13, %v13466_v10  ;;  %v13638_v8 = vadd.f32 %v26839_v23, %v13555_v39  ;;  %26954 = vmatprep.subr.mxu0 %v27895_v34  ;;  %26989 = vmatprep.subr.mxu1 %v28003_v54  ;;  %v26867_v6 = vpop.f32.mrf.mxu1 }
 0x63b   :  { %26955 = vmatpush3.msra.mxu0 %v27895_v34  ;;  %26990 = vmatpush3.msra.mxu1 %v28003_v54 }
 0x63c   :  { %v26846_v27 = vpop.f32.mrf.mxu0  ;;  %v13630_v15 = vadd.f32 %v13629_v2, %v13548_v18  ;;  %26957 = vmatmul.mubr.f32.vlgmr.msra.gmra.mxu0 %v14912_v37  ;;  %26966 = vmatprep.subr.mxu0 %v27903_v35  ;;  %v13973_v14 = vpop.f32.mrf.mxu1 }
 0x63d   :  { %v13721_v51 = vadd.f32 %v26846_v27, %v13638_v8  ;;  %27001 = vmatprep.subr.mxu1 %v27939_v43  ;;  %26967 = vmatpush3.msra.mxu0 %v27903_v35 }
 0x63e   :  { %v13714_v24 = vpop.f32.mrf.mxu0  ;;  %26970 = vmatprep.mubr.f32.mxu0 %v14901_v4  ;;  %26968 = vmatprep.subr.mxu0 %v27910_v36  ;;  %v26881_v19 = vpop.f32.mrf.mxu1 }
 0x63f   :  { %v13800_v5 = vadd.f32 %v26853_v41, %v13721_v51  ;;  %v13715_v26 = vadd.f32 %v13714_v24, %v13630_v15  ;;  %26969 = vmatpush3.msra.mxu0 %v27910_v36 }
 0x640   :  { %26971 = vmatmul.mubr.f32.vlgmr.msra.gmra.mxu0 %v29014_v29  ;;  %26980 = vmatprep.subr.mxu0 %v27939_v43  ;;  %v14137_v41 = vpop.f32.mrf.mxu1 }
 0x641   :  { %14317 = vst.msk [vmem:[#allocation5 + $0x1e8] sm:$0xff] %vm42_vm0, %v13800_v5  ;;  %v15340_v25 = vsel %vm42_vm0, %v13800_v5, 0  ;;  %v13794_v37 = vadd.f32 %v13793_v50, %v13715_v26  ;;  %26981 = vmatpush3.msra.mxu0 %v27939_v43 }
 0x642   :  { %v29055_v38 = vand.u32 4294901760, %v15340_v25  ;;  %26982 = vmatprep.subr.mxu0 %v27946_v44 }
 0x643   :  { %14316 = vst.msk [vmem:[#allocation5 + $0x1e0] sm:$0xff] %vm42_vm0, %v13794_v37  ;;  %v15337_v4 = vsel %vm42_vm0, %v13794_v37, 0  ;;  %v26860_v23 = vpop.f32.mrf.mxu0  ;;  %26983 = vmatpush3.msra.mxu0 %v27946_v44 }
 0x644   :  { %v15420_v29 = vsub.f32 %v15340_v25, %v29055_v38  ;;  %v29062_v2 = vand.u32 4294901760, %v15337_v4  ;;  %26994 = vmatprep.subr.mxu0 %v27953_v45  ;;  %v13980_v62 = vadd.f32 %v26867_v6, %v26860_v23  ;;  %v26895_v18 = vpop.f32.mrf.mxu1 }
 0x645   :  { %v13882_v20 = vpop.f32.mrf.mxu0 }
 0x646   :  { %v15421_v49 = vand.u32 4294901760, %v15420_v29  ;;  %v15410_v3 = vsub.f32 %v15337_v4, %v29062_v2  ;;  %26991 = vmatprep.mubr.f32.mxu1 %v29062_v2  ;;  %v13974_v9 = vadd.f32 %v13973_v14, %v13882_v20  ;;  %v14301_v14 = vpop.f32.mrf.mxu1 }
 0x647   :  { %26992 = vmatmul.mubr.f32.vlgmr.msra.gmra.mxu1 %v29055_v38 }
 0x648   :  { %v26874_v61 = vpop.f32.mrf.mxu0  ;;  %27002 = vmatpush3.msra.mxu1 %v27939_v43  ;;  %v15411_v7 = vand.u32 4294901760, %v15410_v3  ;;  %v15422_v53 = vsub.f32 %v15420_v29, %v15421_v49 }
 0x649   :  { %v14063_v1 = vadd.f32 %v26874_v61, %v13980_v62  ;;  %27003 = vmatprep.subr.mxu1 %v27946_v44 }
 0x64a   :  { %v14055_v10 = vpop.f32.mrf.mxu0  ;;  %27004 = vmatpush3.msra.mxu1 %v27946_v44  ;;  %27005 = vmatprep.mubr.f32.mxu1 %v15411_v7  ;;  %v15412_v50 = vsub.f32 %v15410_v3, %v15411_v7  ;;  %v15423_v27 = vand.u32 4294901760, %v15422_v53 }
 0x64b   :  { %v14056_v39 = vadd.f32 %v14055_v10, %v13974_v9  ;;  %v14146_v13 = vadd.f32 %v26881_v19, %v14063_v1  ;;  %27006 = vmatmul.mubr.f32.vlgmr.msra.gmra.mxu1 %v15421_v49  ;;  %27015 = vmatprep.subr.mxu1 %v27939_v43 }
 0x64c   :  { %v26888_v8 = vpop.f32.mrf.mxu0  ;;  %27016 = vmatpush3.msra.mxu1 %v27939_v43  ;;  %27019 = vmatprep.mubr.f32.mxu1 %v29062_v2  ;;  %v15413_v6 = vand.u32 4294901760, %v15412_v50 }
 0x64d   :  { %v14229_v15 = vadd.f32 %v26888_v8, %v14146_v13  ;;  %v14138_v51 = vadd.f32 %v14137_v41, %v14056_v39  ;;  %27017 = vmatprep.subr.mxu1 %v27946_v44 }
 0x64e   :  { %v14222_v24 = vpop.f32.mrf.mxu0  ;;  %26984 = vmatprep.mubr.f32.mxu0 %v15413_v6  ;;  %27018 = vmatpush3.msra.mxu1 %v27946_v44 }
 0x64f   :  { %v14308_v5 = vadd.f32 %v26895_v18, %v14229_v15  ;;  %v14223_v26 = vadd.f32 %v14222_v24, %v14138_v51  ;;  %26985 = vmatmul.mubr.f32.vlgmr.msra.gmra.mxu0 %v15423_v27  ;;  %27020 = vmatmul.mubr.f32.vlgmr.msra.gmra.mxu1 %v29055_v38 }
 0x650   :  { %27029 = vmatprep.subr.mxu1 %v28062_v63  ;;  %26995 = vmatpush3.msra.mxu0 %v27953_v45 }
 0x651   :  { %14319 = vst.msk [vmem:[#allocation5 + $0x1f8] sm:$0xff] %vm42_vm0, %v14308_v5  ;;  %v15848_v25 = vsel %vm42_vm0, %v14308_v5, 0  ;;  %v14302_v37 = vadd.f32 %v14301_v14, %v14223_v26  ;;  %26998 = vmatprep.mubr.f32.mxu0 %v15410_v3  ;;  %27030 = vmatpush3.msra.mxu1 %v28062_v63 }
 0x652   :  { %v15927_v4 = vand.u32 4294901760, %v15848_v25  ;;  %26996 = vmatprep.subr.mxu0 %v27961_v46  ;;  %27031 = vmatprep.subr.mxu1 %v28069_v0 }
 0x653   :  { %14318 = vst.msk [vmem:[#allocation5 + $0x1f0] sm:$0xff] %vm42_vm0, %v14302_v37  ;;  %v15845_v23 = vsel %vm42_vm0, %v14302_v37, 0  ;;  %26997 = vmatpush3.msra.mxu0 %v27961_v46  ;;  %27032 = vmatpush3.msra.mxu1 %v28069_v0 }
 0x654   :  { %v15928_v19 = vsub.f32 %v15848_v25, %v15927_v4  ;;  %v15917_v20 = vand.u32 4294901760, %v15845_v23  ;;  %26999 = vmatmul.mubr.f32.vlgmr.msra.gmra.mxu0 %v15420_v29  ;;  %27008 = vmatprep.subr.mxu0 %v27969_v47 }
 0x655   :  { %27043 = vmatprep.subr.mxu1 %v28005_v55  ;;  %27009 = vmatpush3.msra.mxu0 %v27969_v47 }
 0x656   :  { %v15929_v49 = vand.u32 4294901760, %v15928_v19  ;;  %v15918_v3 = vsub.f32 %v15845_v23, %v15917_v20  ;;  %27033 = vmatprep.mubr.f32.mxu1 %v15917_v20  ;;  %27012 = vmatprep.mubr.f32.mxu0 %v29062_v2 }
 0x657   :  { %27034 = vmatmul.mubr.f32.vlgmr.msra.gmra.mxu1 %v15927_v4  ;;  %27010 = vmatprep.subr.mxu0 %v27976_v48 }
 0x658   :  { %27044 = vmatpush3.msra.mxu1 %v28005_v55  ;;  %27011 = vmatpush3.msra.mxu0 %v27976_v48  ;;  %v15919_v62 = vand.u32 4294901760, %v15918_v3  ;;  %v15930_v29 = vsub.f32 %v15928_v19, %v15929_v49 }
 0x659   :  { %27045 = vmatprep.subr.mxu1 %v28012_v56  ;;  %27013 = vmatmul.mubr.f32.vlgmr.msra.gmra.mxu0 %v29055_v38 }
 0x65a   :  { %27046 = vmatpush3.msra.mxu1 %v28012_v56  ;;  %27047 = vmatprep.mubr.f32.mxu1 %v15919_v62  ;;  %v15920_v41 = vsub.f32 %v15918_v3, %v15919_v62  ;;  %v15931_v61 = vand.u32 4294901760, %v15930_v29 }
 0x65b   :  { %27022 = vmatprep.subr.mxu0 %v28005_v55  ;;  %27048 = vmatmul.mubr.f32.vlgmr.msra.gmra.mxu1 %v15929_v49 }
 0x65c   :  { %27057 = vmatprep.subr.mxu1 %v28005_v55  ;;  %27023 = vmatpush3.msra.mxu0 %v28005_v55  ;;  %v15921_v2 = vand.u32 4294901760, %v15920_v41 }
 0x65d   :  { %27058 = vmatpush3.msra.mxu1 %v28005_v55  ;;  %27061 = vmatprep.mubr.f32.mxu1 %v15917_v20 }
 0x65e   :  { %27024 = vmatprep.subr.mxu0 %v28012_v56  ;;  %27059 = vmatprep.subr.mxu1 %v28012_v56 }
 0x65f   :  { %27025 = vmatpush3.msra.mxu0 %v28012_v56  ;;  %27026 = vmatprep.mubr.f32.mxu0 %v15921_v2 }
 0x660   :  { %27060 = vmatpush3.msra.mxu1 %v28012_v56  ;;  %27027 = vmatmul.mubr.f32.vlgmr.msra.gmra.mxu0 %v15931_v61 }
 0x661   :  { %27036 = vmatprep.subr.mxu0 %v28019_v57  ;;  %27062 = vmatmul.mubr.f32.vlgmr.msra.gmra.mxu1 %v15927_v4 }
 0x662   :  { %27037 = vmatpush3.msra.mxu0 %v28019_v57  ;;  %27040 = vmatprep.mubr.f32.mxu0 %v15918_v3 }
 0x663   :  { %27038 = vmatprep.subr.mxu0 %v28027_v58  ;;  %27071 = vmatprep.subr.mxu1 %v27878_v30 }
 0x664   :  { %27039 = vmatpush3.msra.mxu0 %v28027_v58  ;;  %27072 = vmatpush3.msra.mxu1 %v27878_v30 }
 0x665   :  { %27041 = vmatmul.mubr.f32.vlgmr.msra.gmra.mxu0 %v15928_v19  ;;  %27050 = vmatprep.subr.mxu0 %v28035_v59 }
 0x666   :  { %27051 = vmatpush3.msra.mxu0 %v28035_v59  ;;  %27054 = vmatprep.mubr.f32.mxu0 %v15917_v20 }
 0x667   :  { %27052 = vmatprep.subr.mxu0 %v28042_v60  ;;  %27073 = vmatprep.subr.mxu1 %v27880_v31 }
 0x668   :  { %27053 = vmatpush3.msra.mxu0 %v28042_v60  ;;  %27074 = vmatpush3.msra.mxu1 %v27880_v31 }
 0x669   :  { %27055 = vmatmul.mubr.f32.vlgmr.msra.gmra.mxu0 %v15927_v4  ;;  %27085 = vmatprep.subr.mxu1 %v27824_v11 }
 0x66a   :  { %27064 = vmatprep.subr.mxu0 %v27824_v11 }
 0x66b   :  { %27065 = vmatpush3.msra.mxu0 %v27824_v11 }
 0x66c   :  { %27066 = vmatprep.subr.mxu0 %v27826_v12 }
 0x66d   :  { %27067 = vmatpush3.msra.mxu0 %v27826_v12 }
 0x66e   :  { %27078 = vmatprep.subr.mxu0 %v27845_v16 }
 0x6dc   :  { %v26909_v38 = vpop.f32.mrf.mxu1 }
 0x6de   :  { %v14490_v7 = vpop.f32.mrf.mxu1 }
 0x6e0   :  { %v26923_v53 = vpop.f32.mrf.mxu1 }
 0x6e2   :  { %v14654_v9 = vpop.f32.mrf.mxu1 }
 0x6e4   :  { %v26902_v1 = vpop.f32.mrf.mxu0  ;;  %v26937_v50 = vpop.f32.mrf.mxu1 }
 0x6e5   :  { %v14497_v39 = vadd.f32 %v26909_v38, %v26902_v1 }
 0x6e6   :  { %v14399_v10 = vpop.f32.mrf.mxu0  ;;  %v14818_v6 = vpop.f32.mrf.mxu1 }
 0x6e7   :  { %v14491_v18 = vadd.f32 %v14490_v7, %v14399_v10 }
 0x6e9   :  { %v26916_v13 = vpop.f32.mrf.mxu0 }
 0x6ea   :  { %v14580_v8 = vadd.f32 %v26916_v13, %v14497_v39 }
 0x6eb   :  { %v14572_v27 = vpop.f32.mrf.mxu0 }
 0x6ec   :  { %v14573_v15 = vadd.f32 %v14572_v27, %v14491_v18  ;;  %v14663_v51 = vadd.f32 %v26923_v53, %v14580_v8 }
 0x6ed   :  { %v26930_v24 = vpop.f32.mrf.mxu0 }
 0x6ee   :  { %v14746_v5 = vadd.f32 %v26930_v24, %v14663_v51  ;;  %v14655_v26 = vadd.f32 %v14654_v9, %v14573_v15 }
 0x6ef   :  { %v26951_v14 = vpop.f32.mrf.mxu1  ;;  %v14739_v25 = vpop.f32.mrf.mxu0 }
 0x6f0   :  { %v14825_v37 = vadd.f32 %v26937_v50, %v14746_v5  ;;  %v14740_v4 = vadd.f32 %v14739_v25, %v14655_v26 }
 0x6f1   :  { %v14998_v20 = vpop.f32.mrf.mxu1 }
 0x6f2   :  { %16354 = vst.msk [vmem:[#allocation5 + $0x208] sm:$0xff] %vm42_vm0, %v14825_v37  ;;  %v16365_v23 = vsel %vm42_vm0, %v14825_v37, 0  ;;  %v14819_v19 = vadd.f32 %v14818_v6, %v14740_v4 }
 0x6f3   :  { %v29126_v49 = vand.u32 4294901760, %v16365_v23  ;;  %v26965_v2 = vpop.f32.mrf.mxu1 }
 0x6f4   :  { %16353 = vst.msk [vmem:[#allocation5 + $0x200] sm:$0xff] %vm42_vm0, %v14819_v19  ;;  %v16362_v3 = vsel %vm42_vm0, %v14819_v19, 0 }
 0x6f5   :  { %v16445_v62 = vsub.f32 %v16365_v23, %v29126_v49  ;;  %v16434_v29 = vand.u32 4294901760, %v16362_v3  ;;  %v15162_v1 = vpop.f32.mrf.mxu1 }
 0x6f7   :  { %v16446_v41 = vand.u32 4294901760, %v16445_v62  ;;  %v16435_v61 = vsub.f32 %v16362_v3, %v16434_v29  ;;  %v26944_v38 = vpop.f32.mrf.mxu0  ;;  %27075 = vmatprep.mubr.f32.mxu1 %v16434_v29  ;;  %v26979_v15 = vpop.f32.mrf.mxu1 }
 0x6f8   :  { %27076 = vmatmul.mubr.f32.vlgmr.msra.gmra.mxu1 %v29126_v49  ;;  %v15005_v10 = vadd.f32 %v26951_v14, %v26944_v38 }
 0x6f9   :  { %v14907_v7 = vpop.f32.mrf.mxu0  ;;  %27086 = vmatpush3.msra.mxu1 %v27824_v11  ;;  %v16436_v53 = vand.u32 4294901760, %v16435_v61  ;;  %v16447_v9 = vsub.f32 %v16445_v62, %v16446_v41  ;;  %v15326_v37 = vpop.f32.mrf.mxu1 }
 0x6fa   :  { %27087 = vmatprep.subr.mxu1 %v27826_v12  ;;  %v14999_v13 = vadd.f32 %v14998_v20, %v14907_v7 }
 0x6fb   :  { %27088 = vmatpush3.msra.mxu1 %v27826_v12  ;;  %27089 = vmatprep.mubr.f32.mxu1 %v16436_v53  ;;  %v16437_v50 = vsub.f32 %v16435_v61, %v16436_v53  ;;  %v16448_v6 = vand.u32 4294901760, %v16447_v9 }
 0x6fc   :  { %v26958_v39 = vpop.f32.mrf.mxu0  ;;  %27090 = vmatmul.mubr.f32.vlgmr.msra.gmra.mxu1 %v16446_v41  ;;  %27099 = vmatprep.subr.mxu1 %v27824_v11 }
 0x6fd   :  { %v15088_v18 = vadd.f32 %v26958_v39, %v15005_v10  ;;  %27100 = vmatpush3.msra.mxu1 %v27824_v11  ;;  %27103 = vmatprep.mubr.f32.mxu1 %v16434_v29  ;;  %v16438_v8 = vand.u32 4294901760, %v16437_v50 }
 0x6fe   :  { %v15080_v27 = vpop.f32.mrf.mxu0  ;;  %27101 = vmatprep.subr.mxu1 %v27826_v12 }
 0x6ff   :  { %v15081_v51 = vadd.f32 %v15080_v27, %v14999_v13  ;;  %v15171_v24 = vadd.f32 %v26965_v2, %v15088_v18  ;;  %27068 = vmatprep.mubr.f32.mxu0 %v16438_v8  ;;  %27102 = vmatpush3.msra.mxu1 %v27826_v12 }
 0x700   :  { %v26972_v5 = vpop.f32.mrf.mxu0  ;;  %27069 = vmatmul.mubr.f32.vlgmr.msra.gmra.mxu0 %v16448_v6  ;;  %27104 = vmatmul.mubr.f32.vlgmr.msra.gmra.mxu1 %v29126_v49 }
 0x701   :  { %v15254_v26 = vadd.f32 %v26972_v5, %v15171_v24  ;;  %v15163_v14 = vadd.f32 %v15162_v1, %v15081_v51  ;;  %27113 = vmatprep.subr.mxu1 %v27930_v40  ;;  %27079 = vmatpush3.msra.mxu0 %v27845_v16 }
 0x702   :  { %v15247_v25 = vpop.f32.mrf.mxu0  ;;  %27082 = vmatprep.mubr.f32.mxu0 %v16435_v61  ;;  %27114 = vmatpush3.msra.mxu1 %v27930_v40 }
 0x703   :  { %v15333_v4 = vadd.f32 %v26979_v15, %v15254_v26  ;;  %v15248_v23 = vadd.f32 %v15247_v25, %v15163_v14  ;;  %27080 = vmatprep.subr.mxu0 %v27848_v17  ;;  %27115 = vmatprep.subr.mxu1 %v27937_v42 }
 0x704   :  { %27081 = vmatpush3.msra.mxu0 %v27848_v17  ;;  %27116 = vmatpush3.msra.mxu1 %v27937_v42 }
 0x705   :  { %16356 = vst.msk [vmem:[#allocation5 + $0x218] sm:$0xff] %vm42_vm0, %v15333_v4  ;;  %v16873_v19 = vsel %vm42_vm0, %v15333_v4, 0  ;;  %v15327_v20 = vadd.f32 %v15326_v37, %v15248_v23  ;;  %27083 = vmatmul.mubr.f32.vlgmr.msra.gmra.mxu0 %v16445_v62  ;;  %27092 = vmatprep.subr.mxu0 %v27858_v21 }
 0x706   :  { %v29150_v3 = vand.u32 4294901760, %v16873_v19  ;;  %27127 = vmatprep.subr.mxu1 %v27873_v28  ;;  %27093 = vmatpush3.msra.mxu0 %v27858_v21 }
 0x707   :  { %v26993_v41 = vpop.f32.mrf.mxu1  ;;  %16355 = vst.msk [vmem:[#allocation5 + $0x210] sm:$0xff] %vm42_vm0, %v15327_v20  ;;  %v16870_v2 = vsel %vm42_vm0, %v15327_v20, 0  ;;  %27096 = vmatprep.mubr.f32.mxu0 %v16434_v29  ;;  %27094 = vmatprep.subr.mxu0 %v27861_v22 }
 0x708   :  { %v16953_v61 = vsub.f32 %v16873_v19, %v29150_v3  ;;  %v16942_v38 = vand.u32 4294901760, %v16870_v2  ;;  %27095 = vmatpush3.msra.mxu0 %v27861_v22 }
 0x709   :  { %v15506_v62 = vpop.f32.mrf.mxu1  ;;  %27097 = vmatmul.mubr.f32.vlgmr.msra.gmra.mxu0 %v29126_v49  ;;  %27106 = vmatprep.subr.mxu0 %v27873_v28 }
 0x70a   :  { %v16954_v7 = vand.u32 4294901760, %v16953_v61  ;;  %v16943_v53 = vsub.f32 %v16870_v2, %v16942_v38  ;;  %27117 = vmatprep.mubr.f32.mxu1 %v16942_v38  ;;  %27107 = vmatpush3.msra.mxu0 %v27873_v28 }
 0x70b   :  { %v27007_v9 = vpop.f32.mrf.mxu1  ;;  %27118 = vmatmul.mubr.f32.vlgmr.msra.gmra.mxu1 %v29150_v3  ;;  %27108 = vmatprep.subr.mxu0 %v27882_v32 }
 0x70c   :  { %27128 = vmatpush3.msra.mxu1 %v27873_v28  ;;  %v16944_v29 = vand.u32 4294901760, %v16943_v53  ;;  %27109 = vmatpush3.msra.mxu0 %v27882_v32  ;;  %v16955_v1 = vsub.f32 %v16953_v61, %v16954_v7 }
 0x70d   :  { %v15670_v10 = vpop.f32.mrf.mxu1  ;;  %27129 = vmatprep.subr.mxu1 %v27882_v32  ;;  %27120 = vmatprep.subr.mxu0 %v27888_v33 }
 0x70e   :  { %27130 = vmatpush3.msra.mxu1 %v27882_v32  ;;  %27131 = vmatprep.mubr.f32.mxu1 %v16944_v29  ;;  %v16945_v49 = vsub.f32 %v16943_v53, %v16944_v29  ;;  %v16956_v13 = vand.u32 4294901760, %v16955_v1 }
 0x70f   :  { %v26986_v50 = vpop.f32.mrf.mxu0  ;;  %27132 = vmatmul.mubr.f32.vlgmr.msra.gmra.mxu1 %v16954_v7  ;;  %27141 = vmatprep.subr.mxu1 %v27873_v28  ;;  %v27021_v18 = vpop.f32.mrf.mxu1 }
 0x710   :  { %27142 = vmatpush3.msra.mxu1 %v27873_v28  ;;  %27145 = vmatprep.mubr.f32.mxu1 %v16942_v38  ;;  %v16946_v39 = vand.u32 4294901760, %v16945_v49  ;;  %v15513_v6 = vadd.f32 %v26993_v41, %v26986_v50 }
 0x711   :  { %v15415_v8 = vpop.f32.mrf.mxu0  ;;  %27143 = vmatprep.subr.mxu1 %v27882_v32  ;;  %v15834_v51 = vpop.f32.mrf.mxu1 }
 0x712   :  { %27110 = vmatprep.mubr.f32.mxu0 %v16946_v39  ;;  %27144 = vmatpush3.msra.mxu1 %v27882_v32  ;;  %v15507_v15 = vadd.f32 %v15506_v62, %v15415_v8 }
 0x713   :  { %27111 = vmatmul.mubr.f32.vlgmr.msra.gmra.mxu0 %v16956_v13  ;;  %27146 = vmatmul.mubr.f32.vlgmr.msra.gmra.mxu1 %v29150_v3 }
 0x714   :  { %v27000_v27 = vpop.f32.mrf.mxu0  ;;  %27155 = vmatprep.subr.mxu1 %v27996_v52  ;;  %27121 = vmatpush3.msra.mxu0 %v27888_v33 }
 0x715   :  { %v15596_v24 = vadd.f32 %v27000_v27, %v15513_v6  ;;  %27124 = vmatprep.mubr.f32.mxu0 %v16943_v53  ;;  %27156 = vmatpush3.msra.mxu1 %v27996_v52 }
 0x716   :  { %v15588_v5 = vpop.f32.mrf.mxu0  ;;  %27122 = vmatprep.subr.mxu0 %v27895_v34  ;;  %27157 = vmatprep.subr.mxu1 %v28003_v54 }
 0x717   :  { %v15589_v26 = vadd.f32 %v15588_v5, %v15507_v15  ;;  %v15679_v14 = vadd.f32 %v27007_v9, %v15596_v24  ;;  %27123 = vmatpush3.msra.mxu0 %v27895_v34  ;;  %27158 = vmatpush3.msra.mxu1 %v28003_v54  ;;  %v27035_v25 = vpop.f32.mrf.mxu1 }
 0x718   :  { %27125 = vmatmul.mubr.f32.vlgmr.msra.gmra.mxu0 %v16953_v61  ;;  %27134 = vmatprep.subr.mxu0 %v27903_v35 }
 0x719   :  { %v27014_v37 = vpop.f32.mrf.mxu0  ;;  %v15671_v4 = vadd.f32 %v15670_v10, %v15589_v26  ;;  %27169 = vmatprep.subr.mxu1 %v27939_v43  ;;  %27135 = vmatpush3.msra.mxu0 %v27903_v35  ;;  %v16014_v2 = vpop.f32.mrf.mxu1 }
 0x71a   :  { %v15762_v23 = vadd.f32 %v27014_v37, %v15679_v14  ;;  %27138 = vmatprep.mubr.f32.mxu0 %v16942_v38  ;;  %27136 = vmatprep.subr.mxu0 %v27910_v36 }
 0x71b   :  { %v15755_v19 = vpop.f32.mrf.mxu0  ;;  %27137 = vmatpush3.msra.mxu0 %v27910_v36  ;;  %v27049_v9 = vpop.f32.mrf.mxu1 }
 0x71c   :  { %v15841_v20 = vadd.f32 %v27021_v18, %v15762_v23  ;;  %v15756_v41 = vadd.f32 %v15755_v19, %v15671_v4  ;;  %27139 = vmatmul.mubr.f32.vlgmr.msra.gmra.mxu0 %v29150_v3  ;;  %27148 = vmatprep.subr.mxu0 %v27939_v43 }
 0x71d   :  { %27149 = vmatpush3.msra.mxu0 %v27939_v43  ;;  %v16178_v39 = vpop.f32.mrf.mxu1 }
 0x71e   :  { %16358 = vst.msk [vmem:[#allocation5 + $0x228] sm:$0xff] %vm42_vm0, %v15841_v20  ;;  %v17381_v61 = vsel %vm42_vm0, %v15841_v20, 0  ;;  %v15835_v62 = vadd.f32 %v15834_v51, %v15756_v41  ;;  %27150 = vmatprep.subr.mxu0 %v27946_v44 }
 0x71f   :  { %v29192_v38 = vand.u32 4294901760, %v17381_v61  ;;  %27151 = vmatpush3.msra.mxu0 %v27946_v44 }
 0x720   :  { %16357 = vst.msk [vmem:[#allocation5 + $0x220] sm:$0xff] %vm42_vm0, %v15835_v62  ;;  %v17378_v3 = vsel %vm42_vm0, %v15835_v62, 0  ;;  %v27028_v7 = vpop.f32.mrf.mxu0  ;;  %27162 = vmatprep.subr.mxu0 %v27953_v45 }
 0x721   :  { %v17461_v53 = vsub.f32 %v17381_v61, %v29192_v38  ;;  %v17450_v29 = vand.u32 4294901760, %v17378_v3  ;;  %v16021_v50 = vadd.f32 %v27035_v25, %v27028_v7  ;;  %v27063_v26 = vpop.f32.mrf.mxu1 }
 0x722   :  { %v15923_v1 = vpop.f32.mrf.mxu0 }
 0x723   :  { %v17462_v10 = vand.u32 4294901760, %v17461_v53  ;;  %v17451_v49 = vsub.f32 %v17378_v3, %v17450_v29  ;;  %27159 = vmatprep.mubr.f32.mxu1 %v17450_v29  ;;  %v16015_v6 = vadd.f32 %v16014_v2, %v15923_v1  ;;  %v16342_v2 = vpop.f32.mrf.mxu1 }
 0x724   :  { %27160 = vmatmul.mubr.f32.vlgmr.msra.gmra.mxu1 %v29192_v38 }
 0x725   :  { %v27042_v13 = vpop.f32.mrf.mxu0  ;;  %27170 = vmatpush3.msra.mxu1 %v27939_v43  ;;  %v17452_v18 = vand.u32 4294901760, %v17451_v49  ;;  %v17463_v8 = vsub.f32 %v17461_v53, %v17462_v10 }
 0x726   :  { %v16104_v27 = vadd.f32 %v27042_v13, %v16021_v50  ;;  %27171 = vmatprep.subr.mxu1 %v27946_v44 }
 0x727   :  { %v16096_v15 = vpop.f32.mrf.mxu0  ;;  %27172 = vmatpush3.msra.mxu1 %v27946_v44  ;;  %27173 = vmatprep.mubr.f32.mxu1 %v17452_v18  ;;  %v17453_v51 = vsub.f32 %v17451_v49, %v17452_v18  ;;  %v17464_v37 = vand.u32 4294901760, %v17463_v8 }
 0x728   :  { %v16097_v24 = vadd.f32 %v16096_v15, %v16015_v6  ;;  %v16187_v5 = vadd.f32 %v27049_v9, %v16104_v27  ;;  %27174 = vmatmul.mubr.f32.vlgmr.msra.gmra.mxu1 %v17462_v10  ;;  %27183 = vmatprep.subr.mxu1 %v27939_v43 }
 0x729   :  { %v27056_v14 = vpop.f32.mrf.mxu0  ;;  %27184 = vmatpush3.msra.mxu1 %v27939_v43  ;;  %27187 = vmatprep.mubr.f32.mxu1 %v17450_v29  ;;  %v17454_v25 = vand.u32 4294901760, %v17453_v51 }
 0x72a   :  { %v16270_v4 = vadd.f32 %v27056_v14, %v16187_v5  ;;  %v16179_v23 = vadd.f32 %v16178_v39, %v16097_v24  ;;  %27185 = vmatprep.subr.mxu1 %v27946_v44 }
 0x72b   :  { %v16263_v19 = vpop.f32.mrf.mxu0  ;;  %27152 = vmatprep.mubr.f32.mxu0 %v17454_v25  ;;  %27186 = vmatpush3.msra.mxu1 %v27946_v44 }
 0x72c   :  { %v16349_v20 = vadd.f32 %v27063_v26, %v16270_v4  ;;  %v16264_v41 = vadd.f32 %v16263_v19, %v16179_v23  ;;  %27153 = vmatmul.mubr.f32.vlgmr.msra.gmra.mxu0 %v17464_v37  ;;  %27188 = vmatmul.mubr.f32.vlgmr.msra.gmra.mxu1 %v29192_v38 }
 0x72d   :  { %27197 = vmatprep.subr.mxu1 %v28062_v63  ;;  %27163 = vmatpush3.msra.mxu0 %v27953_v45 }
 0x72e   :  { %16360 = vst.msk [vmem:[#allocation5 + $0x238] sm:$0xff] %vm42_vm0, %v16349_v20  ;;  %v17889_v61 = vsel %vm42_vm0, %v16349_v20, 0  ;;  %v16343_v62 = vadd.f32 %v16342_v2, %v16264_v41  ;;  %27166 = vmatprep.mubr.f32.mxu0 %v17451_v49  ;;  %27198 = vmatpush3.msra.mxu1 %v28062_v63 }
 0x72f   :  { %v17968_v3 = vand.u32 4294901760, %v17889_v61  ;;  %27164 = vmatprep.subr.mxu0 %v27961_v46  ;;  %27199 = vmatprep.subr.mxu1 %v28069_v0 }
 0x730   :  { %16359 = vst.msk [vmem:[#allocation5 + $0x230] sm:$0xff] %vm42_vm0, %v16343_v62  ;;  %v17886_v7 = vsel %vm42_vm0, %v16343_v62, 0  ;;  %27165 = vmatpush3.msra.mxu0 %v27961_v46  ;;  %27200 = vmatpush3.msra.mxu1 %v28069_v0 }
 0x731   :  { %v17969_v9 = vsub.f32 %v17889_v61, %v17968_v3  ;;  %v17958_v1 = vand.u32 4294901760, %v17886_v7  ;;  %27167 = vmatmul.mubr.f32.vlgmr.msra.gmra.mxu0 %v17461_v53  ;;  %27176 = vmatprep.subr.mxu0 %v27969_v47 }
 0x732   :  { %27211 = vmatprep.subr.mxu1 %v28005_v55  ;;  %27177 = vmatpush3.msra.mxu0 %v27969_v47 }
 0x733   :  { %v17970_v10 = vand.u32 4294901760, %v17969_v9  ;;  %v17959_v49 = vsub.f32 %v17886_v7, %v17958_v1  ;;  %27201 = vmatprep.mubr.f32.mxu1 %v17958_v1  ;;  %27180 = vmatprep.mubr.f32.mxu0 %v17450_v29 }
 0x734   :  { %27202 = vmatmul.mubr.f32.vlgmr.msra.gmra.mxu1 %v17968_v3  ;;  %27178 = vmatprep.subr.mxu0 %v27976_v48 }
 0x735   :  { %27212 = vmatpush3.msra.mxu1 %v28005_v55  ;;  %27179 = vmatpush3.msra.mxu0 %v27976_v48  ;;  %v17960_v50 = vand.u32 4294901760, %v17959_v49  ;;  %v17971_v53 = vsub.f32 %v17969_v9, %v17970_v10 }
 0x736   :  { %27213 = vmatprep.subr.mxu1 %v28012_v56  ;;  %27181 = vmatmul.mubr.f32.vlgmr.msra.gmra.mxu0 %v29192_v38 }
 0x737   :  { %27214 = vmatpush3.msra.mxu1 %v28012_v56  ;;  %27215 = vmatprep.mubr.f32.mxu1 %v17960_v50  ;;  %v17961_v39 = vsub.f32 %v17959_v49, %v17960_v50  ;;  %v17972_v13 = vand.u32 4294901760, %v17971_v53 }
 0x738   :  { %27190 = vmatprep.subr.mxu0 %v28005_v55  ;;  %27216 = vmatmul.mubr.f32.vlgmr.msra.gmra.mxu1 %v17970_v10 }
 0x739   :  { %27225 = vmatprep.subr.mxu1 %v28005_v55  ;;  %27191 = vmatpush3.msra.mxu0 %v28005_v55  ;;  %v17962_v29 = vand.u32 4294901760, %v17961_v39 }
 0x73a   :  { %27226 = vmatpush3.msra.mxu1 %v28005_v55  ;;  %27229 = vmatprep.mubr.f32.mxu1 %v17958_v1 }
 0x73b   :  { %27192 = vmatprep.subr.mxu0 %v28012_v56  ;;  %27227 = vmatprep.subr.mxu1 %v28012_v56 }
 0x73c   :  { %27193 = vmatpush3.msra.mxu0 %v28012_v56  ;;  %27194 = vmatprep.mubr.f32.mxu0 %v17962_v29 }
 0x73d   :  { %27228 = vmatpush3.msra.mxu1 %v28012_v56  ;;  %27195 = vmatmul.mubr.f32.vlgmr.msra.gmra.mxu0 %v17972_v13 }
 0x73e   :  { %27204 = vmatprep.subr.mxu0 %v28019_v57  ;;  %27230 = vmatmul.mubr.f32.vlgmr.msra.gmra.mxu1 %v17968_v3 }
 0x73f   :  { %27205 = vmatpush3.msra.mxu0 %v28019_v57  ;;  %27208 = vmatprep.mubr.f32.mxu0 %v17959_v49 }
 0x740   :  { %27206 = vmatprep.subr.mxu0 %v28027_v58  ;;  %27239 = vmatprep.subr.mxu1 %v27878_v30 }
 0x741   :  { %27207 = vmatpush3.msra.mxu0 %v28027_v58  ;;  %27240 = vmatpush3.msra.mxu1 %v27878_v30 }
 0x742   :  { %27209 = vmatmul.mubr.f32.vlgmr.msra.gmra.mxu0 %v17969_v9  ;;  %27218 = vmatprep.subr.mxu0 %v28035_v59 }
 0x743   :  { %27219 = vmatpush3.msra.mxu0 %v28035_v59  ;;  %27222 = vmatprep.mubr.f32.mxu0 %v17958_v1 }
 0x744   :  { %27220 = vmatprep.subr.mxu0 %v28042_v60  ;;  %27241 = vmatprep.subr.mxu1 %v27880_v31 }
 0x745   :  { %27221 = vmatpush3.msra.mxu0 %v28042_v60  ;;  %27242 = vmatpush3.msra.mxu1 %v27880_v31 }
 0x746   :  { %27223 = vmatmul.mubr.f32.vlgmr.msra.gmra.mxu0 %v17968_v3  ;;  %27253 = vmatprep.subr.mxu1 %v27824_v11 }
 0x747   :  { %27232 = vmatprep.subr.mxu0 %v27824_v11 }
 0x748   :  { %27233 = vmatpush3.msra.mxu0 %v27824_v11 }
 0x749   :  { %27234 = vmatprep.subr.mxu0 %v27826_v12 }
 0x74a   :  { %27235 = vmatpush3.msra.mxu0 %v27826_v12 }
 0x74b   :  { %27246 = vmatprep.subr.mxu0 %v27845_v16 }
 0x7b8   :  { %v27077_v38 = vpop.f32.mrf.mxu1 }
 0x7ba   :  { %v16531_v18 = vpop.f32.mrf.mxu1 }
 0x7bc   :  { %v27091_v8 = vpop.f32.mrf.mxu1 }
 0x7be   :  { %v16695_v6 = vpop.f32.mrf.mxu1 }
 0x7c0   :  { %v27070_v27 = vpop.f32.mrf.mxu0  ;;  %v27105_v24 = vpop.f32.mrf.mxu1 }
 0x7c1   :  { %v16538_v51 = vadd.f32 %v27077_v38, %v27070_v27 }
 0x7c2   :  { %v16440_v15 = vpop.f32.mrf.mxu0  ;;  %v16859_v37 = vpop.f32.mrf.mxu1 }
 0x7c3   :  { %v16532_v26 = vadd.f32 %v16531_v18, %v16440_v15 }
 0x7c5   :  { %v27084_v5 = vpop.f32.mrf.mxu0 }
 0x7c6   :  { %v16621_v14 = vadd.f32 %v27084_v5, %v16538_v51 }
 0x7c7   :  { %v16613_v25 = vpop.f32.mrf.mxu0 }
 0x7c8   :  { %v16614_v4 = vadd.f32 %v16613_v25, %v16532_v26  ;;  %v16704_v23 = vadd.f32 %v27091_v8, %v16621_v14 }
 0x7c9   :  { %v27098_v19 = vpop.f32.mrf.mxu0 }
 0x7ca   :  { %v16787_v20 = vadd.f32 %v27098_v19, %v16704_v23  ;;  %v16696_v41 = vadd.f32 %v16695_v6, %v16614_v4 }
 0x7cb   :  { %v16780_v2 = vpop.f32.mrf.mxu0  ;;  %v27119_v61 = vpop.f32.mrf.mxu1 }
 0x7cc   :  { %v16866_v62 = vadd.f32 %v27105_v24, %v16787_v20  ;;  %v16781_v3 = vadd.f32 %v16780_v2, %v16696_v41 }
 0x7cd   :  { %v17039_v10 = vpop.f32.mrf.mxu1 }
 0x7ce   :  { %18395 = vst.msk [vmem:[#allocation5 + $0x248] sm:$0xff] %vm42_vm0, %v16866_v62  ;;  %v18406_v7 = vsel %vm42_vm0, %v16866_v62, 0  ;;  %v16860_v9 = vadd.f32 %v16859_v37, %v16781_v3 }
 0x7cf   :  { %v29256_v1 = vand.u32 4294901760, %v18406_v7  ;;  %v27133_v38 = vpop.f32.mrf.mxu1 }
 0x7d0   :  { %18394 = vst.msk [vmem:[#allocation5 + $0x240] sm:$0xff] %vm42_vm0, %v16860_v9  ;;  %v18403_v49 = vsel %vm42_vm0, %v16860_v9, 0 }
 0x7d1   :  { %v18486_v50 = vsub.f32 %v18406_v7, %v29256_v1  ;;  %v18475_v53 = vand.u32 4294901760, %v18403_v49  ;;  %v17203_v51 = vpop.f32.mrf.mxu1 }
 0x7d3   :  { %v18487_v39 = vand.u32 4294901760, %v18486_v50  ;;  %v18476_v29 = vsub.f32 %v18403_v49, %v18475_v53  ;;  %v27112_v13 = vpop.f32.mrf.mxu0  ;;  %27243 = vmatprep.mubr.f32.mxu1 %v18475_v53  ;;  %v27147_v19 = vpop.f32.mrf.mxu1 }
 0x7d4   :  { %27244 = vmatmul.mubr.f32.vlgmr.msra.gmra.mxu1 %v29256_v1  ;;  %v17046_v27 = vadd.f32 %v27119_v61, %v27112_v13 }
 0x7d5   :  { %v16948_v18 = vpop.f32.mrf.mxu0  ;;  %27254 = vmatpush3.msra.mxu1 %v27824_v11  ;;  %v18477_v8 = vand.u32 4294901760, %v18476_v29  ;;  %v18488_v6 = vsub.f32 %v18486_v50, %v18487_v39  ;;  %v17367_v7 = vpop.f32.mrf.mxu1 }
 0x7d6   :  { %27255 = vmatprep.subr.mxu1 %v27826_v12  ;;  %v17040_v5 = vadd.f32 %v17039_v10, %v16948_v18 }
 0x7d7   :  { %27256 = vmatpush3.msra.mxu1 %v27826_v12  ;;  %27257 = vmatprep.mubr.f32.mxu1 %v18477_v8  ;;  %v18478_v15 = vsub.f32 %v18476_v29, %v18477_v8  ;;  %v18489_v25 = vand.u32 4294901760, %v18488_v6 }
 0x7d8   :  { %v27126_v24 = vpop.f32.mrf.mxu0  ;;  %27258 = vmatmul.mubr.f32.vlgmr.msra.gmra.mxu1 %v18487_v39  ;;  %27267 = vmatprep.subr.mxu1 %v27824_v11 }
 0x7d9   :  { %v17129_v26 = vadd.f32 %v27126_v24, %v17046_v27  ;;  %27268 = vmatpush3.msra.mxu1 %v27824_v11  ;;  %27271 = vmatprep.mubr.f32.mxu1 %v18475_v53  ;;  %v18479_v14 = vand.u32 4294901760, %v18478_v15 }
 0x7da   :  { %v17121_v37 = vpop.f32.mrf.mxu0  ;;  %27269 = vmatprep.subr.mxu1 %v27826_v12 }
 0x7db   :  { %v17122_v4 = vadd.f32 %v17121_v37, %v17040_v5  ;;  %v17212_v23 = vadd.f32 %v27133_v38, %v17129_v26  ;;  %27236 = vmatprep.mubr.f32.mxu0 %v18479_v14  ;;  %27270 = vmatpush3.msra.mxu1 %v27826_v12 }
 0x7dc   :  { %v27140_v20 = vpop.f32.mrf.mxu0  ;;  %27237 = vmatmul.mubr.f32.vlgmr.msra.gmra.mxu0 %v18489_v25  ;;  %27272 = vmatmul.mubr.f32.vlgmr.msra.gmra.mxu1 %v29256_v1 }
 0x7dd   :  { %v17295_v41 = vadd.f32 %v27140_v20, %v17212_v23  ;;  %v17204_v2 = vadd.f32 %v17203_v51, %v17122_v4  ;;  %27281 = vmatprep.subr.mxu1 %v27930_v40  ;;  %27247 = vmatpush3.msra.mxu0 %v27845_v16 }
 0x7de   :  { %v17288_v61 = vpop.f32.mrf.mxu0  ;;  %27250 = vmatprep.mubr.f32.mxu0 %v18476_v29  ;;  %27282 = vmatpush3.msra.mxu1 %v27930_v40 }
 0x7df   :  { %v17374_v62 = vadd.f32 %v27147_v19, %v17295_v41  ;;  %v17289_v3 = vadd.f32 %v17288_v61, %v17204_v2  ;;  %27248 = vmatprep.subr.mxu0 %v27848_v17  ;;  %27283 = vmatprep.subr.mxu1 %v27937_v42 }
 0x7e0   :  { %27249 = vmatpush3.msra.mxu0 %v27848_v17  ;;  %27284 = vmatpush3.msra.mxu1 %v27937_v42 }
 0x7e1   :  { %18397 = vst.msk [vmem:[#allocation5 + $0x258] sm:$0xff] %vm42_vm0, %v17374_v62  ;;  %v18914_v9 = vsel %vm42_vm0, %v17374_v62, 0  ;;  %v17368_v10 = vadd.f32 %v17367_v7, %v17289_v3  ;;  %27251 = vmatmul.mubr.f32.vlgmr.msra.gmra.mxu0 %v18486_v50  ;;  %27260 = vmatprep.subr.mxu0 %v27858_v21 }
 0x7e2   :  { %v29280_v49 = vand.u32 4294901760, %v18914_v9  ;;  %27295 = vmatprep.subr.mxu1 %v27873_v28  ;;  %27261 = vmatpush3.msra.mxu0 %v27858_v21 }
 0x7e3   :  { %18396 = vst.msk [vmem:[#allocation5 + $0x250] sm:$0xff] %vm42_vm0, %v17368_v10  ;;  %v18911_v39 = vsel %vm42_vm0, %v17368_v10, 0  ;;  %27264 = vmatprep.mubr.f32.mxu0 %v18475_v53  ;;  %27262 = vmatprep.subr.mxu0 %v27861_v22 }
 0x7e4   :  { %v27161_v29 = vpop.f32.mrf.mxu1  ;;  %v18994_v13 = vsub.f32 %v18914_v9, %v29280_v49  ;;  %v18983_v38 = vand.u32 4294901760, %v18911_v39  ;;  %27263 = vmatpush3.msra.mxu0 %v27861_v22 }
 0x7e5   :  { %27265 = vmatmul.mubr.f32.vlgmr.msra.gmra.mxu0 %v29256_v1  ;;  %27274 = vmatprep.subr.mxu0 %v27873_v28 }
 0x7e6   :  { %v17547_v50 = vpop.f32.mrf.mxu1  ;;  %v18995_v18 = vand.u32 4294901760, %v18994_v13  ;;  %v18984_v8 = vsub.f32 %v18911_v39, %v18983_v38  ;;  %27285 = vmatprep.mubr.f32.mxu1 %v18983_v38  ;;  %27275 = vmatpush3.msra.mxu0 %v27873_v28 }
 0x7e7   :  { %27286 = vmatmul.mubr.f32.vlgmr.msra.gmra.mxu1 %v29280_v49  ;;  %27276 = vmatprep.subr.mxu0 %v27882_v32 }
 0x7e8   :  { %v27175_v53 = vpop.f32.mrf.mxu1  ;;  %27296 = vmatpush3.msra.mxu1 %v27873_v28  ;;  %v18985_v6 = vand.u32 4294901760, %v18984_v8  ;;  %27277 = vmatpush3.msra.mxu0 %v27882_v32  ;;  %v18996_v27 = vsub.f32 %v18994_v13, %v18995_v18 }
 0x7e9   :  { %27297 = vmatprep.subr.mxu1 %v27882_v32  ;;  %27288 = vmatprep.subr.mxu0 %v27888_v33 }
 0x7ea   :  { %v17711_v1 = vpop.f32.mrf.mxu1  ;;  %27298 = vmatpush3.msra.mxu1 %v27882_v32  ;;  %27299 = vmatprep.mubr.f32.mxu1 %v18985_v6  ;;  %v18986_v15 = vsub.f32 %v18984_v8, %v18985_v6  ;;  %v18997_v5 = vand.u32 4294901760, %v18996_v27 }
 0x7eb   :  { %27300 = vmatmul.mubr.f32.vlgmr.msra.gmra.mxu1 %v18995_v18  ;;  %27309 = vmatprep.subr.mxu1 %v27873_v28 }
 0x7ec   :  { %v27154_v51 = vpop.f32.mrf.mxu0  ;;  %27310 = vmatpush3.msra.mxu1 %v27873_v28  ;;  %27313 = vmatprep.mubr.f32.mxu1 %v18983_v38  ;;  %v18987_v24 = vand.u32 4294901760, %v18986_v15  ;;  %v27189_v26 = vpop.f32.mrf.mxu1 }
 0x7ed   :  { %27311 = vmatprep.subr.mxu1 %v27882_v32  ;;  %v17554_v25 = vadd.f32 %v27161_v29, %v27154_v51 }
 0x7ee   :  { %v17456_v14 = vpop.f32.mrf.mxu0  ;;  %27278 = vmatprep.mubr.f32.mxu0 %v18987_v24  ;;  %27312 = vmatpush3.msra.mxu1 %v27882_v32  ;;  %v17875_v23 = vpop.f32.mrf.mxu1 }
 0x7ef   :  { %27279 = vmatmul.mubr.f32.vlgmr.msra.gmra.mxu0 %v18997_v5  ;;  %27314 = vmatmul.mubr.f32.vlgmr.msra.gmra.mxu1 %v29280_v49  ;;  %v17548_v4 = vadd.f32 %v17547_v50, %v17456_v14 }
 0x7f0   :  { %27323 = vmatprep.subr.mxu1 %v27996_v52  ;;  %27289 = vmatpush3.msra.mxu0 %v27888_v33 }
 0x7f1   :  { %v27168_v37 = vpop.f32.mrf.mxu0  ;;  %27292 = vmatprep.mubr.f32.mxu0 %v18984_v8  ;;  %27324 = vmatpush3.msra.mxu1 %v27996_v52 }
 0x7f2   :  { %v17637_v19 = vadd.f32 %v27168_v37, %v17554_v25  ;;  %27290 = vmatprep.subr.mxu0 %v27895_v34  ;;  %27325 = vmatprep.subr.mxu1 %v28003_v54 }
 0x7f3   :  { %v17629_v20 = vpop.f32.mrf.mxu0  ;;  %27291 = vmatpush3.msra.mxu0 %v27895_v34  ;;  %27326 = vmatpush3.msra.mxu1 %v28003_v54 }
 0x7f4   :  { %v17630_v41 = vadd.f32 %v17629_v20, %v17548_v4  ;;  %v17720_v2 = vadd.f32 %v27175_v53, %v17637_v19  ;;  %27293 = vmatmul.mubr.f32.vlgmr.msra.gmra.mxu0 %v18994_v13  ;;  %27302 = vmatprep.subr.mxu0 %v27903_v35  ;;  %v27203_v61 = vpop.f32.mrf.mxu1 }
 0x7f5   :  { %27337 = vmatprep.subr.mxu1 %v27939_v43  ;;  %27303 = vmatpush3.msra.mxu0 %v27903_v35 }
 0x7f6   :  { %v27182_v62 = vpop.f32.mrf.mxu0  ;;  %v17712_v3 = vadd.f32 %v17711_v1, %v17630_v41  ;;  %27306 = vmatprep.mubr.f32.mxu0 %v18983_v38  ;;  %27304 = vmatprep.subr.mxu0 %v27910_v36  ;;  %v18055_v29 = vpop.f32.mrf.mxu1 }
 0x7f7   :  { %v17803_v7 = vadd.f32 %v27182_v62, %v17720_v2  ;;  %27305 = vmatpush3.msra.mxu0 %v27910_v36 }
 0x7f8   :  { %v17796_v9 = vpop.f32.mrf.mxu0  ;;  %27307 = vmatmul.mubr.f32.vlgmr.msra.gmra.mxu0 %v29280_v49  ;;  %27316 = vmatprep.subr.mxu0 %v27939_v43  ;;  %v27217_v53 = vpop.f32.mrf.mxu1 }
 0x7f9   :  { %v17882_v10 = vadd.f32 %v27189_v26, %v17803_v7  ;;  %v17797_v39 = vadd.f32 %v17796_v9, %v17712_v3  ;;  %27317 = vmatpush3.msra.mxu0 %v27939_v43 }
 0x7fa   :  { %27318 = vmatprep.subr.mxu0 %v27946_v44  ;;  %v18219_v24 = vpop.f32.mrf.mxu1 }
 0x7fb   :  { %18399 = vst.msk [vmem:[#allocation5 + $0x268] sm:$0xff] %vm42_vm0, %v17882_v10  ;;  %v19422_v13 = vsel %vm42_vm0, %v17882_v10, 0  ;;  %v17876_v38 = vadd.f32 %v17875_v23, %v17797_v39  ;;  %27319 = vmatpush3.msra.mxu0 %v27946_v44 }
 0x7fc   :  { %v29323_v50 = vand.u32 4294901760, %v19422_v13  ;;  %27330 = vmatprep.subr.mxu0 %v27953_v45 }
 0x7fd   :  { %18398 = vst.msk [vmem:[#allocation5 + $0x260] sm:$0xff] %vm42_vm0, %v17876_v38  ;;  %v19419_v49 = vsel %vm42_vm0, %v17876_v38, 0  ;;  %v27196_v18 = vpop.f32.mrf.mxu0 }
 0x7fe   :  { %v19502_v8 = vsub.f32 %v19422_v13, %v29323_v50  ;;  %v19491_v6 = vand.u32 4294901760, %v19419_v49  ;;  %v18062_v51 = vadd.f32 %v27203_v61, %v27196_v18  ;;  %v27231_v41 = vpop.f32.mrf.mxu1 }
 0x7ff   :  { %v17964_v27 = vpop.f32.mrf.mxu0 }
 0x800   :  { %v19503_v1 = vand.u32 4294901760, %v19502_v8  ;;  %v19492_v15 = vsub.f32 %v19419_v49, %v19491_v6  ;;  %27327 = vmatprep.mubr.f32.mxu1 %v19491_v6  ;;  %v18056_v25 = vadd.f32 %v18055_v29, %v17964_v27  ;;  %v18383_v29 = vpop.f32.mrf.mxu1 }
 0x801   :  { %27328 = vmatmul.mubr.f32.vlgmr.msra.gmra.mxu1 %v29323_v50 }
 0x802   :  { %v27210_v5 = vpop.f32.mrf.mxu0  ;;  %27338 = vmatpush3.msra.mxu1 %v27939_v43  ;;  %v19493_v26 = vand.u32 4294901760, %v19492_v15  ;;  %v19504_v14 = vsub.f32 %v19502_v8, %v19503_v1 }
 0x803   :  { %v18145_v37 = vadd.f32 %v27210_v5, %v18062_v51  ;;  %27339 = vmatprep.subr.mxu1 %v27946_v44 }
 0x804   :  { %v18137_v4 = vpop.f32.mrf.mxu0  ;;  %27340 = vmatpush3.msra.mxu1 %v27946_v44  ;;  %27341 = vmatprep.mubr.f32.mxu1 %v19493_v26  ;;  %v19494_v23 = vsub.f32 %v19492_v15, %v19493_v26  ;;  %v19505_v62 = vand.u32 4294901760, %v19504_v14 }
 0x805   :  { %v18138_v19 = vadd.f32 %v18137_v4, %v18056_v25  ;;  %v18228_v20 = vadd.f32 %v27217_v53, %v18145_v37  ;;  %27342 = vmatmul.mubr.f32.vlgmr.msra.gmra.mxu1 %v19503_v1  ;;  %27351 = vmatprep.subr.mxu1 %v27939_v43 }
 0x806   :  { %v27224_v2 = vpop.f32.mrf.mxu0  ;;  %27352 = vmatpush3.msra.mxu1 %v27939_v43  ;;  %27355 = vmatprep.mubr.f32.mxu1 %v19491_v6  ;;  %v19495_v61 = vand.u32 4294901760, %v19494_v23 }
 0x807   :  { %v18311_v3 = vadd.f32 %v27224_v2, %v18228_v20  ;;  %v18220_v7 = vadd.f32 %v18219_v24, %v18138_v19  ;;  %27353 = vmatprep.subr.mxu1 %v27946_v44 }
 0x808   :  { %v18304_v9 = vpop.f32.mrf.mxu0  ;;  %27320 = vmatprep.mubr.f32.mxu0 %v19495_v61  ;;  %27354 = vmatpush3.msra.mxu1 %v27946_v44 }
 0x809   :  { %v18390_v10 = vadd.f32 %v27231_v41, %v18311_v3  ;;  %v18305_v39 = vadd.f32 %v18304_v9, %v18220_v7  ;;  %27321 = vmatmul.mubr.f32.vlgmr.msra.gmra.mxu0 %v19505_v62  ;;  %27356 = vmatmul.mubr.f32.vlgmr.msra.gmra.mxu1 %v29323_v50 }
 0x80a   :  { %27365 = vmatprep.subr.mxu1 %v28062_v63  ;;  %27331 = vmatpush3.msra.mxu0 %v27953_v45 }
 0x80b   :  { %18401 = vst.msk [vmem:[#allocation5 + $0x278] sm:$0xff] %vm42_vm0, %v18390_v10  ;;  %v19930_v13 = vsel %vm42_vm0, %v18390_v10, 0  ;;  %v18384_v38 = vadd.f32 %v18383_v29, %v18305_v39  ;;  %27334 = vmatprep.mubr.f32.mxu0 %v19492_v15  ;;  %27366 = vmatpush3.msra.mxu1 %v28062_v63 }
 0x80c   :  { %v20009_v49 = vand.u32 4294901760, %v19930_v13  ;;  %27332 = vmatprep.subr.mxu0 %v27961_v46  ;;  %27367 = vmatprep.subr.mxu1 %v28069_v0 }
 0x80d   :  { %18400 = vst.msk [vmem:[#allocation5 + $0x270] sm:$0xff] %vm42_vm0, %v18384_v38  ;;  %v19927_v18 = vsel %vm42_vm0, %v18384_v38, 0  ;;  %27333 = vmatpush3.msra.mxu0 %v27961_v46  ;;  %27368 = vmatpush3.msra.mxu1 %v28069_v0 }
 0x80e   :  { %v20010_v53 = vsub.f32 %v19930_v13, %v20009_v49  ;;  %v19999_v27 = vand.u32 4294901760, %v19927_v18  ;;  %27335 = vmatmul.mubr.f32.vlgmr.msra.gmra.mxu0 %v19502_v8  ;;  %27344 = vmatprep.subr.mxu0 %v27969_v47 }
 0x80f   :  { %27379 = vmatprep.subr.mxu1 %v28005_v55  ;;  %27345 = vmatpush3.msra.mxu0 %v27969_v47 }
 0x810   :  { %v20011_v1 = vand.u32 4294901760, %v20010_v53  ;;  %v20000_v15 = vsub.f32 %v19927_v18, %v19999_v27  ;;  %27369 = vmatprep.mubr.f32.mxu1 %v19999_v27  ;;  %27348 = vmatprep.mubr.f32.mxu0 %v19491_v6 }
 0x811   :  { %27370 = vmatmul.mubr.f32.vlgmr.msra.gmra.mxu1 %v20009_v49  ;;  %27346 = vmatprep.subr.mxu0 %v27976_v48 }
 0x812   :  { %27380 = vmatpush3.msra.mxu1 %v28005_v55  ;;  %27347 = vmatpush3.msra.mxu0 %v27976_v48  ;;  %v20001_v51 = vand.u32 4294901760, %v20000_v15  ;;  %v20012_v8 = vsub.f32 %v20010_v53, %v20011_v1 }
 0x813   :  { %27381 = vmatprep.subr.mxu1 %v28012_v56  ;;  %27349 = vmatmul.mubr.f32.vlgmr.msra.gmra.mxu0 %v29323_v50 }
 0x814   :  { %27382 = vmatpush3.msra.mxu1 %v28012_v56  ;;  %27383 = vmatprep.mubr.f32.mxu1 %v20001_v51  ;;  %v20002_v24 = vsub.f32 %v20000_v15, %v20001_v51  ;;  %v20013_v5 = vand.u32 4294901760, %v20012_v8 }
 0x815   :  { %27358 = vmatprep.subr.mxu0 %v28005_v55  ;;  %27384 = vmatmul.mubr.f32.vlgmr.msra.gmra.mxu1 %v20011_v1 }
 0x816   :  { %27393 = vmatprep.subr.mxu1 %v28005_v55  ;;  %27359 = vmatpush3.msra.mxu0 %v28005_v55  ;;  %v20003_v6 = vand.u32 4294901760, %v20002_v24 }
 0x817   :  { %27394 = vmatpush3.msra.mxu1 %v28005_v55  ;;  %27397 = vmatprep.mubr.f32.mxu1 %v19999_v27 }
 0x818   :  { %27360 = vmatprep.subr.mxu0 %v28012_v56  ;;  %27395 = vmatprep.subr.mxu1 %v28012_v56 }
 0x819   :  { %27361 = vmatpush3.msra.mxu0 %v28012_v56  ;;  %27362 = vmatprep.mubr.f32.mxu0 %v20003_v6 }
 0x81a   :  { %27396 = vmatpush3.msra.mxu1 %v28012_v56  ;;  %27363 = vmatmul.mubr.f32.vlgmr.msra.gmra.mxu0 %v20013_v5 }
 0x81b   :  { %27372 = vmatprep.subr.mxu0 %v28019_v57  ;;  %27398 = vmatmul.mubr.f32.vlgmr.msra.gmra.mxu1 %v20009_v49 }
 0x81c   :  { %27373 = vmatpush3.msra.mxu0 %v28019_v57  ;;  %27376 = vmatprep.mubr.f32.mxu0 %v20000_v15 }
 0x81d   :  { %27374 = vmatprep.subr.mxu0 %v28027_v58  ;;  %27407 = vmatprep.subr.mxu1 %v27878_v30 }
 0x81e   :  { %27375 = vmatpush3.msra.mxu0 %v28027_v58  ;;  %27408 = vmatpush3.msra.mxu1 %v27878_v30 }
 0x81f   :  { %27377 = vmatmul.mubr.f32.vlgmr.msra.gmra.mxu0 %v20010_v53  ;;  %27386 = vmatprep.subr.mxu0 %v28035_v59 }
 0x820   :  { %27387 = vmatpush3.msra.mxu0 %v28035_v59  ;;  %27390 = vmatprep.mubr.f32.mxu0 %v19999_v27 }
 0x821   :  { %27388 = vmatprep.subr.mxu0 %v28042_v60  ;;  %27409 = vmatprep.subr.mxu1 %v27880_v31 }
 0x822   :  { %27389 = vmatpush3.msra.mxu0 %v28042_v60  ;;  %27410 = vmatpush3.msra.mxu1 %v27880_v31 }
 0x823   :  { %27391 = vmatmul.mubr.f32.vlgmr.msra.gmra.mxu0 %v20009_v49  ;;  %27421 = vmatprep.subr.mxu1 %v27824_v11 }
 0x824   :  { %27400 = vmatprep.subr.mxu0 %v27824_v11 }
 0x825   :  { %27401 = vmatpush3.msra.mxu0 %v27824_v11 }
 0x826   :  { %27402 = vmatprep.subr.mxu0 %v27826_v12 }
 0x827   :  { %27403 = vmatpush3.msra.mxu0 %v27826_v12 }
 0x828   :  { %27414 = vmatprep.subr.mxu0 %v27845_v16 }
 0x894   :  { %v27245_v50 = vpop.f32.mrf.mxu1 }
 0x896   :  { %v18572_v26 = vpop.f32.mrf.mxu1 }
 0x898   :  { %v27259_v14 = vpop.f32.mrf.mxu1 }
 0x89a   :  { %v18736_v25 = vpop.f32.mrf.mxu1 }
 0x89c   :  { %v27238_v37 = vpop.f32.mrf.mxu0  ;;  %v27273_v19 = vpop.f32.mrf.mxu1 }
 0x89d   :  { %v18579_v23 = vadd.f32 %v27245_v50, %v27238_v37 }
 0x89e   :  { %v18481_v4 = vpop.f32.mrf.mxu0  ;;  %v18900_v62 = vpop.f32.mrf.mxu1 }
 0x89f   :  { %v18573_v41 = vadd.f32 %v18572_v26, %v18481_v4 }
 0x8a1   :  { %v27252_v20 = vpop.f32.mrf.mxu0 }
 0x8a2   :  { %v18662_v2 = vadd.f32 %v27252_v20, %v18579_v23 }
 0x8a3   :  { %v18654_v61 = vpop.f32.mrf.mxu0 }
 0x8a4   :  { %v18655_v3 = vadd.f32 %v18654_v61, %v18573_v41  ;;  %v18745_v7 = vadd.f32 %v27259_v14, %v18662_v2 }
 0x8a5   :  { %v27266_v9 = vpop.f32.mrf.mxu0 }
 0x8a6   :  { %v18828_v10 = vadd.f32 %v27266_v9, %v18745_v7  ;;  %v18737_v39 = vadd.f32 %v18736_v25, %v18655_v3 }
 0x8a7   :  { %v18821_v29 = vpop.f32.mrf.mxu0  ;;  %v27287_v13 = vpop.f32.mrf.mxu1 }
 0x8a8   :  { %v18907_v38 = vadd.f32 %v27273_v19, %v18828_v10  ;;  %v18822_v49 = vadd.f32 %v18821_v29, %v18737_v39 }
 0x8a9   :  { %v19080_v1 = vpop.f32.mrf.mxu1 }
 0x8aa   :  { %20436 = vst.msk [vmem:[#allocation5 + $0x288] sm:$0xff] %vm42_vm0, %v18907_v38  ;;  %v20447_v18 = vsel %vm42_vm0, %v18907_v38, 0  ;;  %v18901_v53 = vadd.f32 %v18900_v62, %v18822_v49 }
 0x8ab   :  { %v29386_v27 = vand.u32 4294901760, %v20447_v18  ;;  %v27301_v50 = vpop.f32.mrf.mxu1 }
 0x8ac   :  { %20435 = vst.msk [vmem:[#allocation5 + $0x280] sm:$0xff] %vm42_vm0, %v18901_v53  ;;  %v20444_v15 = vsel %vm42_vm0, %v18901_v53, 0 }
 0x8ad   :  { %v20527_v51 = vsub.f32 %v20447_v18, %v29386_v27  ;;  %v20516_v8 = vand.u32 4294901760, %v20444_v15  ;;  %v19244_v23 = vpop.f32.mrf.mxu1 }
 0x8af   :  { %v20528_v24 = vand.u32 4294901760, %v20527_v51  ;;  %v20517_v6 = vsub.f32 %v20444_v15, %v20516_v8  ;;  %v27280_v5 = vpop.f32.mrf.mxu0  ;;  %27411 = vmatprep.mubr.f32.mxu1 %v20516_v8  ;;  %v27315_v9 = vpop.f32.mrf.mxu1 }
 0x8b0   :  { %27412 = vmatmul.mubr.f32.vlgmr.msra.gmra.mxu1 %v29386_v27  ;;  %v19087_v37 = vadd.f32 %v27287_v13, %v27280_v5 }
 0x8b1   :  { %v18989_v26 = vpop.f32.mrf.mxu0  ;;  %27422 = vmatpush3.msra.mxu1 %v27824_v11  ;;  %v20518_v14 = vand.u32 4294901760, %v20517_v6  ;;  %v20529_v25 = vsub.f32 %v20527_v51, %v20528_v24  ;;  %v19408_v18 = vpop.f32.mrf.mxu1 }
 0x8b2   :  { %27423 = vmatprep.subr.mxu1 %v27826_v12  ;;  %v19081_v20 = vadd.f32 %v19080_v1, %v18989_v26 }
 0x8b3   :  { %27424 = vmatpush3.msra.mxu1 %v27826_v12  ;;  %27425 = vmatprep.mubr.f32.mxu1 %v20518_v14  ;;  %v20519_v4 = vsub.f32 %v20517_v6, %v20518_v14  ;;  %v20530_v61 = vand.u32 4294901760, %v20529_v25 }
 0x8b4   :  { %v27294_v19 = vpop.f32.mrf.mxu0  ;;  %27426 = vmatmul.mubr.f32.vlgmr.msra.gmra.mxu1 %v20528_v24  ;;  %27435 = vmatprep.subr.mxu1 %v27824_v11 }
 0x8b5   :  { %v19170_v41 = vadd.f32 %v27294_v19, %v19087_v37  ;;  %27436 = vmatpush3.msra.mxu1 %v27824_v11  ;;  %27439 = vmatprep.mubr.f32.mxu1 %v20516_v8  ;;  %v20520_v2 = vand.u32 4294901760, %v20519_v4 }
 0x8b6   :  { %v19162_v62 = vpop.f32.mrf.mxu0  ;;  %27437 = vmatprep.subr.mxu1 %v27826_v12 }
 0x8b7   :  { %v19163_v3 = vadd.f32 %v19162_v62, %v19081_v20  ;;  %v19253_v7 = vadd.f32 %v27301_v50, %v19170_v41  ;;  %27404 = vmatprep.mubr.f32.mxu0 %v20520_v2  ;;  %27438 = vmatpush3.msra.mxu1 %v27826_v12 }
 0x8b8   :  { %v27308_v10 = vpop.f32.mrf.mxu0  ;;  %27405 = vmatmul.mubr.f32.vlgmr.msra.gmra.mxu0 %v20530_v61  ;;  %27440 = vmatmul.mubr.f32.vlgmr.msra.gmra.mxu1 %v29386_v27 }
 0x8b9   :  { %v19336_v39 = vadd.f32 %v27308_v10, %v19253_v7  ;;  %v19245_v29 = vadd.f32 %v19244_v23, %v19163_v3  ;;  %27449 = vmatprep.subr.mxu1 %v27930_v40  ;;  %27415 = vmatpush3.msra.mxu0 %v27845_v16 }
 0x8ba   :  { %v19329_v13 = vpop.f32.mrf.mxu0  ;;  %27418 = vmatprep.mubr.f32.mxu0 %v20517_v6  ;;  %27450 = vmatpush3.msra.mxu1 %v27930_v40 }
 0x8bb   :  { %v19415_v38 = vadd.f32 %v27315_v9, %v19336_v39  ;;  %v19330_v49 = vadd.f32 %v19329_v13, %v19245_v29  ;;  %27416 = vmatprep.subr.mxu0 %v27848_v17  ;;  %27451 = vmatprep.subr.mxu1 %v27937_v42 }
 0x8bc   :  { %27417 = vmatpush3.msra.mxu0 %v27848_v17  ;;  %27452 = vmatpush3.msra.mxu1 %v27937_v42 }
 0x8bd   :  { %20438 = vst.msk [vmem:[#allocation5 + $0x298] sm:$0xff] %vm42_vm0, %v19415_v38  ;;  %v20955_v53 = vsel %vm42_vm0, %v19415_v38, 0  ;;  %v19409_v1 = vadd.f32 %v19408_v18, %v19330_v49  ;;  %27419 = vmatmul.mubr.f32.vlgmr.msra.gmra.mxu0 %v20527_v51  ;;  %27428 = vmatprep.subr.mxu0 %v27858_v21 }
 0x8be   :  { %v29410_v15 = vand.u32 4294901760, %v20955_v53  ;;  %27463 = vmatprep.subr.mxu1 %v27873_v28  ;;  %27429 = vmatpush3.msra.mxu0 %v27858_v21 }
 0x8bf   :  { %20437 = vst.msk [vmem:[#allocation5 + $0x290] sm:$0xff] %vm42_vm0, %v19409_v1  ;;  %v20952_v24 = vsel %vm42_vm0, %v19409_v1, 0  ;;  %27432 = vmatprep.mubr.f32.mxu0 %v20516_v8  ;;  %27430 = vmatprep.subr.mxu0 %v27861_v22 }
 0x8c0   :  { %v21035_v6 = vsub.f32 %v20955_v53, %v29410_v15  ;;  %v21024_v5 = vand.u32 4294901760, %v20952_v24  ;;  %27431 = vmatpush3.msra.mxu0 %v27861_v22 }
 0x8c1   :  { %v27329_v51 = vpop.f32.mrf.mxu1  ;;  %27433 = vmatmul.mubr.f32.vlgmr.msra.gmra.mxu0 %v29386_v27  ;;  %27442 = vmatprep.subr.mxu0 %v27873_v28 }
 0x8c2   :  { %v21036_v50 = vand.u32 4294901760, %v21035_v6  ;;  %v21025_v26 = vsub.f32 %v20952_v24, %v21024_v5  ;;  %27453 = vmatprep.mubr.f32.mxu1 %v21024_v5  ;;  %27443 = vmatpush3.msra.mxu0 %v27873_v28 }
 0x8c3   :  { %v19588_v14 = vpop.f32.mrf.mxu1  ;;  %27454 = vmatmul.mubr.f32.vlgmr.msra.gmra.mxu1 %v29410_v15  ;;  %27444 = vmatprep.subr.mxu0 %v27882_v32 }
 0x8c4   :  { %27464 = vmatpush3.msra.mxu1 %v27873_v28  ;;  %v21026_v8 = vand.u32 4294901760, %v21025_v26  ;;  %27445 = vmatpush3.msra.mxu0 %v27882_v32  ;;  %v21037_v25 = vsub.f32 %v21035_v6, %v21036_v50 }
 0x8c5   :  { %v27343_v37 = vpop.f32.mrf.mxu1  ;;  %27465 = vmatprep.subr.mxu1 %v27882_v32  ;;  %27456 = vmatprep.subr.mxu0 %v27888_v33 }
 0x8c6   :  { %27466 = vmatpush3.msra.mxu1 %v27882_v32  ;;  %27467 = vmatprep.mubr.f32.mxu1 %v21026_v8  ;;  %v21027_v27 = vsub.f32 %v21025_v26, %v21026_v8  ;;  %v21038_v19 = vand.u32 4294901760, %v21037_v25 }
 0x8c7   :  { %v19752_v4 = vpop.f32.mrf.mxu1  ;;  %27468 = vmatmul.mubr.f32.vlgmr.msra.gmra.mxu1 %v21036_v50  ;;  %27477 = vmatprep.subr.mxu1 %v27873_v28 }
 0x8c8   :  { %27478 = vmatpush3.msra.mxu1 %v27873_v28  ;;  %27481 = vmatprep.mubr.f32.mxu1 %v21024_v5  ;;  %v21028_v23 = vand.u32 4294901760, %v21027_v27 }
 0x8c9   :  { %v27322_v20 = vpop.f32.mrf.mxu0  ;;  %27479 = vmatprep.subr.mxu1 %v27882_v32  ;;  %v27357_v41 = vpop.f32.mrf.mxu1 }
 0x8ca   :  { %27446 = vmatprep.mubr.f32.mxu0 %v21028_v23  ;;  %27480 = vmatpush3.msra.mxu1 %v27882_v32  ;;  %v19595_v61 = vadd.f32 %v27329_v51, %v27322_v20 }
 0x8cb   :  { %v19497_v2 = vpop.f32.mrf.mxu0  ;;  %27447 = vmatmul.mubr.f32.vlgmr.msra.gmra.mxu0 %v21038_v19  ;;  %27482 = vmatmul.mubr.f32.vlgmr.msra.gmra.mxu1 %v29410_v15  ;;  %v19916_v7 = vpop.f32.mrf.mxu1 }
 0x8cc   :  { %27491 = vmatprep.subr.mxu1 %v27996_v52  ;;  %27457 = vmatpush3.msra.mxu0 %v27888_v33  ;;  %v19589_v3 = vadd.f32 %v19588_v14, %v19497_v2 }
 0x8cd   :  { %27460 = vmatprep.mubr.f32.mxu0 %v21025_v26  ;;  %27492 = vmatpush3.msra.mxu1 %v27996_v52 }
 0x8ce   :  { %v27336_v62 = vpop.f32.mrf.mxu0  ;;  %27458 = vmatprep.subr.mxu0 %v27895_v34  ;;  %27493 = vmatprep.subr.mxu1 %v28003_v54 }
 0x8cf   :  { %v19678_v9 = vadd.f32 %v27336_v62, %v19595_v61  ;;  %27459 = vmatpush3.msra.mxu0 %v27895_v34  ;;  %27494 = vmatpush3.msra.mxu1 %v28003_v54 }
 0x8d0   :  { %v19670_v10 = vpop.f32.mrf.mxu0  ;;  %27461 = vmatmul.mubr.f32.vlgmr.msra.gmra.mxu0 %v21035_v6  ;;  %27470 = vmatprep.subr.mxu0 %v27903_v35 }
 0x8d1   :  { %v19671_v39 = vadd.f32 %v19670_v10, %v19589_v3  ;;  %v19761_v29 = vadd.f32 %v27343_v37, %v19678_v9  ;;  %27505 = vmatprep.subr.mxu1 %v27939_v43  ;;  %27471 = vmatpush3.msra.mxu0 %v27903_v35  ;;  %v27371_v13 = vpop.f32.mrf.mxu1 }
 0x8d2   :  { %27474 = vmatprep.mubr.f32.mxu0 %v21024_v5  ;;  %27472 = vmatprep.subr.mxu0 %v27910_v36 }
 0x8d3   :  { %v27350_v38 = vpop.f32.mrf.mxu0  ;;  %v19753_v49 = vadd.f32 %v19752_v4, %v19671_v39  ;;  %27473 = vmatpush3.msra.mxu0 %v27910_v36  ;;  %v20096_v6 = vpop.f32.mrf.mxu1 }
 0x8d4   :  { %v19844_v18 = vadd.f32 %v27350_v38, %v19761_v29  ;;  %27475 = vmatmul.mubr.f32.vlgmr.msra.gmra.mxu0 %v29410_v15  ;;  %27484 = vmatprep.subr.mxu0 %v27939_v43 }
 0x8d5   :  { %v19837_v53 = vpop.f32.mrf.mxu0  ;;  %27485 = vmatpush3.msra.mxu0 %v27939_v43  ;;  %v27385_v8 = vpop.f32.mrf.mxu1 }
 0x8d6   :  { %v19923_v1 = vadd.f32 %v27357_v41, %v19844_v18  ;;  %v19838_v24 = vadd.f32 %v19837_v53, %v19753_v49  ;;  %27486 = vmatprep.subr.mxu0 %v27946_v44 }
 0x8d7   :  { %27487 = vmatpush3.msra.mxu0 %v27946_v44  ;;  %v20260_v19 = vpop.f32.mrf.mxu1 }
 0x8d8   :  { %20440 = vst.msk [vmem:[#allocation5 + $0x2a8] sm:$0xff] %vm42_vm0, %v19923_v1  ;;  %v21463_v5 = vsel %vm42_vm0, %v19923_v1, 0  ;;  %v19917_v51 = vadd.f32 %v19916_v7, %v19838_v24  ;;  %27498 = vmatprep.subr.mxu0 %v27953_v45 }
 0x8d9   :  { %v29454_v15 = vand.u32 4294901760, %v21463_v5 }
 0x8da   :  { %20439 = vst.msk [vmem:[#allocation5 + $0x2a0] sm:$0xff] %vm42_vm0, %v19917_v51  ;;  %v21460_v50 = vsel %vm42_vm0, %v19917_v51, 0  ;;  %v27364_v26 = vpop.f32.mrf.mxu0 }
 0x8db   :  { %v21543_v14 = vsub.f32 %v21463_v5, %v29454_v15  ;;  %v21532_v25 = vand.u32 4294901760, %v21460_v50  ;;  %v20103_v23 = vadd.f32 %v27371_v13, %v27364_v26  ;;  %v27399_v39 = vpop.f32.mrf.mxu1 }
 0x8dc   :  { %v20005_v37 = vpop.f32.mrf.mxu0 }
 0x8dd   :  { %v21544_v27 = vand.u32 4294901760, %v21543_v14  ;;  %v21533_v4 = vsub.f32 %v21460_v50, %v21532_v25  ;;  %27495 = vmatprep.mubr.f32.mxu1 %v21532_v25  ;;  %v20097_v61 = vadd.f32 %v20096_v6, %v20005_v37  ;;  %v20424_v6 = vpop.f32.mrf.mxu1 }
 0x8de   :  { %27496 = vmatmul.mubr.f32.vlgmr.msra.gmra.mxu1 %v29454_v15 }
 0x8df   :  { %v27378_v20 = vpop.f32.mrf.mxu0  ;;  %27506 = vmatpush3.msra.mxu1 %v27939_v43  ;;  %v21534_v41 = vand.u32 4294901760, %v21533_v4  ;;  %v21545_v2 = vsub.f32 %v21543_v14, %v21544_v27 }
 0x8e0   :  { %v20186_v62 = vadd.f32 %v27378_v20, %v20103_v23  ;;  %27507 = vmatprep.subr.mxu1 %v27946_v44 }
 0x8e1   :  { %v20178_v3 = vpop.f32.mrf.mxu0  ;;  %27508 = vmatpush3.msra.mxu1 %v27946_v44  ;;  %27509 = vmatprep.mubr.f32.mxu1 %v21534_v41  ;;  %v21535_v7 = vsub.f32 %v21533_v4, %v21534_v41  ;;  %v21546_v38 = vand.u32 4294901760, %v21545_v2 }
 0x8e2   :  { %v20179_v9 = vadd.f32 %v20178_v3, %v20097_v61  ;;  %v20269_v10 = vadd.f32 %v27385_v8, %v20186_v62  ;;  %27510 = vmatmul.mubr.f32.vlgmr.msra.gmra.mxu1 %v21544_v27  ;;  %27519 = vmatprep.subr.mxu1 %v27939_v43 }
 0x8e3   :  { %v27392_v29 = vpop.f32.mrf.mxu0  ;;  %27520 = vmatpush3.msra.mxu1 %v27939_v43  ;;  %27523 = vmatprep.mubr.f32.mxu1 %v21532_v25  ;;  %v21536_v13 = vand.u32 4294901760, %v21535_v7 }
 0x8e4   :  { %v20352_v49 = vadd.f32 %v27392_v29, %v20269_v10  ;;  %v20261_v18 = vadd.f32 %v20260_v19, %v20179_v9  ;;  %27521 = vmatprep.subr.mxu1 %v27946_v44 }
 0x8e5   :  { %v20345_v53 = vpop.f32.mrf.mxu0  ;;  %27488 = vmatprep.mubr.f32.mxu0 %v21536_v13  ;;  %27522 = vmatpush3.msra.mxu1 %v27946_v44 }
 0x8e6   :  { %v20431_v1 = vadd.f32 %v27399_v39, %v20352_v49  ;;  %v20346_v24 = vadd.f32 %v20345_v53, %v20261_v18  ;;  %27489 = vmatmul.mubr.f32.vlgmr.msra.gmra.mxu0 %v21546_v38  ;;  %27524 = vmatmul.mubr.f32.vlgmr.msra.gmra.mxu1 %v29454_v15 }
 0x8e7   :  { %27533 = vmatprep.subr.mxu1 %v28062_v63  ;;  %27499 = vmatpush3.msra.mxu0 %v27953_v45 }
 0x8e8   :  { %20442 = vst.msk [vmem:[#allocation5 + $0x2b8] sm:$0xff] %vm42_vm0, %v20431_v1  ;;  %v21971_v5 = vsel %vm42_vm0, %v20431_v1, 0  ;;  %v20425_v51 = vadd.f32 %v20424_v6, %v20346_v24  ;;  %27502 = vmatprep.mubr.f32.mxu0 %v21533_v4  ;;  %27534 = vmatpush3.msra.mxu1 %v28062_v63 }
 0x8e9   :  { %v22050_v50 = vand.u32 4294901760, %v21971_v5  ;;  %27500 = vmatprep.subr.mxu0 %v27961_v46  ;;  %27535 = vmatprep.subr.mxu1 %v28069_v0 }
 0x8ea   :  { %20441 = vst.msk [vmem:[#allocation5 + $0x2b0] sm:$0xff] %vm42_vm0, %v20425_v51  ;;  %v21968_v26 = vsel %vm42_vm0, %v20425_v51, 0  ;;  %27501 = vmatpush3.msra.mxu0 %v27961_v46  ;;  %27536 = vmatpush3.msra.mxu1 %v28069_v0 }
 0x8eb   :  { %v22051_v8 = vsub.f32 %v21971_v5, %v22050_v50  ;;  %v22040_v37 = vand.u32 4294901760, %v21968_v26  ;;  %27503 = vmatmul.mubr.f32.vlgmr.msra.gmra.mxu0 %v21543_v14  ;;  %27512 = vmatprep.subr.mxu0 %v27969_v47 }
 0x8ec   :  { %27547 = vmatprep.subr.mxu1 %v28005_v55  ;;  %27513 = vmatpush3.msra.mxu0 %v27969_v47 }
 0x8ed   :  { %v22052_v27 = vand.u32 4294901760, %v22051_v8  ;;  %v22041_v4 = vsub.f32 %v21968_v26, %v22040_v37  ;;  %27537 = vmatprep.mubr.f32.mxu1 %v22040_v37  ;;  %27516 = vmatprep.mubr.f32.mxu0 %v21532_v25 }
 0x8ee   :  { %27538 = vmatmul.mubr.f32.vlgmr.msra.gmra.mxu1 %v22050_v50  ;;  %27514 = vmatprep.subr.mxu0 %v27976_v48 }
 0x8ef   :  { %27548 = vmatpush3.msra.mxu1 %v28005_v55  ;;  %27515 = vmatpush3.msra.mxu0 %v27976_v48  ;;  %v22042_v23 = vand.u32 4294901760, %v22041_v4  ;;  %v22053_v14 = vsub.f32 %v22051_v8, %v22052_v27 }
 0x8f0   :  { %27549 = vmatprep.subr.mxu1 %v28012_v56  ;;  %27517 = vmatmul.mubr.f32.vlgmr.msra.gmra.mxu0 %v29454_v15 }
 0x8f1   :  { %27550 = vmatpush3.msra.mxu1 %v28012_v56  ;;  %27551 = vmatprep.mubr.f32.mxu1 %v22042_v23  ;;  %v22043_v19 = vsub.f32 %v22041_v4, %v22042_v23  ;;  %v22054_v20 = vand.u32 4294901760, %v22053_v14 }
 0x8f2   :  { %27526 = vmatprep.subr.mxu0 %v28005_v55  ;;  %27552 = vmatmul.mubr.f32.vlgmr.msra.gmra.mxu1 %v22052_v27 }
 0x8f3   :  { %27561 = vmatprep.subr.mxu1 %v28005_v55  ;;  %27527 = vmatpush3.msra.mxu0 %v28005_v55  ;;  %v22044_v25 = vand.u32 4294901760, %v22043_v19 }
 0x8f4   :  { %27562 = vmatpush3.msra.mxu1 %v28005_v55  ;;  %27565 = vmatprep.mubr.f32.mxu1 %v22040_v37 }
 0x8f5   :  { %27528 = vmatprep.subr.mxu0 %v28012_v56  ;;  %27563 = vmatprep.subr.mxu1 %v28012_v56 }
 0x8f6   :  { %27529 = vmatpush3.msra.mxu0 %v28012_v56  ;;  %27530 = vmatprep.mubr.f32.mxu0 %v22044_v25 }
 0x8f7   :  { %27564 = vmatpush3.msra.mxu1 %v28012_v56  ;;  %27531 = vmatmul.mubr.f32.vlgmr.msra.gmra.mxu0 %v22054_v20 }
 0x8f8   :  { %27540 = vmatprep.subr.mxu0 %v28019_v57  ;;  %27566 = vmatmul.mubr.f32.vlgmr.msra.gmra.mxu1 %v22050_v50 }
 0x8f9   :  { %27541 = vmatpush3.msra.mxu0 %v28019_v57  ;;  %27544 = vmatprep.mubr.f32.mxu0 %v22041_v4 }
 0x8fa   :  { %27542 = vmatprep.subr.mxu0 %v28027_v58  ;;  %27575 = vmatprep.subr.mxu1 %v27878_v30 }
 0x8fb   :  { %27543 = vmatpush3.msra.mxu0 %v28027_v58  ;;  %27576 = vmatpush3.msra.mxu1 %v27878_v30 }
 0x8fc   :  { %27545 = vmatmul.mubr.f32.vlgmr.msra.gmra.mxu0 %v22051_v8  ;;  %27554 = vmatprep.subr.mxu0 %v28035_v59 }
 0x8fd   :  { %27555 = vmatpush3.msra.mxu0 %v28035_v59  ;;  %27558 = vmatprep.mubr.f32.mxu0 %v22040_v37 }
 0x8fe   :  { %27556 = vmatprep.subr.mxu0 %v28042_v60  ;;  %27577 = vmatprep.subr.mxu1 %v27880_v31 }
 0x8ff   :  { %27557 = vmatpush3.msra.mxu0 %v28042_v60  ;;  %27578 = vmatpush3.msra.mxu1 %v27880_v31 }
 0x900   :  { %27559 = vmatmul.mubr.f32.vlgmr.msra.gmra.mxu0 %v22050_v50  ;;  %27589 = vmatprep.subr.mxu1 %v27824_v11 }
 0x901   :  { %27568 = vmatprep.subr.mxu0 %v27824_v11 }
 0x902   :  { %27569 = vmatpush3.msra.mxu0 %v27824_v11 }
 0x903   :  { %27570 = vmatprep.subr.mxu0 %v27826_v12 }
 0x904   :  { %27571 = vmatpush3.msra.mxu0 %v27826_v12 }
 0x905   :  { %27582 = vmatprep.subr.mxu0 %v27845_v16 }
 0x970   :  { %v27413_v30 = vpop.f32.mrf.mxu1 }
 0x972   :  { %v20613_v15 = vpop.f32.mrf.mxu1 }
 0x974   :  { %v27427_v41 = vpop.f32.mrf.mxu1 }
 0x976   :  { %v20777_v2 = vpop.f32.mrf.mxu1 }
 0x978   :  { %v27406_v61 = vpop.f32.mrf.mxu0  ;;  %v27441_v3 = vpop.f32.mrf.mxu1 }
 0x979   :  { %v20620_v31 = vadd.f32 %v27413_v30, %v27406_v61 }
 0x97a   :  { %v20522_v62 = vpop.f32.mrf.mxu0  ;;  %v20941_v29 = vpop.f32.mrf.mxu1 }
 0x97b   :  { %v20614_v9 = vadd.f32 %v20613_v15, %v20522_v62 }
 0x97d   :  { %v27420_v7 = vpop.f32.mrf.mxu0 }
 0x97e   :  { %v20703_v10 = vadd.f32 %v27420_v7, %v20620_v31 }
 0x97f   :  { %v20695_v39 = vpop.f32.mrf.mxu0 }
 0x980   :  { %v20696_v13 = vadd.f32 %v20695_v39, %v20614_v9  ;;  %v20786_v38 = vadd.f32 %v27427_v41, %v20703_v10 }
 0x981   :  { %v27434_v49 = vpop.f32.mrf.mxu0 }
 0x982   :  { %v20869_v18 = vadd.f32 %v27434_v49, %v20786_v38  ;;  %v20778_v53 = vadd.f32 %v20777_v2, %v20696_v13 }
 0x983   :  { %v20862_v1 = vpop.f32.mrf.mxu0  ;;  %v27455_v24 = vpop.f32.mrf.mxu1 }
 0x984   :  { %v20948_v6 = vadd.f32 %v27441_v3, %v20869_v18  ;;  %v20863_v5 = vadd.f32 %v20862_v1, %v20778_v53 }
 0x985   :  { %v21121_v8 = vpop.f32.mrf.mxu1 }
 0x986   :  { %22477 = vst.msk [vmem:[#allocation5 + $0x2c8] sm:$0xff] %vm42_vm0, %v20948_v6  ;;  %v22488_v51 = vsel %vm42_vm0, %v20948_v6, 0  ;;  %v20942_v50 = vadd.f32 %v20941_v29, %v20863_v5 }
 0x987   :  { %v29516_v26 = vand.u32 4294901760, %v22488_v51  ;;  %v27469_v25 = vpop.f32.mrf.mxu1 }
 0x988   :  { %22476 = vst.msk [vmem:[#allocation5 + $0x2c0] sm:$0xff] %vm42_vm0, %v20942_v50  ;;  %v22485_v37 = vsel %vm42_vm0, %v20942_v50, 0 }
 0x989   :  { %v22568_v27 = vsub.f32 %v22488_v51, %v29516_v26  ;;  %v22557_v4 = vand.u32 4294901760, %v22485_v37  ;;  %v21285_v61 = vpop.f32.mrf.mxu1 }
 0x98b   :  { %v22569_v23 = vand.u32 4294901760, %v22568_v27  ;;  %v22558_v14 = vsub.f32 %v22485_v37, %v22557_v4  ;;  %v27448_v19 = vpop.f32.mrf.mxu0  ;;  %27579 = vmatprep.mubr.f32.mxu1 %v22557_v4  ;;  %v27483_v13 = vpop.f32.mrf.mxu1 }
 0x98c   :  { %27580 = vmatmul.mubr.f32.vlgmr.msra.gmra.mxu1 %v29516_v26  ;;  %v21128_v41 = vadd.f32 %v27455_v24, %v27448_v19 }
 0x98d   :  { %v21030_v20 = vpop.f32.mrf.mxu0  ;;  %27590 = vmatpush3.msra.mxu1 %v27824_v11  ;;  %v22559_v30 = vand.u32 4294901760, %v22558_v14  ;;  %v22570_v15 = vsub.f32 %v22568_v27, %v22569_v23 }
 0x98e   :  { %27591 = vmatprep.subr.mxu1 %v27826_v12  ;;  %v21122_v31 = vadd.f32 %v21121_v8, %v21030_v20 }
 0x98f   :  { %27592 = vmatpush3.msra.mxu1 %v27826_v12  ;;  %27593 = vmatprep.mubr.f32.mxu1 %v22559_v30  ;;  %v22560_v2 = vsub.f32 %v22558_v14, %v22559_v30  ;;  %v22571_v9 = vand.u32 4294901760, %v22570_v15 }
 0x990   :  { %v27462_v62 = vpop.f32.mrf.mxu0  ;;  %27594 = vmatmul.mubr.f32.vlgmr.msra.gmra.mxu1 %v22569_v23  ;;  %27603 = vmatprep.subr.mxu1 %v27824_v11 }
 0x991   :  { %v21211_v3 = vadd.f32 %v27462_v62, %v21128_v41  ;;  %27604 = vmatpush3.msra.mxu1 %v27824_v11  ;;  %27607 = vmatprep.mubr.f32.mxu1 %v22557_v4  ;;  %v22561_v7 = vand.u32 4294901760, %v22560_v2 }
 0x992   :  { %v21203_v10 = vpop.f32.mrf.mxu0  ;;  %27605 = vmatprep.subr.mxu1 %v27826_v12 }
 0x993   :  { %v21204_v39 = vadd.f32 %v21203_v10, %v21122_v31  ;;  %v21294_v29 = vadd.f32 %v27469_v25, %v21211_v3  ;;  %27572 = vmatprep.mubr.f32.mxu0 %v22561_v7  ;;  %27606 = vmatpush3.msra.mxu1 %v27826_v12  ;;  %v21449_v12 = vpop.f32.mrf.mxu1 }
 0x994   :  { %v27476_v38 = vpop.f32.mrf.mxu0  ;;  %27573 = vmatmul.mubr.f32.vlgmr.msra.gmra.mxu0 %v22571_v9  ;;  %27608 = vmatmul.mubr.f32.vlgmr.msra.gmra.mxu1 %v29516_v26 }
 0x995   :  { %v21377_v49 = vadd.f32 %v27476_v38, %v21294_v29  ;;  %v21286_v18 = vadd.f32 %v21285_v61, %v21204_v39  ;;  %27617 = vmatprep.subr.mxu1 %v27930_v40  ;;  %27583 = vmatpush3.msra.mxu0 %v27845_v16 }
 0x996   :  { %v21370_v11 = vpop.f32.mrf.mxu0  ;;  %27586 = vmatprep.mubr.f32.mxu0 %v22558_v14  ;;  %27618 = vmatpush3.msra.mxu1 %v27930_v40 }
 0x997   :  { %v21456_v53 = vadd.f32 %v27483_v13, %v21377_v49  ;;  %v21371_v1 = vadd.f32 %v21370_v11, %v21286_v18  ;;  %27584 = vmatprep.subr.mxu0 %v27848_v17  ;;  %27619 = vmatprep.subr.mxu1 %v27937_v42 }
 0x998   :  { %27585 = vmatpush3.msra.mxu0 %v27848_v17  ;;  %27620 = vmatpush3.msra.mxu1 %v27937_v42 }
 0x999   :  { %22479 = vst.msk [vmem:[#allocation5 + $0x2d8] sm:$0xff] %vm42_vm0, %v21456_v53  ;;  %v22996_v24 = vsel %vm42_vm0, %v21456_v53, 0  ;;  %v21450_v16 = vadd.f32 %v21449_v12, %v21371_v1  ;;  %27587 = vmatmul.mubr.f32.vlgmr.msra.gmra.mxu0 %v22568_v27  ;;  %27596 = vmatprep.subr.mxu0 %v27858_v21 }
 0x99a   :  { %v29540_v40 = vand.u32 4294901760, %v22996_v24  ;;  %27631 = vmatprep.subr.mxu1 %v27873_v28  ;;  %27597 = vmatpush3.msra.mxu0 %v27858_v21 }
 0x99b   :  { %22478 = vst.msk [vmem:[#allocation5 + $0x2d0] sm:$0xff] %vm42_vm0, %v21450_v16  ;;  %v22993_v17 = vsel %vm42_vm0, %v21450_v16, 0  ;;  %27600 = vmatprep.mubr.f32.mxu0 %v22557_v4  ;;  %27598 = vmatprep.subr.mxu0 %v27861_v22 }
 0x99c   :  { %v23076_v42 = vsub.f32 %v22996_v24, %v29540_v40  ;;  %v23065_v6 = vand.u32 4294901760, %v22993_v17  ;;  %27599 = vmatpush3.msra.mxu0 %v27861_v22 }
 0x99d   :  { %27601 = vmatmul.mubr.f32.vlgmr.msra.gmra.mxu0 %v29516_v26  ;;  %27610 = vmatprep.subr.mxu0 %v27873_v28 }
 0x99e   :  { %v27497_v5 = vpop.f32.mrf.mxu1  ;;  %v23077_v51 = vand.u32 4294901760, %v23076_v42  ;;  %v23066_v50 = vsub.f32 %v22993_v17, %v23065_v6  ;;  %27621 = vmatprep.mubr.f32.mxu1 %v23065_v6  ;;  %27611 = vmatpush3.msra.mxu0 %v27873_v28 }
 0x99f   :  { %27622 = vmatmul.mubr.f32.vlgmr.msra.gmra.mxu1 %v29540_v40  ;;  %27612 = vmatprep.subr.mxu0 %v27882_v32 }
 0x9a0   :  { %v21629_v21 = vpop.f32.mrf.mxu1  ;;  %27632 = vmatpush3.msra.mxu1 %v27873_v28  ;;  %v23067_v8 = vand.u32 4294901760, %v23066_v50  ;;  %27613 = vmatpush3.msra.mxu0 %v27882_v32  ;;  %v23078_v22 = vsub.f32 %v23076_v42, %v23077_v51 }
 0x9a1   :  { %27633 = vmatprep.subr.mxu1 %v27882_v32  ;;  %27624 = vmatprep.subr.mxu0 %v27888_v33 }
 0x9a2   :  { %v27511_v26 = vpop.f32.mrf.mxu1  ;;  %27634 = vmatpush3.msra.mxu1 %v27882_v32  ;;  %27635 = vmatprep.mubr.f32.mxu1 %v23067_v8  ;;  %v23068_v37 = vsub.f32 %v23066_v50, %v23067_v8  ;;  %v23079_v23 = vand.u32 4294901760, %v23078_v22 }
 0x9a3   :  { %27636 = vmatmul.mubr.f32.vlgmr.msra.gmra.mxu1 %v23077_v51  ;;  %27645 = vmatprep.subr.mxu1 %v27873_v28 }
 0x9a4   :  { %v21793_v27 = vpop.f32.mrf.mxu1  ;;  %27646 = vmatpush3.msra.mxu1 %v27873_v28  ;;  %27649 = vmatprep.mubr.f32.mxu1 %v23065_v6  ;;  %v23069_v4 = vand.u32 4294901760, %v23068_v37 }
 0x9a5   :  { %27647 = vmatprep.subr.mxu1 %v27882_v32 }
 0x9a6   :  { %v27490_v14 = vpop.f32.mrf.mxu0  ;;  %27614 = vmatprep.mubr.f32.mxu0 %v23069_v4  ;;  %27648 = vmatpush3.msra.mxu1 %v27882_v32  ;;  %v27525_v19 = vpop.f32.mrf.mxu1 }
 0x9a7   :  { %27615 = vmatmul.mubr.f32.vlgmr.msra.gmra.mxu0 %v23079_v23  ;;  %27650 = vmatmul.mubr.f32.vlgmr.msra.gmra.mxu1 %v29540_v40  ;;  %v21636_v28 = vadd.f32 %v27497_v5, %v27490_v14 }
 0x9a8   :  { %v21538_v25 = vpop.f32.mrf.mxu0  ;;  %27659 = vmatprep.subr.mxu1 %v27996_v52  ;;  %27625 = vmatpush3.msra.mxu0 %v27888_v33  ;;  %v21957_v30 = vpop.f32.mrf.mxu1 }
 0x9a9   :  { %27628 = vmatprep.mubr.f32.mxu0 %v23066_v50  ;;  %27660 = vmatpush3.msra.mxu1 %v27996_v52  ;;  %v21630_v32 = vadd.f32 %v21629_v21, %v21538_v25 }
 0x9aa   :  { %27626 = vmatprep.subr.mxu0 %v27895_v34  ;;  %27661 = vmatprep.subr.mxu1 %v28003_v54 }
 0x9ab   :  { %v27504_v20 = vpop.f32.mrf.mxu0  ;;  %27627 = vmatpush3.msra.mxu0 %v27895_v34  ;;  %27662 = vmatpush3.msra.mxu1 %v28003_v54 }
 0x9ac   :  { %v21719_v15 = vadd.f32 %v27504_v20, %v21636_v28  ;;  %27629 = vmatmul.mubr.f32.vlgmr.msra.gmra.mxu0 %v23076_v42  ;;  %27638 = vmatprep.subr.mxu0 %v27903_v35 }
 0x9ad   :  { %v21711_v33 = vpop.f32.mrf.mxu0  ;;  %27673 = vmatprep.subr.mxu1 %v27939_v43  ;;  %27639 = vmatpush3.msra.mxu0 %v27903_v35 }
 0x9ae   :  { %v21712_v52 = vadd.f32 %v21711_v33, %v21630_v32  ;;  %v21802_v41 = vadd.f32 %v27511_v26, %v21719_v15  ;;  %27642 = vmatprep.mubr.f32.mxu0 %v23065_v6  ;;  %27640 = vmatprep.subr.mxu0 %v27910_v36  ;;  %v27539_v34 = vpop.f32.mrf.mxu1 }
 0x9af   :  { %27641 = vmatpush3.msra.mxu0 %v27910_v36 }
 0x9b0   :  { %v27518_v54 = vpop.f32.mrf.mxu0  ;;  %v21794_v2 = vadd.f32 %v21793_v27, %v21712_v52  ;;  %27643 = vmatmul.mubr.f32.vlgmr.msra.gmra.mxu0 %v29540_v40  ;;  %27652 = vmatprep.subr.mxu0 %v27939_v43  ;;  %v22137_v3 = vpop.f32.mrf.mxu1 }
 0x9b1   :  { %v21885_v61 = vadd.f32 %v27518_v54, %v21802_v41  ;;  %27653 = vmatpush3.msra.mxu0 %v27939_v43 }
 0x9b2   :  { %v21878_v62 = vpop.f32.mrf.mxu0  ;;  %27654 = vmatprep.subr.mxu0 %v27946_v44  ;;  %v27553_v13 = vpop.f32.mrf.mxu1 }
 0x9b3   :  { %v21964_v35 = vadd.f32 %v27525_v19, %v21885_v61  ;;  %v21879_v31 = vadd.f32 %v21878_v62, %v21794_v2  ;;  %27655 = vmatpush3.msra.mxu0 %v27946_v44 }
 0x9b4   :  { %27666 = vmatprep.subr.mxu0 %v27953_v45  ;;  %v22301_v1 = vpop.f32.mrf.mxu1 }
 0x9b5   :  { %22481 = vst.msk [vmem:[#allocation5 + $0x2e8] sm:$0xff] %vm42_vm0, %v21964_v35  ;;  %v23504_v36 = vsel %vm42_vm0, %v21964_v35, 0  ;;  %v21958_v7 = vadd.f32 %v21957_v30, %v21879_v31 }
 0x9b6   :  { %v29584_v9 = vand.u32 4294901760, %v23504_v36 }
 0x9b7   :  { %22480 = vst.msk [vmem:[#allocation5 + $0x2e0] sm:$0xff] %vm42_vm0, %v21958_v7  ;;  %v23501_v10 = vsel %vm42_vm0, %v21958_v7, 0  ;;  %v27532_v39 = vpop.f32.mrf.mxu0 }
 0x9b8   :  { %v23584_v29 = vsub.f32 %v23504_v36, %v29584_v9  ;;  %v23573_v38 = vand.u32 4294901760, %v23501_v10  ;;  %v22144_v53 = vadd.f32 %v27539_v34, %v27532_v39  ;;  %v27567_v50 = vpop.f32.mrf.mxu1 }
 0x9b9   :  { %v22046_v49 = vpop.f32.mrf.mxu0 }
 0x9ba   :  { %v23585_v18 = vand.u32 4294901760, %v23584_v29  ;;  %v23574_v11 = vsub.f32 %v23501_v10, %v23573_v38  ;;  %27663 = vmatprep.mubr.f32.mxu1 %v23573_v38  ;;  %v22138_v40 = vadd.f32 %v22137_v3, %v22046_v49  ;;  %v22465_v14 = vpop.f32.mrf.mxu1 }
 0x9bb   :  { %27664 = vmatmul.mubr.f32.vlgmr.msra.gmra.mxu1 %v29584_v9 }
 0x9bc   :  { %v27546_v12 = vpop.f32.mrf.mxu0  ;;  %27674 = vmatpush3.msra.mxu1 %v27939_v43  ;;  %v23575_v24 = vand.u32 4294901760, %v23574_v11  ;;  %v23586_v16 = vsub.f32 %v23584_v29, %v23585_v18 }
 0x9bd   :  { %v22227_v17 = vadd.f32 %v27546_v12, %v22144_v53  ;;  %27675 = vmatprep.subr.mxu1 %v27946_v44 }
 0x9be   :  { %v22219_v42 = vpop.f32.mrf.mxu0  ;;  %27676 = vmatpush3.msra.mxu1 %v27946_v44  ;;  %27677 = vmatprep.mubr.f32.mxu1 %v23575_v24  ;;  %v23576_v6 = vsub.f32 %v23574_v11, %v23575_v24  ;;  %v23587_v22 = vand.u32 4294901760, %v23586_v16 }
 0x9bf   :  { %v22220_v5 = vadd.f32 %v22219_v42, %v22138_v40  ;;  %v22310_v51 = vadd.f32 %v27553_v13, %v22227_v17  ;;  %27678 = vmatmul.mubr.f32.vlgmr.msra.gmra.mxu1 %v23585_v18  ;;  %27687 = vmatprep.subr.mxu1 %v27939_v43 }
 0x9c0   :  { %v27560_v21 = vpop.f32.mrf.mxu0  ;;  %27688 = vmatpush3.msra.mxu1 %v27939_v43  ;;  %27691 = vmatprep.mubr.f32.mxu1 %v23573_v38  ;;  %v23577_v8 = vand.u32 4294901760, %v23576_v6 }
 0x9c1   :  { %v22393_v26 = vadd.f32 %v27560_v21, %v22310_v51  ;;  %v22302_v37 = vadd.f32 %v22301_v1, %v22220_v5  ;;  %27689 = vmatprep.subr.mxu1 %v27946_v44 }
 0x9c2   :  { %v22386_v27 = vpop.f32.mrf.mxu0  ;;  %27656 = vmatprep.mubr.f32.mxu0 %v23577_v8  ;;  %27690 = vmatpush3.msra.mxu1 %v27946_v44 }
 0x9c3   :  { %v22472_v4 = vadd.f32 %v27567_v50, %v22393_v26  ;;  %v22387_v23 = vadd.f32 %v22386_v27, %v22302_v37  ;;  %27657 = vmatmul.mubr.f32.vlgmr.msra.gmra.mxu0 %v23587_v22  ;;  %27692 = vmatmul.mubr.f32.vlgmr.msra.gmra.mxu1 %v29584_v9 }
 0x9c4   :  { %27701 = vmatprep.subr.mxu1 %v28062_v63  ;;  %27667 = vmatpush3.msra.mxu0 %v27953_v45 }
 0x9c5   :  { %22483 = vst.msk [vmem:[#allocation5 + $0x2f8] sm:$0xff] %vm42_vm0, %v22472_v4  ;;  %v24012_v43 = vsel %vm42_vm0, %v22472_v4, 0  ;;  %v22466_v19 = vadd.f32 %v22465_v14, %v22387_v23  ;;  %27670 = vmatprep.mubr.f32.mxu0 %v23574_v11  ;;  %27702 = vmatpush3.msra.mxu1 %v28062_v63 }
 0x9c6   :  { %v24091_v25 = vand.u32 4294901760, %v24012_v43  ;;  %27668 = vmatprep.subr.mxu0 %v27961_v46  ;;  %27703 = vmatprep.subr.mxu1 %v28069_v0 }
 0x9c7   :  { %22482 = vst.msk [vmem:[#allocation5 + $0x2f0] sm:$0xff] %vm42_vm0, %v22466_v19  ;;  %v24009_v44 = vsel %vm42_vm0, %v22466_v19, 0  ;;  %27669 = vmatpush3.msra.mxu0 %v27961_v46  ;;  %27704 = vmatpush3.msra.mxu1 %v28069_v0 }
 0x9c8   :  { %v24092_v45 = vsub.f32 %v24012_v43, %v24091_v25  ;;  %v24081_v28 = vand.u32 4294901760, %v24009_v44  ;;  %27671 = vmatmul.mubr.f32.vlgmr.msra.gmra.mxu0 %v23584_v29  ;;  %27680 = vmatprep.subr.mxu0 %v27969_v47 }
 0x9c9   :  { %27715 = vmatprep.subr.mxu1 %v28005_v55  ;;  %27681 = vmatpush3.msra.mxu0 %v27969_v47 }
 0x9ca   :  { %v24093_v63 = vand.u32 4294901760, %v24092_v45  ;;  %v24082_v20 = vsub.f32 %v24009_v44, %v24081_v28  ;;  %27705 = vmatprep.mubr.f32.mxu1 %v24081_v28  ;;  %27684 = vmatprep.mubr.f32.mxu0 %v23573_v38 }
 0x9cb   :  { %27706 = vmatmul.mubr.f32.vlgmr.msra.gmra.mxu1 %v24091_v25  ;;  %27682 = vmatprep.subr.mxu0 %v27976_v48 }
 0x9cc   :  { %27716 = vmatpush3.msra.mxu1 %v28005_v55  ;;  %27683 = vmatpush3.msra.mxu0 %v27976_v48  ;;  %v24083_v46 = vand.u32 4294901760, %v24082_v20  ;;  %v24094_v0 = vsub.f32 %v24092_v45, %v24093_v63 }
 0x9cd   :  { %27717 = vmatprep.subr.mxu1 %v28012_v56  ;;  %27685 = vmatmul.mubr.f32.vlgmr.msra.gmra.mxu0 %v29584_v9 }
 0x9ce   :  { %27718 = vmatpush3.msra.mxu1 %v28012_v56  ;;  %27719 = vmatprep.mubr.f32.mxu1 %v24083_v46  ;;  %v24084_v47 = vsub.f32 %v24082_v20, %v24083_v46  ;;  %v24095_v48 = vand.u32 4294901760, %v24094_v0 }
 0x9cf   :  { %27694 = vmatprep.subr.mxu0 %v28005_v55  ;;  %27720 = vmatmul.mubr.f32.vlgmr.msra.gmra.mxu1 %v24093_v63 }
 0x9d0   :  { %27729 = vmatprep.subr.mxu1 %v28005_v55  ;;  %27695 = vmatpush3.msra.mxu0 %v28005_v55  ;;  %v24085_v32 = vand.u32 4294901760, %v24084_v47 }
 0x9d1   :  { %27730 = vmatpush3.msra.mxu1 %v28005_v55  ;;  %27733 = vmatprep.mubr.f32.mxu1 %v24081_v28 }
 0x9d2   :  { %27696 = vmatprep.subr.mxu0 %v28012_v56  ;;  %27731 = vmatprep.subr.mxu1 %v28012_v56 }
 0x9d3   :  { %27697 = vmatpush3.msra.mxu0 %v28012_v56  ;;  %27698 = vmatprep.mubr.f32.mxu0 %v24085_v32 }
 0x9d4   :  { %27732 = vmatpush3.msra.mxu1 %v28012_v56  ;;  %27699 = vmatmul.mubr.f32.vlgmr.msra.gmra.mxu0 %v24095_v48 }
 0x9d5   :  { %27708 = vmatprep.subr.mxu0 %v28019_v57  ;;  %27734 = vmatmul.mubr.f32.vlgmr.msra.gmra.mxu1 %v24091_v25 }
 0x9d6   :  { %27709 = vmatpush3.msra.mxu0 %v28019_v57  ;;  %27712 = vmatprep.mubr.f32.mxu0 %v24082_v20 }
 0x9d7   :  { %27710 = vmatprep.subr.mxu0 %v28027_v58 }
 0x9d8   :  { %27711 = vmatpush3.msra.mxu0 %v28027_v58 }
 0x9d9   :  { %27713 = vmatmul.mubr.f32.vlgmr.msra.gmra.mxu0 %v24092_v45  ;;  %27722 = vmatprep.subr.mxu0 %v28035_v59 }
 0x9da   :  { %27723 = vmatpush3.msra.mxu0 %v28035_v59  ;;  %27726 = vmatprep.mubr.f32.mxu0 %v24081_v28 }
 0x9db   :  { %27724 = vmatprep.subr.mxu0 %v28042_v60 }
 0x9dc   :  { %27725 = vmatpush3.msra.mxu0 %v28042_v60 }
 0x9dd   :  { %27727 = vmatmul.mubr.f32.vlgmr.msra.gmra.mxu0 %v24091_v25 }
 0xa4c   :  { %v27581_v55 = vpop.f32.mrf.mxu1 }
 0xa4e   :  { %v22654_v56 = vpop.f32.mrf.mxu1 }
 0xa50   :  { %v27595_v30 = vpop.f32.mrf.mxu1 }
 0xa52   :  { %v22818_v57 = vpop.f32.mrf.mxu1 }
 0xa54   :  { %v27574_v15 = vpop.f32.mrf.mxu0  ;;  %v27609_v41 = vpop.f32.mrf.mxu1 }
 0xa55   :  { %v22661_v52 = vadd.f32 %v27581_v55, %v27574_v15 }
 0xa56   :  { %v22563_v33 = vpop.f32.mrf.mxu0  ;;  %v22982_v61 = vpop.f32.mrf.mxu1 }
 0xa57   :  { %v22655_v34 = vadd.f32 %v22654_v56, %v22563_v33 }
 0xa59   :  { %v27588_v58 = vpop.f32.mrf.mxu0 }
 0xa5a   :  { %v22744_v54 = vadd.f32 %v27588_v58, %v22661_v52 }
 0xa5b   :  { %v22736_v2 = vpop.f32.mrf.mxu0 }
 0xa5c   :  { %v22737_v59 = vadd.f32 %v22736_v2, %v22655_v34  ;;  %v22827_v62 = vadd.f32 %v27595_v30, %v22744_v54 }
 0xa5d   :  { %v27602_v35 = vpop.f32.mrf.mxu0 }
 0xa5e   :  { %v22910_v31 = vadd.f32 %v27602_v35, %v22827_v62  ;;  %v22819_v3 = vadd.f32 %v22818_v57, %v22737_v59 }
 0xa5f   :  { %v22903_v60 = vpop.f32.mrf.mxu0  ;;  %v27623_v36 = vpop.f32.mrf.mxu1 }
 0xa60   :  { %v22989_v7 = vadd.f32 %v27609_v41, %v22910_v31  ;;  %v22904_v9 = vadd.f32 %v22903_v60, %v22819_v3 }
 0xa61   :  { %v23162_v39 = vpop.f32.mrf.mxu1 }
 0xa62   :  { %24518 = vst.msk [vmem:[#allocation5 + $0x308] sm:$0xff] %vm42_vm0, %v22989_v7  ;;  %v22983_v10 = vadd.f32 %v22982_v61, %v22904_v9 }
 0xa63   :  { %v27637_v13 = vpop.f32.mrf.mxu1 }
 0xa64   :  { %24517 = vst.msk [vmem:[#allocation5 + $0x300] sm:$0xff] %vm42_vm0, %v22983_v10 }
 0xa65   :  { %v23326_v18 = vpop.f32.mrf.mxu1 }
 0xa67   :  { %v27616_v29 = vpop.f32.mrf.mxu0  ;;  %v27651_v40 = vpop.f32.mrf.mxu1 }
 0xa68   :  { %v23169_v49 = vadd.f32 %v27623_v36, %v27616_v29 }
 0xa69   :  { %v23071_v38 = vpop.f32.mrf.mxu0  ;;  %v23490_v21 = vpop.f32.mrf.mxu1 }
 0xa6a   :  { %v23163_v53 = vadd.f32 %v23162_v39, %v23071_v38 }
 0xa6c   :  { %v27630_v11 = vpop.f32.mrf.mxu0 }
 0xa6d   :  { %v23252_v1 = vadd.f32 %v27630_v11, %v23169_v49 }
 0xa6e   :  { %v23244_v12 = vpop.f32.mrf.mxu0 }
 0xa6f   :  { %v23245_v24 = vadd.f32 %v23244_v12, %v23163_v53  ;;  %v23335_v16 = vadd.f32 %v27637_v13, %v23252_v1 }
 0xa70   :  { %v27644_v17 = vpop.f32.mrf.mxu0 }
 0xa71   :  { %v23418_v42 = vadd.f32 %v27644_v17, %v23335_v16  ;;  %v23327_v6 = vadd.f32 %v23326_v18, %v23245_v24 }
 0xa72   :  { %v23411_v5 = vpop.f32.mrf.mxu0 }
 0xa73   :  { %v23497_v51 = vadd.f32 %v27651_v40, %v23418_v42  ;;  %v23412_v50 = vadd.f32 %v23411_v5, %v23327_v6 }
 0xa75   :  { %24520 = vst.msk [vmem:[#allocation5 + $0x318] sm:$0xff] %vm42_vm0, %v23497_v51  ;;  %v23491_v8 = vadd.f32 %v23490_v21, %v23412_v50 }
 0xa77   :  { %24519 = vst.msk [vmem:[#allocation5 + $0x310] sm:$0xff] %vm42_vm0, %v23491_v8 }
 0xa7b   :  { %v27665_v22 = vpop.f32.mrf.mxu1 }
 0xa7d   :  { %v23670_v26 = vpop.f32.mrf.mxu1 }
 0xa7f   :  { %v27679_v37 = vpop.f32.mrf.mxu1 }
 0xa81   :  { %v23834_v27 = vpop.f32.mrf.mxu1 }
 0xa83   :  { %v27658_v4 = vpop.f32.mrf.mxu0  ;;  %v27693_v23 = vpop.f32.mrf.mxu1 }
 0xa84   :  { %v23677_v43 = vadd.f32 %v27665_v22, %v27658_v4 }
 0xa85   :  { %v23579_v14 = vpop.f32.mrf.mxu0  ;;  %v23998_v44 = vpop.f32.mrf.mxu1 }
 0xa86   :  { %v23671_v25 = vadd.f32 %v23670_v26, %v23579_v14 }
 0xa88   :  { %v27672_v19 = vpop.f32.mrf.mxu0 }
 0xa89   :  { %v23760_v45 = vadd.f32 %v27672_v19, %v23677_v43 }
 0xa8a   :  { %v23752_v28 = vpop.f32.mrf.mxu0 }
 0xa8b   :  { %v23753_v63 = vadd.f32 %v23752_v28, %v23671_v25  ;;  %v23843_v20 = vadd.f32 %v27679_v37, %v23760_v45  ;;  %v27707_v46 = vpop.f32.mrf.mxu1 }
 0xa8d   :  { %v27686_v0 = vpop.f32.mrf.mxu0  ;;  %v23835_v47 = vadd.f32 %v23834_v27, %v23753_v63  ;;  %v24178_v30 = vpop.f32.mrf.mxu1 }
 0xa8e   :  { %v23926_v32 = vadd.f32 %v27686_v0, %v23843_v20 }
 0xa8f   :  { %v23919_v48 = vpop.f32.mrf.mxu0  ;;  %v27721_v33 = vpop.f32.mrf.mxu1 }
 0xa90   :  { %v24005_v55 = vadd.f32 %v27693_v23, %v23926_v32  ;;  %v23920_v56 = vadd.f32 %v23919_v48, %v23835_v47 }
 0xa91   :  { %v24342_v58 = vpop.f32.mrf.mxu1 }
 0xa92   :  { %24522 = vst.msk [vmem:[#allocation5 + $0x328] sm:$0xff] %vm42_vm0, %v24005_v55  ;;  %v23999_v57 = vadd.f32 %v23998_v44, %v23920_v56 }
 0xa94   :  { %24521 = vst.msk [vmem:[#allocation5 + $0x320] sm:$0xff] %vm42_vm0, %v23999_v57  ;;  %v27700_v15 = vpop.f32.mrf.mxu0 }
 0xa95   :  { %v24185_v41 = vadd.f32 %v27707_v46, %v27700_v15  ;;  %v27735_v35 = vpop.f32.mrf.mxu1 }
 0xa96   :  { %v24087_v52 = vpop.f32.mrf.mxu0 }
 0xa97   :  { %v24179_v54 = vadd.f32 %v24178_v30, %v24087_v52  ;;  %v24506_v10 = vpop.f32.mrf.mxu1 }
 0xa99   :  { %v27714_v34 = vpop.f32.mrf.mxu0 }
 0xa9a   :  { %v24268_v2 = vadd.f32 %v27714_v34, %v24185_v41 }
 0xa9b   :  { %v24260_v61 = vpop.f32.mrf.mxu0 }
 0xa9c   :  { %v24261_v59 = vadd.f32 %v24260_v61, %v24179_v54  ;;  %v24351_v62 = vadd.f32 %v27721_v33, %v24268_v2 }
 0xa9d   :  { %v27728_v31 = vpop.f32.mrf.mxu0 }
 0xa9e   :  { %v24434_v3 = vadd.f32 %v27728_v31, %v24351_v62  ;;  %v24343_v60 = vadd.f32 %v24342_v58, %v24261_v59 }
 0xa9f   :  { %v24427_v36 = vpop.f32.mrf.mxu0 }
 0xaa0   :  { %v24513_v7 = vadd.f32 %v27735_v35, %v24434_v3  ;;  %v24428_v9 = vadd.f32 %v24427_v36, %v24343_v60 }
 0xaa2   :  { %24524 = vst.msk [vmem:[#allocation5 + $0x338] sm:$0xff] %vm42_vm0, %v24513_v7  ;;  %v24507_v39 = vadd.f32 %v24506_v10, %v24428_v9 }
 0xaa4   :  { %24523 = vst.msk [vmem:[#allocation5 + $0x330] sm:$0xff] %vm42_vm0, %v24507_v39 }
 0xaa5   :  { %27772 = shalt.err (!%p27769_p9)
}
 0xaa6   :  { %24536 = dma.vmem_to_hbm [thread:$0]  %s24531_s13, 13312, %s29649_s1, [#allocation4], %s27786_s9, %s27786_s9, %s27787_s10  }
 0xaa7   :  { %27783 = dma.done.wait [#allocation4], 13312  }
 0xaa8   :  { %27784 = vsyncadd [#allocation4], 4294953984 }
 0xaa9   :  { %24540 = vsyncpa [#allocation3], 1 }
 0xaaa   :  { %24541 = vsyncpa [#allocation4], 1 }

</bundles_post_ra>
